<compile_context>
chip_gen: v7x
topology: tpu7x:2x2x1
jax: 0.10.0
libtpu: 0.0.40
codegen_flags: <defaults>
</compile_context>

<pallas_src>
import functools

import jax
import jax.numpy as jnp
import numpy as np
from jax import lax
from jax.experimental import pallas as pl
from jax.experimental.pallas import tpu as pltpu


def _round_up(x, m):
    return ((x + m - 1) // m) * m


def _vmem_limit_bytes(vocab_p, d_p, tb, k1, *, single_buffered_tables):
    """Scoped-VMEM limit from the actual footprint, clamped per-core."""
    table_bufs = 1 if single_buffered_tables else 2
    tables = table_bufs * 2 * vocab_p * d_p * 4          # resident tables
    ids = 2 * 2 * tb * (1 + k1) * 4                      # id blocks, dbl-buffered
    outs = 2 * 1 * 128 * 4                               # partial-loss tiles
    interm = 8 * tb * vocab_p * 4 + 6 * tb * d_p * 4     # [TB,V]/[TB,D] temps
    need = tables + ids + outs + interm + (4 << 20)      # + margin
    try:
        cap = int(pltpu.get_tpu_info().vmem_capacity_bytes)  # per-TC (v7x: 64 MiB)
    except Exception:
        cap = 64 << 20                                   # conservative fallback
    return int(max(32 << 20, min(need, int(cap * 0.85), 100 << 20)))


def _w2v_loss_kernel(cen_ids_ref, all_ids_ref, ctr_tab_ref, ctx_tab_ref,
                     out_ref, *, n_samples, block_b, batch, vocab_p,
                     mm_precision):
    """One batch tile: fused gather + scores + packed log-sigmoid + partial loss."""
    blk = pl.program_id(0)

    cen_ids = cen_ids_ref[...]                       # [TB, 1]   int32
    all_ids = all_ids_ref[...]                       # [TB, K+1] int32 (col0 = pos)
    ctr_tab = ctr_tab_ref[...]                       # [Vp, Dp]  f32
    ctx_tab = ctx_tab_ref[...]                       # [Vp, Dp]  f32

    vocab_iota = lax.broadcasted_iota(jnp.int32, (block_b, vocab_p), 1)

    # Fused center-embedding gather: one-hot @ table on the MXU (exact in f32
    # with HIGHEST precision).
    onehot_c = (cen_ids == vocab_iota).astype(jnp.float32)          # [TB, Vp]
    center = jnp.dot(onehot_c, ctr_tab,
                     preferred_element_type=jnp.float32,
                     precision=mm_precision)                         # [TB, Dp]

    # Score of every row against every context-table entry; one MXU matmul
    # covers the positive context and all K negatives.
    proj = lax.dot_general(center, ctx_tab,
                           (((1,), (1,)), ((), ())),
                           preferred_element_type=jnp.float32,
                           precision=mm_precision)                   # [TB, Vp]

    # Extract the K+1 per-sample scores into a packed [TB, K+1] matrix so the
    # clip / sign / softplus epilogue runs once on full-width vregs instead of
    # per-sample [TB, 1] slivers. (K+1 is small, so the short static select
    # loop only does cheap VPU/XLU work; the transcendentals are hoisted out.)
    k_iota = lax.broadcasted_iota(jnp.int32, (1, n_samples), 1)      # [1, K+1]
    scores = jnp.zeros((block_b, n_samples), jnp.float32)
    for k in range(n_samples):                 # k == 0 is the positive context
        ids_k = all_ids[:, k:k + 1]                                  # [TB, 1]
        col = jnp.sum(jnp.where(vocab_iota == ids_k, proj, 0.0),
                      axis=1, keepdims=True)                         # [TB, 1]
        scores = scores + jnp.where(k_iota == k, col, 0.0)           # place @ lane k

    sign = jnp.where(k_iota == 0, -1.0, 1.0)                         # [1, K+1]
    z = jnp.clip(scores, -10.0, 10.0) * sign
    # -log(sigmoid(-z)) == log(1 + exp(z)); |z| <= 10 so this is stable.
    loss_rows = jnp.sum(jnp.log(1.0 + jnp.exp(z)), axis=1, keepdims=True)

    # Valid-row mask (batch is padded up to a whole number of tiles).
    row = blk * block_b + lax.broadcasted_iota(jnp.int32, (block_b, 1), 0)
    valid = (row < batch).astype(jnp.float32)                        # [TB, 1]

    partial = jnp.sum(loss_rows * valid)
    # Lane-dense (1, 1, 128) partial tile; wrapper reads lane 0.
    out_ref[...] = jnp.zeros((1, 1, 128), jnp.float32) + partial


def word2vec_loss(center_word, context_word, neg_words,
                  center_table, context_table, *, block_b=64):
    """Pallas implementation of Word2VecModel.forward.

    Args:
      center_word:  int32 [B, 1] center word ids
      context_word: int32 [B, 1] context word ids
      neg_words:    int32 [B, K] negative-sample word ids
      center_table:  float32 [vocab, D] center embeddings
      context_table: float32 [vocab, D] context embeddings
    Returns:
      scalar float32 loss
    """
    B = center_word.shape[0]
    K = neg_words.shape[1]
    K1 = K + 1
    V, D = center_table.shape

    # Lane-align the tables: pad embedding dim and vocab to multiples of 128.
    # Zero rows/cols are never selected and add 0 to every dot product, so the
    # result is unchanged, but table loads and both MXU matmuls stay unmasked.
    Dp = _round_up(D, 128)
    Vp = _round_up(V, 128)
    if (Vp, Dp) != (V, D):
        center_table = jnp.pad(center_table, ((0, Vp - V), (0, Dp - D)))
        context_table = jnp.pad(context_table, ((0, Vp - V), (0, Dp - D)))
    # TODO(synk): for v7x with very large vocabularies, stream the tables in
    # bf16 (cast here, keep clip/softplus in f32) and/or tile the vocab axis.

    center_ids = center_word.reshape(B, 1).astype(jnp.int32)
    # Column 0 = positive context id, columns 1..K = negative ids.
    all_ids = jnp.concatenate(
        [context_word.reshape(B, 1).astype(jnp.int32),
         neg_words.reshape(B, K).astype(jnp.int32)], axis=1)        # [B, K+1]

    # Batch tile: multiple of 8 sublanes, auto-shrunk so every [TB, Vp]
    # intermediate stays around 256 KiB (keeps the select loop out of spills;
    # per-grid-step overhead is negligible).
    auto_tb = max(8, ((256 * 1024) // (4 * Vp)) // 8 * 8)
    tb = _round_up(min(block_b, auto_tb, _round_up(B, 8)), 8)
    b_pad = _round_up(B, tb)
    grid_b = b_pad // tb
    if b_pad != B:
        pad = b_pad - B
        center_ids = jnp.pad(center_ids, ((0, pad), (0, 0)))
        all_ids = jnp.pad(all_ids, ((0, pad), (0, 0)))

    cost = pl.CostEstimate(
        flops=int(2 * b_pad * Vp * Dp + 2 * b_pad * Dp * Vp),
        transcendentals=int(2 * b_pad * K1),
        bytes_accessed=int(4 * (2 * Vp * Dp + b_pad * (1 + K1) + grid_b * 128)),
    )

    def build(tuned):
        kernel = functools.partial(
            _w2v_loss_kernel, n_samples=K1, block_b=tb, batch=B, vocab_p=Vp,
            mm_precision=lax.Precision.HIGHEST if tuned else None)
        # Constant index_map -> the table block is fetched once; with
        # Buffered(1) it is also only allocated once (no wasted double buffer).
        table_kwargs = dict(pipeline_mode=pl.Buffered(1)) if tuned else {}
        table_spec = pl.BlockSpec((Vp, Dp), lambda i: (0, 0), **table_kwargs)
        return pl.pallas_call(
            kernel,
            out_shape=jax.ShapeDtypeStruct((grid_b, 1, 128), jnp.float32),
            grid=(grid_b,),
            in_specs=[
                pl.BlockSpec((tb, 1), lambda i: (i, 0)),      # center ids
                pl.BlockSpec((tb, K1), lambda i: (i, 0)),     # context + neg ids
                table_spec,                                   # center table (resident)
                table_spec,                                   # context table (resident)
            ],
            out_specs=pl.BlockSpec((1, 1, 128), lambda i: (i, 0, 0)),
            compiler_params=pltpu.CompilerParams(
                dimension_semantics=("parallel",),            # megacore-shards batch
                vmem_limit_bytes=_vmem_limit_bytes(
                    Vp, Dp, tb, K1, single_buffered_tables=tuned)),
            cost_estimate=cost,
        )

    try:
        partials = build(tuned=True)(center_ids, all_ids,
                                     center_table, context_table)
    except Exception:
        # Compatibility fallback (identical math): default operand buffering
        # and default matmul precision, for JAX/Mosaic builds that reject
        # pipeline_mode=Buffered(1) or HIGHEST-precision dots in kernels.
        partials = build(tuned=False)(center_ids, all_ids,
                                      center_table, context_table)

    return jnp.sum(partials[:, 0, 0]) / B


def _reference_loss(center_word, context_word, neg_words,
                    center_table, context_table):
    """Pure-JAX reference mirroring the PyTorch forward exactly."""
    center_ids = center_word.reshape(-1)
    context_ids = context_word.reshape(-1)
    center_embed = center_table[center_ids]
    context_embed = context_table[context_ids]
    pos_score = jnp.sum(center_embed * context_embed, axis=1)
    pos_score = jnp.clip(pos_score, -10.0, 10.0)
    pos_loss = -jnp.mean(jnp.log(jax.nn.sigmoid(pos_score)))
    neg_embed = context_table[neg_words]                             # [B,K,D]
    neg_score = jnp.einsum('bkd,bd->bk', neg_embed, center_embed,
                           precision=lax.Precision.HIGHEST)
    neg_score = jnp.clip(neg_score, -10.0, 10.0)
    neg_loss = -jnp.mean(jnp.sum(jnp.log(jax.nn.sigmoid(-neg_score)), axis=1))
    return pos_loss + neg_loss


if __name__ == "__main__":
    VOCAB = 500   # non-aligned on purpose: exercises the vocab padding path
    D = 100       # module default embedding_dim (exercises the D->128 pad)
    B = 8         # batch
    K = 8         # negative samples per example

    key = jax.random.PRNGKey(0)
    k1, k2, k3, k4, k5 = jax.random.split(key, 5)

    # Deterministic synthetic parameters.
    # PyTorch init: center ~ U(-0.5/D, 0.5/D); context initialized to zeros.
    # Context gets small nonzero values so the kernel compute is exercised.
    center_table = jax.random.uniform(
        k1, (VOCAB, D), jnp.float32, minval=-0.5 / D, maxval=0.5 / D)
    context_table = jax.random.uniform(
        k2, (VOCAB, D), jnp.float32, minval=-0.05, maxval=0.05)

    center_word = jax.random.randint(k3, (B, 1), 0, VOCAB, dtype=jnp.int32)
    context_word = jax.random.randint(k4, (B, 1), 0, VOCAB, dtype=jnp.int32)
    neg_words = jax.random.randint(k5, (B, K), 0, VOCAB, dtype=jnp.int32)

    loss = jax.block_until_ready(
        word2vec_loss(center_word, context_word, neg_words,
                      center_table, context_table))
    ref = jax.block_until_ready(
        _reference_loss(center_word, context_word, neg_words,
                        center_table, context_table))

    np.testing.assert_allclose(np.asarray(loss), np.asarray(ref),
                               rtol=1e-5, atol=1e-5)
    print("KERNEL_OK")
</pallas_src>

<mosaic_0001>
module attributes {stable_mosaic.version = 11 : i64} {
  func.func @_w2v_loss_kernel(%arg0: i32, %arg1: memref<8x1xi32, #tpu.memory_space<vmem>>, %arg2: memref<8x9xi32, #tpu.memory_space<vmem>>, %arg3: memref<512x128xf32, #tpu.memory_space<vmem>>, %arg4: memref<512x128xf32, #tpu.memory_space<vmem>>, %arg5: memref<1x1x128xf32, #tpu.memory_space<vmem>>) attributes {dimension_semantics = [#tpu.dimension_semantics<parallel>], iteration_bounds = array<i64: 1>, scalar_prefetch = 0 : i64, scratch_operands = 0 : i64, tpu.core_type = #tpu.core_type<tc>, window_params = [{transform_indices = @transform_0, window_bounds = array<i64: 8, 1>}, {transform_indices = @transform_1, window_bounds = array<i64: 8, 9>}, {pipeline_mode = #tpu.pipeline_mode<synchronous>, transform_indices = @transform_2, window_bounds = array<i64: 512, 128>}, {pipeline_mode = #tpu.pipeline_mode<synchronous>, transform_indices = @transform_3, window_bounds = array<i64: 512, 128>}, {transform_indices = @transform_4, window_bounds = array<i64: 1, 1, 128>}]} {
    %c0 = arith.constant 0 : index
    %c0_0 = arith.constant 0 : index
    %0 = vector.load %arg1[%c0, %c0_0] : memref<8x1xi32, #tpu.memory_space<vmem>>, vector<8x1xi32>
    %c0_1 = arith.constant 0 : index
    %c0_2 = arith.constant 0 : index
    %1 = vector.load %arg2[%c0_1, %c0_2] : memref<8x9xi32, #tpu.memory_space<vmem>>, vector<8x9xi32>
    %c0_3 = arith.constant 0 : index
    %c0_4 = arith.constant 0 : index
    %2 = vector.load %arg3[%c0_3, %c0_4] : memref<512x128xf32, #tpu.memory_space<vmem>>, vector<512x128xf32>
    %c0_5 = arith.constant 0 : index
    %c0_6 = arith.constant 0 : index
    %3 = vector.load %arg4[%c0_5, %c0_6] : memref<512x128xf32, #tpu.memory_space<vmem>>, vector<512x128xf32>
    %4 = tpu.iota {dimensions = array<i32: 1>} : vector<8x512xi32>
    %5 = vector.broadcast %0 : vector<8x1xi32> to vector<8x512xi32>
    %6 = arith.cmpi eq, %5, %4 : vector<8x512xi32>
    %7 = arith.extui %6 : vector<8x512xi1> to vector<8x512xi32>
    %8 = arith.sitofp %7 : vector<8x512xi32> to vector<8x512xf32>
    %cst = arith.constant dense<0.000000e+00> : vector<8x128xf32>
    %9 = tpu.matmul %8, %2, %cst {dimension_numbers = #tpu.dot_dimension_numbers<[1], [0], [0], [1], [0, 0, 1, 1], [], []>, precision = #tpu.contract_precision<fp32>} : vector<8x512xf32>, vector<512x128xf32>, vector<8x128xf32> -> vector<8x128xf32>
    %cst_7 = arith.constant dense<0.000000e+00> : vector<8x512xf32>
    %10 = tpu.matmul %9, %3, %cst_7 {dimension_numbers = #tpu.dot_dimension_numbers<[1], [1], [0], [0], [0, 0, 1, 0], [], []>, precision = #tpu.contract_precision<fp32>} : vector<8x128xf32>, vector<512x128xf32>, vector<8x512xf32> -> vector<8x512xf32>
    %11 = tpu.iota {dimensions = array<i32: 1>} : vector<1x9xi32>
    %cst_8 = arith.constant 0.000000e+00 : f32
    %12 = vector.broadcast %cst_8 : f32 to vector<8x9xf32>
    %13 = vector.extract_strided_slice %1 {offsets = [0, 0], sizes = [8, 1], strides = [1, 1]} : vector<8x9xi32> to vector<8x1xi32>
    %14 = vector.broadcast %13 : vector<8x1xi32> to vector<8x512xi32>
    %15 = arith.cmpi eq, %4, %14 : vector<8x512xi32>
    %cst_9 = arith.constant 0.000000e+00 : f32
    %16 = vector.broadcast %cst_9 : f32 to vector<8x512xf32>
    %17 = arith.select %15, %10, %16 : vector<8x512xi1>, vector<8x512xf32>
    %cst_10 = arith.constant dense<0.000000e+00> : vector<8xf32>
    %18 = vector.multi_reduction <add>, %17, %cst_10 [1] : vector<8x512xf32> to vector<8xf32>
    %19 = vector.shape_cast %18 : vector<8xf32> to vector<8x1xf32>
    %c0_i32 = arith.constant 0 : i32
    %20 = vector.broadcast %c0_i32 : i32 to vector<1x9xi32>
    %21 = arith.cmpi eq, %11, %20 : vector<1x9xi32>
    %cst_11 = arith.constant 0.000000e+00 : f32
    %22 = vector.shape_cast %21 : vector<1x9xi1> to vector<1x9xi1>
    %23 = vector.broadcast %22 : vector<1x9xi1> to vector<8x9xi1>
    %24 = vector.shape_cast %19 : vector<8x1xf32> to vector<8x1xf32>
    %25 = vector.broadcast %24 : vector<8x1xf32> to vector<8x9xf32>
    %26 = vector.broadcast %cst_11 : f32 to vector<8x9xf32>
    %27 = arith.select %23, %25, %26 : vector<8x9xi1>, vector<8x9xf32>
    %28 = arith.addf %12, %27 : vector<8x9xf32>
    %29 = vector.extract_strided_slice %1 {offsets = [0, 1], sizes = [8, 1], strides = [1, 1]} : vector<8x9xi32> to vector<8x1xi32>
    %30 = vector.broadcast %29 : vector<8x1xi32> to vector<8x512xi32>
    %31 = arith.cmpi eq, %4, %30 : vector<8x512xi32>
    %cst_12 = arith.constant 0.000000e+00 : f32
    %32 = vector.broadcast %cst_12 : f32 to vector<8x512xf32>
    %33 = arith.select %31, %10, %32 : vector<8x512xi1>, vector<8x512xf32>
    %cst_13 = arith.constant dense<0.000000e+00> : vector<8xf32>
    %34 = vector.multi_reduction <add>, %33, %cst_13 [1] : vector<8x512xf32> to vector<8xf32>
    %35 = vector.shape_cast %34 : vector<8xf32> to vector<8x1xf32>
    %c1_i32 = arith.constant 1 : i32
    %36 = vector.broadcast %c1_i32 : i32 to vector<1x9xi32>
    %37 = arith.cmpi eq, %11, %36 : vector<1x9xi32>
    %cst_14 = arith.constant 0.000000e+00 : f32
    %38 = vector.shape_cast %37 : vector<1x9xi1> to vector<1x9xi1>
    %39 = vector.broadcast %38 : vector<1x9xi1> to vector<8x9xi1>
    %40 = vector.shape_cast %35 : vector<8x1xf32> to vector<8x1xf32>
    %41 = vector.broadcast %40 : vector<8x1xf32> to vector<8x9xf32>
    %42 = vector.broadcast %cst_14 : f32 to vector<8x9xf32>
    %43 = arith.select %39, %41, %42 : vector<8x9xi1>, vector<8x9xf32>
    %44 = arith.addf %28, %43 : vector<8x9xf32>
    %45 = vector.extract_strided_slice %1 {offsets = [0, 2], sizes = [8, 1], strides = [1, 1]} : vector<8x9xi32> to vector<8x1xi32>
    %46 = vector.broadcast %45 : vector<8x1xi32> to vector<8x512xi32>
    %47 = arith.cmpi eq, %4, %46 : vector<8x512xi32>
    %cst_15 = arith.constant 0.000000e+00 : f32
    %48 = vector.broadcast %cst_15 : f32 to vector<8x512xf32>
    %49 = arith.select %47, %10, %48 : vector<8x512xi1>, vector<8x512xf32>
    %cst_16 = arith.constant dense<0.000000e+00> : vector<8xf32>
    %50 = vector.multi_reduction <add>, %49, %cst_16 [1] : vector<8x512xf32> to vector<8xf32>
    %51 = vector.shape_cast %50 : vector<8xf32> to vector<8x1xf32>
    %c2_i32 = arith.constant 2 : i32
    %52 = vector.broadcast %c2_i32 : i32 to vector<1x9xi32>
    %53 = arith.cmpi eq, %11, %52 : vector<1x9xi32>
    %cst_17 = arith.constant 0.000000e+00 : f32
    %54 = vector.shape_cast %53 : vector<1x9xi1> to vector<1x9xi1>
    %55 = vector.broadcast %54 : vector<1x9xi1> to vector<8x9xi1>
    %56 = vector.shape_cast %51 : vector<8x1xf32> to vector<8x1xf32>
    %57 = vector.broadcast %56 : vector<8x1xf32> to vector<8x9xf32>
    %58 = vector.broadcast %cst_17 : f32 to vector<8x9xf32>
    %59 = arith.select %55, %57, %58 : vector<8x9xi1>, vector<8x9xf32>
    %60 = arith.addf %44, %59 : vector<8x9xf32>
    %61 = vector.extract_strided_slice %1 {offsets = [0, 3], sizes = [8, 1], strides = [1, 1]} : vector<8x9xi32> to vector<8x1xi32>
    %62 = vector.broadcast %61 : vector<8x1xi32> to vector<8x512xi32>
    %63 = arith.cmpi eq, %4, %62 : vector<8x512xi32>
    %cst_18 = arith.constant 0.000000e+00 : f32
    %64 = vector.broadcast %cst_18 : f32 to vector<8x512xf32>
    %65 = arith.select %63, %10, %64 : vector<8x512xi1>, vector<8x512xf32>
    %cst_19 = arith.constant dense<0.000000e+00> : vector<8xf32>
    %66 = vector.multi_reduction <add>, %65, %cst_19 [1] : vector<8x512xf32> to vector<8xf32>
    %67 = vector.shape_cast %66 : vector<8xf32> to vector<8x1xf32>
    %c3_i32 = arith.constant 3 : i32
    %68 = vector.broadcast %c3_i32 : i32 to vector<1x9xi32>
    %69 = arith.cmpi eq, %11, %68 : vector<1x9xi32>
    %cst_20 = arith.constant 0.000000e+00 : f32
    %70 = vector.shape_cast %69 : vector<1x9xi1> to vector<1x9xi1>
    %71 = vector.broadcast %70 : vector<1x9xi1> to vector<8x9xi1>
    %72 = vector.shape_cast %67 : vector<8x1xf32> to vector<8x1xf32>
    %73 = vector.broadcast %72 : vector<8x1xf32> to vector<8x9xf32>
    %74 = vector.broadcast %cst_20 : f32 to vector<8x9xf32>
    %75 = arith.select %71, %73, %74 : vector<8x9xi1>, vector<8x9xf32>
    %76 = arith.addf %60, %75 : vector<8x9xf32>
    %77 = vector.extract_strided_slice %1 {offsets = [0, 4], sizes = [8, 1], strides = [1, 1]} : vector<8x9xi32> to vector<8x1xi32>
    %78 = vector.broadcast %77 : vector<8x1xi32> to vector<8x512xi32>
    %79 = arith.cmpi eq, %4, %78 : vector<8x512xi32>
    %cst_21 = arith.constant 0.000000e+00 : f32
    %80 = vector.broadcast %cst_21 : f32 to vector<8x512xf32>
    %81 = arith.select %79, %10, %80 : vector<8x512xi1>, vector<8x512xf32>
    %cst_22 = arith.constant dense<0.000000e+00> : vector<8xf32>
    %82 = vector.multi_reduction <add>, %81, %cst_22 [1] : vector<8x512xf32> to vector<8xf32>
    %83 = vector.shape_cast %82 : vector<8xf32> to vector<8x1xf32>
    %c4_i32 = arith.constant 4 : i32
    %84 = vector.broadcast %c4_i32 : i32 to vector<1x9xi32>
    %85 = arith.cmpi eq, %11, %84 : vector<1x9xi32>
    %cst_23 = arith.constant 0.000000e+00 : f32
    %86 = vector.shape_cast %85 : vector<1x9xi1> to vector<1x9xi1>
    %87 = vector.broadcast %86 : vector<1x9xi1> to vector<8x9xi1>
    %88 = vector.shape_cast %83 : vector<8x1xf32> to vector<8x1xf32>
    %89 = vector.broadcast %88 : vector<8x1xf32> to vector<8x9xf32>
    %90 = vector.broadcast %cst_23 : f32 to vector<8x9xf32>
    %91 = arith.select %87, %89, %90 : vector<8x9xi1>, vector<8x9xf32>
    %92 = arith.addf %76, %91 : vector<8x9xf32>
    %93 = vector.extract_strided_slice %1 {offsets = [0, 5], sizes = [8, 1], strides = [1, 1]} : vector<8x9xi32> to vector<8x1xi32>
    %94 = vector.broadcast %93 : vector<8x1xi32> to vector<8x512xi32>
    %95 = arith.cmpi eq, %4, %94 : vector<8x512xi32>
    %cst_24 = arith.constant 0.000000e+00 : f32
    %96 = vector.broadcast %cst_24 : f32 to vector<8x512xf32>
    %97 = arith.select %95, %10, %96 : vector<8x512xi1>, vector<8x512xf32>
    %cst_25 = arith.constant dense<0.000000e+00> : vector<8xf32>
    %98 = vector.multi_reduction <add>, %97, %cst_25 [1] : vector<8x512xf32> to vector<8xf32>
    %99 = vector.shape_cast %98 : vector<8xf32> to vector<8x1xf32>
    %c5_i32 = arith.constant 5 : i32
    %100 = vector.broadcast %c5_i32 : i32 to vector<1x9xi32>
    %101 = arith.cmpi eq, %11, %100 : vector<1x9xi32>
    %cst_26 = arith.constant 0.000000e+00 : f32
    %102 = vector.shape_cast %101 : vector<1x9xi1> to vector<1x9xi1>
    %103 = vector.broadcast %102 : vector<1x9xi1> to vector<8x9xi1>
    %104 = vector.shape_cast %99 : vector<8x1xf32> to vector<8x1xf32>
    %105 = vector.broadcast %104 : vector<8x1xf32> to vector<8x9xf32>
    %106 = vector.broadcast %cst_26 : f32 to vector<8x9xf32>
    %107 = arith.select %103, %105, %106 : vector<8x9xi1>, vector<8x9xf32>
    %108 = arith.addf %92, %107 : vector<8x9xf32>
    %109 = vector.extract_strided_slice %1 {offsets = [0, 6], sizes = [8, 1], strides = [1, 1]} : vector<8x9xi32> to vector<8x1xi32>
    %110 = vector.broadcast %109 : vector<8x1xi32> to vector<8x512xi32>
    %111 = arith.cmpi eq, %4, %110 : vector<8x512xi32>
    %cst_27 = arith.constant 0.000000e+00 : f32
    %112 = vector.broadcast %cst_27 : f32 to vector<8x512xf32>
    %113 = arith.select %111, %10, %112 : vector<8x512xi1>, vector<8x512xf32>
    %cst_28 = arith.constant dense<0.000000e+00> : vector<8xf32>
    %114 = vector.multi_reduction <add>, %113, %cst_28 [1] : vector<8x512xf32> to vector<8xf32>
    %115 = vector.shape_cast %114 : vector<8xf32> to vector<8x1xf32>
    %c6_i32 = arith.constant 6 : i32
    %116 = vector.broadcast %c6_i32 : i32 to vector<1x9xi32>
    %117 = arith.cmpi eq, %11, %116 : vector<1x9xi32>
    %cst_29 = arith.constant 0.000000e+00 : f32
    %118 = vector.shape_cast %117 : vector<1x9xi1> to vector<1x9xi1>
    %119 = vector.broadcast %118 : vector<1x9xi1> to vector<8x9xi1>
    %120 = vector.shape_cast %115 : vector<8x1xf32> to vector<8x1xf32>
    %121 = vector.broadcast %120 : vector<8x1xf32> to vector<8x9xf32>
    %122 = vector.broadcast %cst_29 : f32 to vector<8x9xf32>
    %123 = arith.select %119, %121, %122 : vector<8x9xi1>, vector<8x9xf32>
    %124 = arith.addf %108, %123 : vector<8x9xf32>
    %125 = vector.extract_strided_slice %1 {offsets = [0, 7], sizes = [8, 1], strides = [1, 1]} : vector<8x9xi32> to vector<8x1xi32>
    %126 = vector.broadcast %125 : vector<8x1xi32> to vector<8x512xi32>
    %127 = arith.cmpi eq, %4, %126 : vector<8x512xi32>
    %cst_30 = arith.constant 0.000000e+00 : f32
    %128 = vector.broadcast %cst_30 : f32 to vector<8x512xf32>
    %129 = arith.select %127, %10, %128 : vector<8x512xi1>, vector<8x512xf32>
    %cst_31 = arith.constant dense<0.000000e+00> : vector<8xf32>
    %130 = vector.multi_reduction <add>, %129, %cst_31 [1] : vector<8x512xf32> to vector<8xf32>
    %131 = vector.shape_cast %130 : vector<8xf32> to vector<8x1xf32>
    %c7_i32 = arith.constant 7 : i32
    %132 = vector.broadcast %c7_i32 : i32 to vector<1x9xi32>
    %133 = arith.cmpi eq, %11, %132 : vector<1x9xi32>
    %cst_32 = arith.constant 0.000000e+00 : f32
    %134 = vector.shape_cast %133 : vector<1x9xi1> to vector<1x9xi1>
    %135 = vector.broadcast %134 : vector<1x9xi1> to vector<8x9xi1>
    %136 = vector.shape_cast %131 : vector<8x1xf32> to vector<8x1xf32>
    %137 = vector.broadcast %136 : vector<8x1xf32> to vector<8x9xf32>
    %138 = vector.broadcast %cst_32 : f32 to vector<8x9xf32>
    %139 = arith.select %135, %137, %138 : vector<8x9xi1>, vector<8x9xf32>
    %140 = arith.addf %124, %139 : vector<8x9xf32>
    %141 = vector.extract_strided_slice %1 {offsets = [0, 8], sizes = [8, 1], strides = [1, 1]} : vector<8x9xi32> to vector<8x1xi32>
    %142 = vector.broadcast %141 : vector<8x1xi32> to vector<8x512xi32>
    %143 = arith.cmpi eq, %4, %142 : vector<8x512xi32>
    %cst_33 = arith.constant 0.000000e+00 : f32
    %144 = vector.broadcast %cst_33 : f32 to vector<8x512xf32>
    %145 = arith.select %143, %10, %144 : vector<8x512xi1>, vector<8x512xf32>
    %cst_34 = arith.constant dense<0.000000e+00> : vector<8xf32>
    %146 = vector.multi_reduction <add>, %145, %cst_34 [1] : vector<8x512xf32> to vector<8xf32>
    %147 = vector.shape_cast %146 : vector<8xf32> to vector<8x1xf32>
    %c8_i32 = arith.constant 8 : i32
    %148 = vector.broadcast %c8_i32 : i32 to vector<1x9xi32>
    %149 = arith.cmpi eq, %11, %148 : vector<1x9xi32>
    %cst_35 = arith.constant 0.000000e+00 : f32
    %150 = vector.shape_cast %149 : vector<1x9xi1> to vector<1x9xi1>
    %151 = vector.broadcast %150 : vector<1x9xi1> to vector<8x9xi1>
    %152 = vector.shape_cast %147 : vector<8x1xf32> to vector<8x1xf32>
    %153 = vector.broadcast %152 : vector<8x1xf32> to vector<8x9xf32>
    %154 = vector.broadcast %cst_35 : f32 to vector<8x9xf32>
    %155 = arith.select %151, %153, %154 : vector<8x9xi1>, vector<8x9xf32>
    %156 = arith.addf %140, %155 : vector<8x9xf32>
    %c0_i32_36 = arith.constant 0 : i32
    %157 = vector.broadcast %c0_i32_36 : i32 to vector<1x9xi32>
    %158 = arith.cmpi eq, %11, %157 : vector<1x9xi32>
    %cst_37 = arith.constant -1.000000e+00 : f32
    %cst_38 = arith.constant 1.000000e+00 : f32
    %159 = vector.broadcast %cst_37 : f32 to vector<1x9xf32>
    %160 = vector.broadcast %cst_38 : f32 to vector<1x9xf32>
    %161 = arith.select %158, %159, %160 : vector<1x9xi1>, vector<1x9xf32>
    %cst_39 = arith.constant -1.000000e+01 : f32
    %cst_40 = arith.constant 1.000000e+01 : f32
    %162 = vector.broadcast %cst_39 : f32 to vector<8x9xf32>
    %163 = arith.maximumf %162, %156 : vector<8x9xf32>
    %164 = vector.broadcast %cst_40 : f32 to vector<8x9xf32>
    %165 = arith.minimumf %164, %163 : vector<8x9xf32>
    %166 = vector.broadcast %161 : vector<1x9xf32> to vector<8x9xf32>
    %167 = arith.mulf %165, %166 : vector<8x9xf32>
    %168 = math.exp %167 : vector<8x9xf32>
    %cst_41 = arith.constant 1.000000e+00 : f32
    %169 = vector.broadcast %cst_41 : f32 to vector<8x9xf32>
    %170 = arith.addf %169, %168 : vector<8x9xf32>
    %171 = math.log %170 : vector<8x9xf32>
    %cst_42 = arith.constant dense<0.000000e+00> : vector<8xf32>
    %172 = vector.multi_reduction <add>, %171, %cst_42 [1] : vector<8x9xf32> to vector<8xf32>
    %173 = vector.shape_cast %172 : vector<8xf32> to vector<8x1xf32>
    %c8_i32_43 = arith.constant 8 : i32
    %174 = arith.muli %arg0, %c8_i32_43 : i32
    %175 = tpu.iota {dimensions = array<i32: 0>} : vector<8x1xi32>
    %176 = vector.broadcast %174 : i32 to vector<8x1xi32>
    %177 = arith.addi %176, %175 : vector<8x1xi32>
    %c8_i32_44 = arith.constant 8 : i32
    %178 = vector.broadcast %c8_i32_44 : i32 to vector<8x1xi32>
    %179 = arith.cmpi slt, %177, %178 : vector<8x1xi32>
    %180 = arith.extui %179 : vector<8x1xi1> to vector<8x1xi32>
    %181 = arith.sitofp %180 : vector<8x1xi32> to vector<8x1xf32>
    %182 = arith.mulf %173, %181 : vector<8x1xf32>
    %183 = vector.shape_cast %182 : vector<8x1xf32> to vector<1x8x1xf32>
    %cst_45 = arith.constant dense<0.000000e+00> : vector<1xf32>
    %184 = vector.multi_reduction <add>, %183, %cst_45 [1, 2] : vector<1x8x1xf32> to vector<1xf32>
    %185 = vector.shape_cast %184 : vector<1xf32> to vector<1x1x1xf32>
    %186 = vector.extract %185[0, 0, 0] : f32 from vector<1x1x1xf32>
    %cst_46 = arith.constant 0.000000e+00 : f32
    %187 = vector.broadcast %cst_46 : f32 to vector<1x1x128xf32>
    %188 = vector.broadcast %186 : f32 to vector<1x1x128xf32>
    %189 = arith.addf %187, %188 : vector<1x1x128xf32>
    %c0_47 = arith.constant 0 : index
    %c0_48 = arith.constant 0 : index
    %c0_49 = arith.constant 0 : index
    %190 = vector.load %arg5[%c0_47, %c0_48, %c0_49] : memref<1x1x128xf32, #tpu.memory_space<vmem>>, vector<1x1x128xf32>
    tpu.vector_store %arg5[%c0_47, %c0_48, %c0_49], %189 {strides = array<i32>} : memref<1x1x128xf32, #tpu.memory_space<vmem>>, vector<1x1x128xf32>,
    return
  }
  func.func @transform_0(%arg0: i32) -> (i32, i32) {
    %c0_i32 = arith.constant 0 : i32
    %c0_i32_0 = arith.constant 0 : i32
    return %arg0, %c0_i32 : i32, i32
  }
  func.func @transform_1(%arg0: i32) -> (i32, i32) {
    %c0_i32 = arith.constant 0 : i32
    %c0_i32_0 = arith.constant 0 : i32
    return %arg0, %c0_i32 : i32, i32
  }
  func.func @transform_2(%arg0: i32) -> (i32, i32) {
    %c0_i32 = arith.constant 0 : i32
    %c0_i32_0 = arith.constant 0 : i32
    %c0_i32_1 = arith.constant 0 : i32
    return %c0_i32, %c0_i32_0 : i32, i32
  }
  func.func @transform_3(%arg0: i32) -> (i32, i32) {
    %c0_i32 = arith.constant 0 : i32
    %c0_i32_0 = arith.constant 0 : i32
    %c0_i32_1 = arith.constant 0 : i32
    return %c0_i32, %c0_i32_0 : i32, i32
  }
  func.func @transform_4(%arg0: i32) -> (i32, i32, i32) {
    %c0_i32 = arith.constant 0 : i32
    %c0_i32_0 = arith.constant 0 : i32
    %c0_i32_1 = arith.constant 0 : i32
    return %arg0, %c0_i32, %c0_i32_0 : i32, i32, i32
  }
}

module attributes {stable_mosaic.version = 11 : i64} {
  func.func @_w2v_loss_kernel(%arg0: i32, %arg1: memref<8x1xi32, #tpu.memory_space<vmem>>, %arg2: memref<8x9xi32, #tpu.memory_space<vmem>>, %arg3: memref<512x128xf32, #tpu.memory_space<vmem>>, %arg4: memref<512x128xf32, #tpu.memory_space<vmem>>, %arg5: memref<1x1x128xf32, #tpu.memory_space<vmem>>) attributes {dimension_semantics = [#tpu.dimension_semantics<parallel>], iteration_bounds = array<i64: 1>, scalar_prefetch = 0 : i64, scratch_operands = 0 : i64, tpu.core_type = #tpu.core_type<tc>, window_params = [{transform_indices = @transform_0, window_bounds = array<i64: 8, 1>}, {transform_indices = @transform_1, window_bounds = array<i64: 8, 9>}, {pipeline_mode = #tpu.pipeline_mode<synchronous>, transform_indices = @transform_2, window_bounds = array<i64: 512, 128>}, {pipeline_mode = #tpu.pipeline_mode<synchronous>, transform_indices = @transform_3, window_bounds = array<i64: 512, 128>}, {transform_indices = @transform_4, window_bounds = array<i64: 1, 1, 128>}]} {
    %c0 = arith.constant 0 : index
    %c0_0 = arith.constant 0 : index
    %0 = vector.load %arg1[%c0, %c0_0] : memref<8x1xi32, #tpu.memory_space<vmem>>, vector<8x1xi32>
    %c0_1 = arith.constant 0 : index
    %c0_2 = arith.constant 0 : index
    %1 = vector.load %arg2[%c0_1, %c0_2] : memref<8x9xi32, #tpu.memory_space<vmem>>, vector<8x9xi32>
    %c0_3 = arith.constant 0 : index
    %c0_4 = arith.constant 0 : index
    %2 = vector.load %arg3[%c0_3, %c0_4] : memref<512x128xf32, #tpu.memory_space<vmem>>, vector<512x128xf32>
    %c0_5 = arith.constant 0 : index
    %c0_6 = arith.constant 0 : index
    %3 = vector.load %arg4[%c0_5, %c0_6] : memref<512x128xf32, #tpu.memory_space<vmem>>, vector<512x128xf32>
    %4 = tpu.iota {dimensions = array<i32: 1>} : vector<8x512xi32>
    %5 = vector.broadcast %0 : vector<8x1xi32> to vector<8x512xi32>
    %6 = arith.cmpi eq, %5, %4 : vector<8x512xi32>
    %7 = arith.extui %6 : vector<8x512xi1> to vector<8x512xi32>
    %8 = arith.sitofp %7 : vector<8x512xi32> to vector<8x512xf32>
    %cst = arith.constant dense<0.000000e+00> : vector<8x128xf32>
    %9 = tpu.matmul %8, %2, %cst {dimension_numbers = #tpu.dot_dimension_numbers<[1], [0], [0], [1], [0, 0, 1, 1], [], []>} : vector<8x512xf32>, vector<512x128xf32>, vector<8x128xf32> -> vector<8x128xf32>
    %cst_7 = arith.constant dense<0.000000e+00> : vector<8x512xf32>
    %10 = tpu.matmul %9, %3, %cst_7 {dimension_numbers = #tpu.dot_dimension_numbers<[1], [1], [0], [0], [0, 0, 1, 0], [], []>} : vector<8x128xf32>, vector<512x128xf32>, vector<8x512xf32> -> vector<8x512xf32>
    %11 = tpu.iota {dimensions = array<i32: 1>} : vector<1x9xi32>
    %cst_8 = arith.constant 0.000000e+00 : f32
    %12 = vector.broadcast %cst_8 : f32 to vector<8x9xf32>
    %13 = vector.extract_strided_slice %1 {offsets = [0, 0], sizes = [8, 1], strides = [1, 1]} : vector<8x9xi32> to vector<8x1xi32>
    %14 = vector.broadcast %13 : vector<8x1xi32> to vector<8x512xi32>
    %15 = arith.cmpi eq, %4, %14 : vector<8x512xi32>
    %cst_9 = arith.constant 0.000000e+00 : f32
    %16 = vector.broadcast %cst_9 : f32 to vector<8x512xf32>
    %17 = arith.select %15, %10, %16 : vector<8x512xi1>, vector<8x512xf32>
    %cst_10 = arith.constant dense<0.000000e+00> : vector<8xf32>
    %18 = vector.multi_reduction <add>, %17, %cst_10 [1] : vector<8x512xf32> to vector<8xf32>
    %19 = vector.shape_cast %18 : vector<8xf32> to vector<8x1xf32>
    %c0_i32 = arith.constant 0 : i32
    %20 = vector.broadcast %c0_i32 : i32 to vector<1x9xi32>
    %21 = arith.cmpi eq, %11, %20 : vector<1x9xi32>
    %cst_11 = arith.constant 0.000000e+00 : f32
    %22 = vector.shape_cast %21 : vector<1x9xi1> to vector<1x9xi1>
    %23 = vector.broadcast %22 : vector<1x9xi1> to vector<8x9xi1>
    %24 = vector.shape_cast %19 : vector<8x1xf32> to vector<8x1xf32>
    %25 = vector.broadcast %24 : vector<8x1xf32> to vector<8x9xf32>
    %26 = vector.broadcast %cst_11 : f32 to vector<8x9xf32>
    %27 = arith.select %23, %25, %26 : vector<8x9xi1>, vector<8x9xf32>
    %28 = arith.addf %12, %27 : vector<8x9xf32>
    %29 = vector.extract_strided_slice %1 {offsets = [0, 1], sizes = [8, 1], strides = [1, 1]} : vector<8x9xi32> to vector<8x1xi32>
    %30 = vector.broadcast %29 : vector<8x1xi32> to vector<8x512xi32>
    %31 = arith.cmpi eq, %4, %30 : vector<8x512xi32>
    %cst_12 = arith.constant 0.000000e+00 : f32
    %32 = vector.broadcast %cst_12 : f32 to vector<8x512xf32>
    %33 = arith.select %31, %10, %32 : vector<8x512xi1>, vector<8x512xf32>
    %cst_13 = arith.constant dense<0.000000e+00> : vector<8xf32>
    %34 = vector.multi_reduction <add>, %33, %cst_13 [1] : vector<8x512xf32> to vector<8xf32>
    %35 = vector.shape_cast %34 : vector<8xf32> to vector<8x1xf32>
    %c1_i32 = arith.constant 1 : i32
    %36 = vector.broadcast %c1_i32 : i32 to vector<1x9xi32>
    %37 = arith.cmpi eq, %11, %36 : vector<1x9xi32>
    %cst_14 = arith.constant 0.000000e+00 : f32
    %38 = vector.shape_cast %37 : vector<1x9xi1> to vector<1x9xi1>
    %39 = vector.broadcast %38 : vector<1x9xi1> to vector<8x9xi1>
    %40 = vector.shape_cast %35 : vector<8x1xf32> to vector<8x1xf32>
    %41 = vector.broadcast %40 : vector<8x1xf32> to vector<8x9xf32>
    %42 = vector.broadcast %cst_14 : f32 to vector<8x9xf32>
    %43 = arith.select %39, %41, %42 : vector<8x9xi1>, vector<8x9xf32>
    %44 = arith.addf %28, %43 : vector<8x9xf32>
    %45 = vector.extract_strided_slice %1 {offsets = [0, 2], sizes = [8, 1], strides = [1, 1]} : vector<8x9xi32> to vector<8x1xi32>
    %46 = vector.broadcast %45 : vector<8x1xi32> to vector<8x512xi32>
    %47 = arith.cmpi eq, %4, %46 : vector<8x512xi32>
    %cst_15 = arith.constant 0.000000e+00 : f32
    %48 = vector.broadcast %cst_15 : f32 to vector<8x512xf32>
    %49 = arith.select %47, %10, %48 : vector<8x512xi1>, vector<8x512xf32>
    %cst_16 = arith.constant dense<0.000000e+00> : vector<8xf32>
    %50 = vector.multi_reduction <add>, %49, %cst_16 [1] : vector<8x512xf32> to vector<8xf32>
    %51 = vector.shape_cast %50 : vector<8xf32> to vector<8x1xf32>
    %c2_i32 = arith.constant 2 : i32
    %52 = vector.broadcast %c2_i32 : i32 to vector<1x9xi32>
    %53 = arith.cmpi eq, %11, %52 : vector<1x9xi32>
    %cst_17 = arith.constant 0.000000e+00 : f32
    %54 = vector.shape_cast %53 : vector<1x9xi1> to vector<1x9xi1>
    %55 = vector.broadcast %54 : vector<1x9xi1> to vector<8x9xi1>
    %56 = vector.shape_cast %51 : vector<8x1xf32> to vector<8x1xf32>
    %57 = vector.broadcast %56 : vector<8x1xf32> to vector<8x9xf32>
    %58 = vector.broadcast %cst_17 : f32 to vector<8x9xf32>
    %59 = arith.select %55, %57, %58 : vector<8x9xi1>, vector<8x9xf32>
    %60 = arith.addf %44, %59 : vector<8x9xf32>
    %61 = vector.extract_strided_slice %1 {offsets = [0, 3], sizes = [8, 1], strides = [1, 1]} : vector<8x9xi32> to vector<8x1xi32>
    %62 = vector.broadcast %61 : vector<8x1xi32> to vector<8x512xi32>
    %63 = arith.cmpi eq, %4, %62 : vector<8x512xi32>
    %cst_18 = arith.constant 0.000000e+00 : f32
    %64 = vector.broadcast %cst_18 : f32 to vector<8x512xf32>
    %65 = arith.select %63, %10, %64 : vector<8x512xi1>, vector<8x512xf32>
    %cst_19 = arith.constant dense<0.000000e+00> : vector<8xf32>
    %66 = vector.multi_reduction <add>, %65, %cst_19 [1] : vector<8x512xf32> to vector<8xf32>
    %67 = vector.shape_cast %66 : vector<8xf32> to vector<8x1xf32>
    %c3_i32 = arith.constant 3 : i32
    %68 = vector.broadcast %c3_i32 : i32 to vector<1x9xi32>
    %69 = arith.cmpi eq, %11, %68 : vector<1x9xi32>
    %cst_20 = arith.constant 0.000000e+00 : f32
    %70 = vector.shape_cast %69 : vector<1x9xi1> to vector<1x9xi1>
    %71 = vector.broadcast %70 : vector<1x9xi1> to vector<8x9xi1>
    %72 = vector.shape_cast %67 : vector<8x1xf32> to vector<8x1xf32>
    %73 = vector.broadcast %72 : vector<8x1xf32> to vector<8x9xf32>
    %74 = vector.broadcast %cst_20 : f32 to vector<8x9xf32>
    %75 = arith.select %71, %73, %74 : vector<8x9xi1>, vector<8x9xf32>
    %76 = arith.addf %60, %75 : vector<8x9xf32>
    %77 = vector.extract_strided_slice %1 {offsets = [0, 4], sizes = [8, 1], strides = [1, 1]} : vector<8x9xi32> to vector<8x1xi32>
    %78 = vector.broadcast %77 : vector<8x1xi32> to vector<8x512xi32>
    %79 = arith.cmpi eq, %4, %78 : vector<8x512xi32>
    %cst_21 = arith.constant 0.000000e+00 : f32
    %80 = vector.broadcast %cst_21 : f32 to vector<8x512xf32>
    %81 = arith.select %79, %10, %80 : vector<8x512xi1>, vector<8x512xf32>
    %cst_22 = arith.constant dense<0.000000e+00> : vector<8xf32>
    %82 = vector.multi_reduction <add>, %81, %cst_22 [1] : vector<8x512xf32> to vector<8xf32>
    %83 = vector.shape_cast %82 : vector<8xf32> to vector<8x1xf32>
    %c4_i32 = arith.constant 4 : i32
    %84 = vector.broadcast %c4_i32 : i32 to vector<1x9xi32>
    %85 = arith.cmpi eq, %11, %84 : vector<1x9xi32>
    %cst_23 = arith.constant 0.000000e+00 : f32
    %86 = vector.shape_cast %85 : vector<1x9xi1> to vector<1x9xi1>
    %87 = vector.broadcast %86 : vector<1x9xi1> to vector<8x9xi1>
    %88 = vector.shape_cast %83 : vector<8x1xf32> to vector<8x1xf32>
    %89 = vector.broadcast %88 : vector<8x1xf32> to vector<8x9xf32>
    %90 = vector.broadcast %cst_23 : f32 to vector<8x9xf32>
    %91 = arith.select %87, %89, %90 : vector<8x9xi1>, vector<8x9xf32>
    %92 = arith.addf %76, %91 : vector<8x9xf32>
    %93 = vector.extract_strided_slice %1 {offsets = [0, 5], sizes = [8, 1], strides = [1, 1]} : vector<8x9xi32> to vector<8x1xi32>
    %94 = vector.broadcast %93 : vector<8x1xi32> to vector<8x512xi32>
    %95 = arith.cmpi eq, %4, %94 : vector<8x512xi32>
    %cst_24 = arith.constant 0.000000e+00 : f32
    %96 = vector.broadcast %cst_24 : f32 to vector<8x512xf32>
    %97 = arith.select %95, %10, %96 : vector<8x512xi1>, vector<8x512xf32>
    %cst_25 = arith.constant dense<0.000000e+00> : vector<8xf32>
    %98 = vector.multi_reduction <add>, %97, %cst_25 [1] : vector<8x512xf32> to vector<8xf32>
    %99 = vector.shape_cast %98 : vector<8xf32> to vector<8x1xf32>
    %c5_i32 = arith.constant 5 : i32
    %100 = vector.broadcast %c5_i32 : i32 to vector<1x9xi32>
    %101 = arith.cmpi eq, %11, %100 : vector<1x9xi32>
    %cst_26 = arith.constant 0.000000e+00 : f32
    %102 = vector.shape_cast %101 : vector<1x9xi1> to vector<1x9xi1>
    %103 = vector.broadcast %102 : vector<1x9xi1> to vector<8x9xi1>
    %104 = vector.shape_cast %99 : vector<8x1xf32> to vector<8x1xf32>
    %105 = vector.broadcast %104 : vector<8x1xf32> to vector<8x9xf32>
    %106 = vector.broadcast %cst_26 : f32 to vector<8x9xf32>
    %107 = arith.select %103, %105, %106 : vector<8x9xi1>, vector<8x9xf32>
    %108 = arith.addf %92, %107 : vector<8x9xf32>
    %109 = vector.extract_strided_slice %1 {offsets = [0, 6], sizes = [8, 1], strides = [1, 1]} : vector<8x9xi32> to vector<8x1xi32>
    %110 = vector.broadcast %109 : vector<8x1xi32> to vector<8x512xi32>
    %111 = arith.cmpi eq, %4, %110 : vector<8x512xi32>
    %cst_27 = arith.constant 0.000000e+00 : f32
    %112 = vector.broadcast %cst_27 : f32 to vector<8x512xf32>
    %113 = arith.select %111, %10, %112 : vector<8x512xi1>, vector<8x512xf32>
    %cst_28 = arith.constant dense<0.000000e+00> : vector<8xf32>
    %114 = vector.multi_reduction <add>, %113, %cst_28 [1] : vector<8x512xf32> to vector<8xf32>
    %115 = vector.shape_cast %114 : vector<8xf32> to vector<8x1xf32>
    %c6_i32 = arith.constant 6 : i32
    %116 = vector.broadcast %c6_i32 : i32 to vector<1x9xi32>
    %117 = arith.cmpi eq, %11, %116 : vector<1x9xi32>
    %cst_29 = arith.constant 0.000000e+00 : f32
    %118 = vector.shape_cast %117 : vector<1x9xi1> to vector<1x9xi1>
    %119 = vector.broadcast %118 : vector<1x9xi1> to vector<8x9xi1>
    %120 = vector.shape_cast %115 : vector<8x1xf32> to vector<8x1xf32>
    %121 = vector.broadcast %120 : vector<8x1xf32> to vector<8x9xf32>
    %122 = vector.broadcast %cst_29 : f32 to vector<8x9xf32>
    %123 = arith.select %119, %121, %122 : vector<8x9xi1>, vector<8x9xf32>
    %124 = arith.addf %108, %123 : vector<8x9xf32>
    %125 = vector.extract_strided_slice %1 {offsets = [0, 7], sizes = [8, 1], strides = [1, 1]} : vector<8x9xi32> to vector<8x1xi32>
    %126 = vector.broadcast %125 : vector<8x1xi32> to vector<8x512xi32>
    %127 = arith.cmpi eq, %4, %126 : vector<8x512xi32>
    %cst_30 = arith.constant 0.000000e+00 : f32
    %128 = vector.broadcast %cst_30 : f32 to vector<8x512xf32>
    %129 = arith.select %127, %10, %128 : vector<8x512xi1>, vector<8x512xf32>
    %cst_31 = arith.constant dense<0.000000e+00> : vector<8xf32>
    %130 = vector.multi_reduction <add>, %129, %cst_31 [1] : vector<8x512xf32> to vector<8xf32>
    %131 = vector.shape_cast %130 : vector<8xf32> to vector<8x1xf32>
    %c7_i32 = arith.constant 7 : i32
    %132 = vector.broadcast %c7_i32 : i32 to vector<1x9xi32>
    %133 = arith.cmpi eq, %11, %132 : vector<1x9xi32>
    %cst_32 = arith.constant 0.000000e+00 : f32
    %134 = vector.shape_cast %133 : vector<1x9xi1> to vector<1x9xi1>
    %135 = vector.broadcast %134 : vector<1x9xi1> to vector<8x9xi1>
    %136 = vector.shape_cast %131 : vector<8x1xf32> to vector<8x1xf32>
    %137 = vector.broadcast %136 : vector<8x1xf32> to vector<8x9xf32>
    %138 = vector.broadcast %cst_32 : f32 to vector<8x9xf32>
    %139 = arith.select %135, %137, %138 : vector<8x9xi1>, vector<8x9xf32>
    %140 = arith.addf %124, %139 : vector<8x9xf32>
    %141 = vector.extract_strided_slice %1 {offsets = [0, 8], sizes = [8, 1], strides = [1, 1]} : vector<8x9xi32> to vector<8x1xi32>
    %142 = vector.broadcast %141 : vector<8x1xi32> to vector<8x512xi32>
    %143 = arith.cmpi eq, %4, %142 : vector<8x512xi32>
    %cst_33 = arith.constant 0.000000e+00 : f32
    %144 = vector.broadcast %cst_33 : f32 to vector<8x512xf32>
    %145 = arith.select %143, %10, %144 : vector<8x512xi1>, vector<8x512xf32>
    %cst_34 = arith.constant dense<0.000000e+00> : vector<8xf32>
    %146 = vector.multi_reduction <add>, %145, %cst_34 [1] : vector<8x512xf32> to vector<8xf32>
    %147 = vector.shape_cast %146 : vector<8xf32> to vector<8x1xf32>
    %c8_i32 = arith.constant 8 : i32
    %148 = vector.broadcast %c8_i32 : i32 to vector<1x9xi32>
    %149 = arith.cmpi eq, %11, %148 : vector<1x9xi32>
    %cst_35 = arith.constant 0.000000e+00 : f32
    %150 = vector.shape_cast %149 : vector<1x9xi1> to vector<1x9xi1>
    %151 = vector.broadcast %150 : vector<1x9xi1> to vector<8x9xi1>
    %152 = vector.shape_cast %147 : vector<8x1xf32> to vector<8x1xf32>
    %153 = vector.broadcast %152 : vector<8x1xf32> to vector<8x9xf32>
    %154 = vector.broadcast %cst_35 : f32 to vector<8x9xf32>
    %155 = arith.select %151, %153, %154 : vector<8x9xi1>, vector<8x9xf32>
    %156 = arith.addf %140, %155 : vector<8x9xf32>
    %c0_i32_36 = arith.constant 0 : i32
    %157 = vector.broadcast %c0_i32_36 : i32 to vector<1x9xi32>
    %158 = arith.cmpi eq, %11, %157 : vector<1x9xi32>
    %cst_37 = arith.constant -1.000000e+00 : f32
    %cst_38 = arith.constant 1.000000e+00 : f32
    %159 = vector.broadcast %cst_37 : f32 to vector<1x9xf32>
    %160 = vector.broadcast %cst_38 : f32 to vector<1x9xf32>
    %161 = arith.select %158, %159, %160 : vector<1x9xi1>, vector<1x9xf32>
    %cst_39 = arith.constant -1.000000e+01 : f32
    %cst_40 = arith.constant 1.000000e+01 : f32
    %162 = vector.broadcast %cst_39 : f32 to vector<8x9xf32>
    %163 = arith.maximumf %162, %156 : vector<8x9xf32>
    %164 = vector.broadcast %cst_40 : f32 to vector<8x9xf32>
    %165 = arith.minimumf %164, %163 : vector<8x9xf32>
    %166 = vector.broadcast %161 : vector<1x9xf32> to vector<8x9xf32>
    %167 = arith.mulf %165, %166 : vector<8x9xf32>
    %168 = math.exp %167 : vector<8x9xf32>
    %cst_41 = arith.constant 1.000000e+00 : f32
    %169 = vector.broadcast %cst_41 : f32 to vector<8x9xf32>
    %170 = arith.addf %169, %168 : vector<8x9xf32>
    %171 = math.log %170 : vector<8x9xf32>
    %cst_42 = arith.constant dense<0.000000e+00> : vector<8xf32>
    %172 = vector.multi_reduction <add>, %171, %cst_42 [1] : vector<8x9xf32> to vector<8xf32>
    %173 = vector.shape_cast %172 : vector<8xf32> to vector<8x1xf32>
    %c8_i32_43 = arith.constant 8 : i32
    %174 = arith.muli %arg0, %c8_i32_43 : i32
    %175 = tpu.iota {dimensions = array<i32: 0>} : vector<8x1xi32>
    %176 = vector.broadcast %174 : i32 to vector<8x1xi32>
    %177 = arith.addi %176, %175 : vector<8x1xi32>
    %c8_i32_44 = arith.constant 8 : i32
    %178 = vector.broadcast %c8_i32_44 : i32 to vector<8x1xi32>
    %179 = arith.cmpi slt, %177, %178 : vector<8x1xi32>
    %180 = arith.extui %179 : vector<8x1xi1> to vector<8x1xi32>
    %181 = arith.sitofp %180 : vector<8x1xi32> to vector<8x1xf32>
    %182 = arith.mulf %173, %181 : vector<8x1xf32>
    %183 = vector.shape_cast %182 : vector<8x1xf32> to vector<1x8x1xf32>
    %cst_45 = arith.constant dense<0.000000e+00> : vector<1xf32>
    %184 = vector.multi_reduction <add>, %183, %cst_45 [1, 2] : vector<1x8x1xf32> to vector<1xf32>
    %185 = vector.shape_cast %184 : vector<1xf32> to vector<1x1x1xf32>
    %186 = vector.extract %185[0, 0, 0] : f32 from vector<1x1x1xf32>
    %cst_46 = arith.constant 0.000000e+00 : f32
    %187 = vector.broadcast %cst_46 : f32 to vector<1x1x128xf32>
    %188 = vector.broadcast %186 : f32 to vector<1x1x128xf32>
    %189 = arith.addf %187, %188 : vector<1x1x128xf32>
    %c0_47 = arith.constant 0 : index
    %c0_48 = arith.constant 0 : index
    %c0_49 = arith.constant 0 : index
    %190 = vector.load %arg5[%c0_47, %c0_48, %c0_49] : memref<1x1x128xf32, #tpu.memory_space<vmem>>, vector<1x1x128xf32>
    tpu.vector_store %arg5[%c0_47, %c0_48, %c0_49], %189 {strides = array<i32>} : memref<1x1x128xf32, #tpu.memory_space<vmem>>, vector<1x1x128xf32>,
    return
  }
  func.func @transform_0(%arg0: i32) -> (i32, i32) {
    %c0_i32 = arith.constant 0 : i32
    %c0_i32_0 = arith.constant 0 : i32
    return %arg0, %c0_i32 : i32, i32
  }
  func.func @transform_1(%arg0: i32) -> (i32, i32) {
    %c0_i32 = arith.constant 0 : i32
    %c0_i32_0 = arith.constant 0 : i32
    return %arg0, %c0_i32 : i32, i32
  }
  func.func @transform_2(%arg0: i32) -> (i32, i32) {
    %c0_i32 = arith.constant 0 : i32
    %c0_i32_0 = arith.constant 0 : i32
    %c0_i32_1 = arith.constant 0 : i32
    return %c0_i32, %c0_i32_0 : i32, i32
  }
  func.func @transform_3(%arg0: i32) -> (i32, i32) {
    %c0_i32 = arith.constant 0 : i32
    %c0_i32_0 = arith.constant 0 : i32
    %c0_i32_1 = arith.constant 0 : i32
    return %c0_i32, %c0_i32_0 : i32, i32
  }
  func.func @transform_4(%arg0: i32) -> (i32, i32, i32) {
    %c0_i32 = arith.constant 0 : i32
    %c0_i32_0 = arith.constant 0 : i32
    %c0_i32_1 = arith.constant 0 : i32
    return %arg0, %c0_i32, %c0_i32_0 : i32, i32, i32
  }
}

</mosaic_0001>

<bundles_post_ra>
// kernel: tpu_custom_call.1
= control target key start
LH: loop header
LB: loop body
LE: loop exit
PB: predicated region body
PF: predicated region fallthrough
CT: control target
= control target key end

     0   :  { %9 = vsyncpa [#allocation3], 0  ;;  %s8106_s0 = inlined_call_operand.vmem [shape: s32[8,1], index: 0, kind: input, shape index: {}]   ;;  %s8107_s1 = inlined_call_operand.vmem [shape: s32[8,9], index: 1, kind: input, shape index: {}]   ;;  %s8108_s2 = inlined_call_operand.hbm [shape: f32[512,128], index: 2, kind: input, shape index: {}]   ;;  %s8109_s3 = inlined_call_operand.hbm [shape: f32[512,128], index: 3, kind: input, shape index: {}]   ;;  %s8110_s4 = inlined_call_operand.hbm [shape: f32[1,1,128], index: 4, kind: output, shape index: {}]  }
   0x1   :  { %10 = vsyncpa [#allocation6], 0 }
   0x2   :  { %11 = vsyncpa [#allocation4], 0  ;;  %s5609_s15 = smov [#allocation2]   ;;  %s5537_s19 = scalar_lea.hbm %s8108_s2, 8192 }
   0x3   :  { %s21_s16 = sshll.u32 %s5609_s15, 4  ;;  %p5538_p0 = scmp.ne.s32.totalorder %s8108_s2, %s5537_s19  ;;  %s22_s16 = int_to_ptr.vmem [resolvable:$true] %s21_s16 }
   0x4   :  { %p5541_p1 = scmp.lt.u32.totalorder %s5537_s19, %s8108_s2 }
   0x6   :  { %p5543_p2 = pnand %p5541_p1, %p5538_p0 }
   0x8   :  { %5546 = shalt.err (!%p5543_p2)
}
   0x9   :  { %s5547_s24 = scalar_lea.vmem %s22_s16, 8192  ;;  %p5552_p4 = scmp.lt.s32.totalorder %s22_s16, %s22_s16 }
   0xa   :  { %p5548_p3 = scmp.ne.s32.totalorder %s22_s16, %s5547_s24  ;;  %p5553_p5 = scmp.lt.s32.totalorder %s5547_s24, %s5547_s24 }
   0xc   :  { %p5554_p6 = por %p5553_p5, %p5552_p4 }
   0xe   :  { %p5555_p7 = pnand %p5554_p6, %p5548_p3 }
  0x10   :  { %5558 = shalt.err (!%p5555_p7)
}
  0x11   :  { %s5610_s25 = smov 128   ;;  %s5611_s26 = smov 8  }
  0x12   :  { %27 = dma.hbm_to_vmem [thread:$0]  %s8108_s2, 8192, %s22_s16, [#allocation3], %s5610_s25, %s5610_s25, %s5611_s26  }
  0x13   :  { %s5612_s29 = smov [#allocation5]   ;;  %s5559_s7 = scalar_lea.hbm %s8109_s3, 8192 }
  0x14   :  { %s33_s30 = sshll.u32 %s5612_s29, 4  ;;  %p5560_p8 = scmp.ne.s32.totalorder %s8109_s3, %s5559_s7  ;;  %s34_s30 = int_to_ptr.vmem [resolvable:$true] %s33_s30 }
  0x15   :  { %p5563_p9 = scmp.lt.u32.totalorder %s5559_s7, %s8109_s3 }
  0x17   :  { %p5565_p10 = pnand %p5563_p9, %p5560_p8 }
  0x19   :  { %5568 = shalt.err (!%p5565_p10)
}
  0x1a   :  { %s5569_s12 = scalar_lea.vmem %s34_s30, 8192  ;;  %p5574_p12 = scmp.lt.s32.totalorder %s34_s30, %s34_s30 }
  0x1b   :  { %p5570_p11 = scmp.ne.s32.totalorder %s34_s30, %s5569_s12  ;;  %p5575_p13 = scmp.lt.s32.totalorder %s5569_s12, %s5569_s12 }
  0x1d   :  { %p5576_p0 = por %p5575_p13, %p5574_p12 }
  0x1f   :  { %p5577_p1 = pnand %p5576_p0, %p5570_p11 }
  0x21   :  { %5580 = shalt.err (!%p5577_p1)
}
  0x22   :  { %39 = dma.hbm_to_vmem [thread:$0]  %s8109_s3, 8192, %s34_s30, [#allocation6], %s5610_s25, %s5610_s25, %s5611_s26  }
  0x23   :  { %5603 = dma.done.wait [#allocation3], 8192  }
  0x24   :  { %5604 = vsyncadd [#allocation3], 4294959104 }
  0x25   :  { %5605 = dma.done.wait [#allocation6], 8192  }
  0x26   :  { %5606 = vsyncadd [#allocation6], 4294959104  ;;  %v5613_v0 = vmov 0   ;;  %v46_v1 = vld [vmem:[%s8106_s0] sm:$0xff]  ;;  %v5680_v3 = vld [vmem:[#allocation2 + $0x80] sm:$0xff] }
  0x27   :  { %5522 = vset.pattern.permute.xlu0 %v5613_v0  ;;  %v47_v2 = vld [vmem:[%s8107_s1] sm:$0xff]  ;;  %v65_v4 = vld [vmem:[#allocation2 + $0x88] sm:$0xff]  ;;  %v245_v5 = vand.u32 4294901760, %v5680_v3  ;;  %v5683_v6 = vld [vmem:[#allocation2] sm:$0xff] }
  0x28   :  { %182 = vperm.xlu0 %5522, %v46_v1   ;;  %v5685_v7 = vld [vmem:[#allocation2 + $0x8] sm:$0xff]  ;;  %v248_v8 = vand.u32 4294901760, %v65_v4  ;;  %v197_v9 = vand.u32 4294901760, %v5683_v6  ;;  %v5689_v11 = vld [vmem:[#allocation2 + $0x90] sm:$0xff]  ;;  %v5691_v12 = vld [vmem:[#allocation2 + $0x98] sm:$0xff] }
  0x29   :  { %v200_v10 = vand.u32 4294901760, %v5685_v7  ;;  %v5693_v13 = vld [vmem:[#allocation2 + $0x10] sm:$0xff]  ;;  %v5696_v14 = vsub.f32 %v5680_v3, %v245_v5  ;;  %v251_v15 = vand.u32 4294901760, %v5689_v11  ;;  %v254_v16 = vand.u32 4294901760, %v5691_v12  ;;  %v5700_v17 = vld [vmem:[#allocation2 + $0x18] sm:$0xff]  ;;  %v5752_v39 = vld [vmem:[#allocation2 + $0xa0] sm:$0xff] }
  0x2a   :  { %v203_v18 = vand.u32 4294901760, %v5693_v13  ;;  %v5703_v19 = vsub.f32 %v65_v4, %v248_v8  ;;  %v5706_v20 = vsub.f32 %v5683_v6, %v197_v9  ;;  %v206_v22 = vand.u32 4294901760, %v5700_v17  ;;  %v5763_v44 = vld [vmem:[#allocation2 + $0xa8] sm:$0xff]  ;;  %v5768_v49 = vld [vmem:[#allocation2 + $0x20] sm:$0xff]  ;;  %v5774_v59 = vld [vmem:[#allocation2 + $0xb0] sm:$0xff] }
  0x2b   :  { %v5709_v21 = vsub.f32 %v5685_v7, %v200_v10  ;;  %v8131_v23 = vand.u32 4294901760, %v5696_v14  ;;  %v5716_v24 = vsub.f32 %v5689_v11, %v251_v15  ;;  %v5721_v25 = vsub.f32 %v5691_v12, %v254_v16  ;;  %v5771_v54 = vld [vmem:[#allocation2 + $0x28] sm:$0xff]  ;;  %v5776_v60 = vld [vmem:[#allocation2 + $0xb8] sm:$0xff]  ;;  %v5786_v1 = vld [vmem:[#allocation2 + $0x30] sm:$0xff] }
  0x2c   :  { %3631 = vperm.xlu0 %5522, %v47_v2   ;;  %v5726_v26 = vsub.f32 %v5693_v13, %v203_v18  ;;  %v8130_v27 = vand.u32 4294901760, %v5703_v19  ;;  %v8127_v28 = vand.u32 4294901760, %v5706_v20  ;;  %v5734_v30 = vsub.f32 %v5700_v17, %v206_v22 }
  0x2d   :  { %v8125_v29 = vand.u32 4294901760, %v5709_v21  ;;  %v424_v31 = vsub.f32 %v5696_v14, %v8131_v23  ;;  %v8124_v32 = vand.u32 4294901760, %v5716_v24  ;;  %v8123_v33 = vand.u32 4294901760, %v5721_v25  ;;  %v5999_v23 = vld [vmem:[#allocation2 + $0x60] sm:$0xff] }
  0x2e   :  { %v8122_v34 = vand.u32 4294901760, %v5726_v26  ;;  %v431_v35 = vsub.f32 %v5703_v19, %v8130_v27  ;;  %v312_v36 = vsub.f32 %v5706_v20, %v8127_v28  ;;  %v8116_v38 = vand.u32 4294901760, %v5734_v30 }
  0x2f   :  { %v319_v37 = vsub.f32 %v5709_v21, %v8125_v29  ;;  %v425_v40 = vand.u32 4294901760, %v424_v31  ;;  %v438_v41 = vsub.f32 %v5716_v24, %v8124_v32  ;;  %v445_v42 = vsub.f32 %v5721_v25, %v8123_v33 }
  0x30   :  { %v326_v43 = vsub.f32 %v5726_v26, %v8122_v34  ;;  %v432_v45 = vand.u32 4294901760, %v431_v35  ;;  %v313_v46 = vand.u32 4294901760, %v312_v36  ;;  %v333_v48 = vsub.f32 %v5734_v30, %v8116_v38  ;;  %v5805_v35 = vld [vmem:[#allocation2 + $0x38] sm:$0xff] }
  0x31   :  { %v320_v47 = vand.u32 4294901760, %v319_v37  ;;  %v439_v50 = vand.u32 4294901760, %v438_v41  ;;  %v446_v51 = vand.u32 4294901760, %v445_v42  ;;  %v257_v53 = vand.u32 4294901760, %v5752_v39 }
  0x32   :  { %v327_v52 = vand.u32 4294901760, %v326_v43  ;;  %v4748_v55 = vpack.c.bf16 %v432_v45, %v425_v40  ;;  %v334_v57 = vand.u32 4294901760, %v333_v48  ;;  %v260_v58 = vand.u32 4294901760, %v5763_v44 }
  0x33   :  { %v4750_v56 = vpack.c.bf16 %v320_v47, %v313_v46  ;;  %v4752_v61 = vpack.c.bf16 %v446_v51, %v439_v50  ;;  %v5781_v62 = vsub.f32 %v5752_v39, %v257_v53  ;;  %v5783_v63 = vpack.c.bf16 %v248_v8, %v245_v5 }
  0x34   :  { %v209_v0 = vand.u32 4294901760, %v5768_v49  ;;  %4749 = vmatprep.subr.bf16.mxu1 %v4748_v55  ;;  %v4754_v2 = vpack.c.bf16 %v334_v57, %v327_v52  ;;  %v5791_v3 = vsub.f32 %v5763_v44, %v260_v58  ;;  %v212_v4 = vand.u32 4294901760, %v5771_v54  ;;  %v5862_v57 = vld [vmem:[#allocation2 + $0xc8] sm:$0xff] }
  0x35   :  { %v5794_v6 = vpack.c.bf16 %v200_v10, %v197_v9  ;;  %4751 = vmatpush3.bf16.msra.mxu1 %v4750_v56  ;;  %v8114_v7 = vand.u32 4294901760, %v5781_v62  ;;  %4717 = vmatprep.subr.bf16.mxu0 %v5783_v63  ;;  %v263_v8 = vand.u32 4294901760, %v5774_v59  ;;  %v266_v31 = vand.u32 4294901760, %v5776_v60  ;;  %v5860_v56 = vld [vmem:[#allocation2 + $0xc0] sm:$0xff] }
  0x36   :  { %v5801_v5 = vsub.f32 %v5768_v49, %v209_v0  ;;  %4753 = vmatprep.subr.bf16.mxu1 %v4752_v61  ;;  %v8113_v9 = vand.u32 4294901760, %v5791_v3  ;;  %v5811_v10 = vsub.f32 %v5771_v54, %v212_v4  ;;  %v5818_v36 = vpack.c.bf16 %v254_v16, %v251_v15  ;;  %v5930_v49 = vld [vmem:[#allocation2 + $0x58] sm:$0xff] }
  0x37   :  { %4719 = vmatpush3.bf16.msra.mxu0 %v5794_v6  ;;  %v215_v37 = vand.u32 4294901760, %v5786_v1  ;;  %v452_v40 = vsub.f32 %v5781_v62, %v8114_v7  ;;  %v5828_v42 = vsub.f32 %v5774_v59, %v263_v8  ;;  %v5833_v11 = vsub.f32 %v5776_v60, %v266_v31  ;;  %v5880_v7 = vld [vmem:[#allocation2 + $0x40] sm:$0xff] }
  0x38   :  { %v8112_v41 = vand.u32 4294901760, %v5801_v5  ;;  %v459_v12 = vsub.f32 %v5791_v3, %v8113_v9  ;;  %v8111_v15 = vand.u32 4294901760, %v5811_v10  ;;  %4721 = vmatprep.subr.bf16.mxu0 %v5818_v36  ;;  %v218_v16 = vand.u32 4294901760, %v5805_v35 }
  0x39   :  { %v5844_v43 = vsub.f32 %v5786_v1, %v215_v37  ;;  %4755 = vmatpush3.bf16.msra.mxu1 %v4754_v2  ;;  %v453_v45 = vand.u32 4294901760, %v452_v40  ;;  %v8115_v47 = vand.u32 4294901760, %v5828_v42  ;;  %v8118_v48 = vand.u32 4294901760, %v5833_v11 }
  0x3a   :  { %v340_v46 = vsub.f32 %v5801_v5, %v8112_v41  ;;  %v460_v50 = vand.u32 4294901760, %v459_v12  ;;  %v347_v51 = vsub.f32 %v5811_v10, %v8111_v15  ;;  %v5858_v55 = vsub.f32 %v5805_v35, %v218_v16 }
  0x3b   :  { %v8117_v52 = vand.u32 4294901760, %v5844_v43  ;;  %v466_v2 = vsub.f32 %v5828_v42, %v8115_v47  ;;  %v473_v40 = vsub.f32 %v5833_v11, %v8118_v48  ;;  %v5874_v12 = vpack.c.bf16 %v206_v22, %v203_v18  ;;  %v5885_v18 = vld [vmem:[#allocation2 + $0x48] sm:$0xff]  ;;  %v5887_v22 = vld [vmem:[#allocation2 + $0xd0] sm:$0xff] }
  0x3c   :  { %v341_v61 = vand.u32 4294901760, %v340_v46  ;;  %v4756_v15 = vpack.c.bf16 %v460_v50, %v453_v45  ;;  %v348_v41 = vand.u32 4294901760, %v347_v51  ;;  %v8119_v9 = vand.u32 4294901760, %v5858_v55 }
  0x3d   :  { %v354_v46 = vsub.f32 %v5844_v43, %v8117_v52  ;;  %v467_v47 = vand.u32 4294901760, %v466_v2  ;;  %v474_v38 = vand.u32 4294901760, %v473_v40  ;;  %4723 = vmatpush3.bf16.msra.mxu0 %v5874_v12  ;;  %v269_v13 = vand.u32 4294901760, %v5860_v56  ;;  %v5898_v40 = vld [vmem:[#allocation2 + $0xd8] sm:$0xff] }
  0x3e   :  { %v272_v17 = vand.u32 4294901760, %v5862_v57  ;;  %4757 = vmatprep.subr.bf16.mxu1 %v4756_v15  ;;  %v4758_v45 = vpack.c.bf16 %v348_v41, %v341_v61  ;;  %v361_v51 = vsub.f32 %v5858_v55, %v8119_v9  ;;  %v5896_v2 = vpack.c.bf16 %v260_v58, %v257_v53 }
  0x3f   :  { %v355_v50 = vand.u32 4294901760, %v354_v46  ;;  %v4760_v52 = vpack.c.bf16 %v474_v38, %v467_v47  ;;  %v5903_v48 = vsub.f32 %v5860_v56, %v269_v13  ;;  %v221_v15 = vand.u32 4294901760, %v5880_v7 }
  0x40   :  { %v5908_v41 = vsub.f32 %v5862_v57, %v272_v17  ;;  %4759 = vmatpush3.bf16.msra.mxu1 %v4758_v45  ;;  %v362_v39 = vand.u32 4294901760, %v361_v51  ;;  %4725 = vmatprep.subr.bf16.mxu0 %v5896_v2  ;;  %v224_v44 = vand.u32 4294901760, %v5885_v18  ;;  %v5917_v38 = vpack.c.bf16 %v212_v4, %v209_v0  ;;  %v5928_v45 = vld [vmem:[#allocation2 + $0x50] sm:$0xff] }
  0x41   :  { %v8135_v53 = vand.u32 4294901760, %v5887_v22  ;;  %4761 = vmatprep.subr.bf16.mxu1 %v4760_v52  ;;  %v8120_v58 = vand.u32 4294901760, %v5903_v48  ;;  %v5925_v61 = vsub.f32 %v5880_v7, %v221_v15  ;;  %v8134_v46 = vand.u32 4294901760, %v5898_v40 }
  0x42   :  { %v8121_v47 = vand.u32 4294901760, %v5908_v41  ;;  %v4762_v54 = vpack.c.bf16 %v362_v39, %v355_v50  ;;  %v5935_v0 = vsub.f32 %v5885_v18, %v224_v44  ;;  %4727 = vmatpush3.bf16.msra.mxu0 %v5917_v38  ;;  %v5947_v52 = vpack.c.bf16 %v266_v31, %v263_v8 }
  0x43   :  { %v5941_v4 = vsub.f32 %v5887_v22, %v8135_v53  ;;  %v480_v50 = vsub.f32 %v5903_v48, %v8120_v58  ;;  %v8126_v39 = vand.u32 4294901760, %v5925_v61  ;;  %v5959_v9 = vsub.f32 %v5898_v40, %v8134_v46 }
  0x44   :  { %v487_v51 = vsub.f32 %v5908_v41, %v8121_v47  ;;  %4763 = vmatpush3.bf16.msra.mxu1 %v4762_v54  ;;  %v8128_v59 = vand.u32 4294901760, %v5935_v0  ;;  %4729 = vmatprep.subr.bf16.mxu0 %v5947_v52  ;;  %v8133_v8 = vand.u32 4294901760, %v5928_v45  ;;  %v8132_v31 = vand.u32 4294901760, %v5930_v49 }
  0x45   :  { %v8129_v60 = vand.u32 4294901760, %v5941_v4  ;;  %v481_v58 = vand.u32 4294901760, %v480_v50  ;;  %v368_v34 = vsub.f32 %v5925_v61, %v8126_v39  ;;  %v8136_v33 = vand.u32 4294901760, %v5959_v9  ;;  %v5988_v39 = vld [vmem:[#allocation2 + $0xe8] sm:$0xff] }
  0x46   :  { %v488_v47 = vand.u32 4294901760, %v487_v51  ;;  %v375_v54 = vsub.f32 %v5935_v0, %v8128_v59  ;;  %v5979_v29 = vsub.f32 %v5928_v45, %v8133_v8  ;;  %v5984_v50 = vsub.f32 %v5930_v49, %v8132_v31  ;;  %v5986_v51 = vld [vmem:[#allocation2 + $0xe0] sm:$0xff] }
  0x47   :  { %v494_v32 = vsub.f32 %v5941_v4, %v8129_v60  ;;  %v369_v59 = vand.u32 4294901760, %v368_v34  ;;  %v501_v60 = vsub.f32 %v5959_v9, %v8136_v33  ;;  %v5997_v27 = vpack.c.bf16 %v218_v16, %v215_v37 }
  0x48   :  { %v4764_v28 = vpack.c.bf16 %v488_v47, %v481_v58  ;;  %v376_v31 = vand.u32 4294901760, %v375_v54  ;;  %v8139_v46 = vand.u32 4294901760, %v5979_v29  ;;  %v8137_v53 = vand.u32 4294901760, %v5984_v50  ;;  %v6003_v58 = vld [vmem:[#allocation2 + $0x68] sm:$0xff] }
  0x49   :  { %8414 = vst [vmem:[#allocation11_spill] sm:$0xff] %v5997_v27  ;;  %v495_v8 = vand.u32 4294901760, %v494_v32  ;;  %v502_v34 = vand.u32 4294901760, %v501_v60  ;;  %4731 = vmatpush3.bf16.msra.mxu0 %v5997_v27  ;;  %v281_v1 = vand.u32 4294901760, %v5986_v51  ;;  %v284_v35 = vand.u32 4294901760, %v5988_v39  ;;  %v78_v60 = vld [vmem:[#allocation2 + $0xf0] sm:$0xff] }
  0x4a   :  { %4765 = vmatprep.subr.bf16.mxu1 %v4764_v28  ;;  %v6012_v37 = vpack.c.bf16 %v272_v17, %v269_v13  ;;  %v4766_v32 = vpack.c.bf16 %v376_v31, %v369_v59  ;;  %v382_v16 = vsub.f32 %v5979_v29, %v8139_v46  ;;  %v389_v28 = vsub.f32 %v5984_v50, %v8137_v53  ;;  %v79_v13 = vld [vmem:[#allocation2 + $0xf8] sm:$0xff] }
  0x4b   :  { %v233_v47 = vand.u32 4294901760, %v5999_v23  ;;  %v4768_v54 = vpack.c.bf16 %v502_v34, %v495_v8  ;;  %v6022_v33 = vsub.f32 %v5986_v51, %v281_v1  ;;  %v6025_v56 = vsub.f32 %v5988_v39, %v284_v35 }
  0x4c   :  { %8415 = vst [vmem:[#allocation12_spill] sm:$0xff] %v6012_v37  ;;  %4733 = vmatprep.subr.bf16.mxu0 %v6012_v37  ;;  %v236_v57 = vand.u32 4294901760, %v6003_v58  ;;  %4767 = vmatpush3.bf16.msra.mxu1 %v4766_v32  ;;  %v383_v17 = vand.u32 4294901760, %v382_v16  ;;  %v390_v59 = vand.u32 4294901760, %v389_v28  ;;  %v6036_v8 = vpack.c.bf16 %v224_v44, %v221_v15  ;;  %v62_v16 = vld [vmem:[#allocation2 + $0x70] sm:$0xff]  ;;  %v63_v28 = vld [vmem:[#allocation2 + $0x78] sm:$0xff] }
  0x4d   :  { %v6030_v31 = vsub.f32 %v5999_v23, %v233_v47  ;;  %4769 = vmatprep.subr.bf16.mxu1 %v4768_v54  ;;  %v8138_v39 = vand.u32 4294901760, %v6022_v33  ;;  %v8140_v51 = vand.u32 4294901760, %v6025_v56  ;;  %v287_v32 = vand.u32 4294901760, %v78_v60 }
  0x4e   :  { %8416 = vst [vmem:[#allocation13_spill] sm:$0xff] %v6036_v8  ;;  %v6041_v34 = vsub.f32 %v6003_v58, %v236_v57  ;;  %v4770_v53 = vpack.c.bf16 %v390_v59, %v383_v17  ;;  %4735 = vmatpush3.bf16.msra.mxu0 %v6036_v8  ;;  %v290_v7 = vand.u32 4294901760, %v79_v13  ;;  %v8417_v18 = vand.u32 4294901760, %v5887_v22 }
  0x4f   :  { %v8145_v23 = vand.u32 4294901760, %v6030_v31  ;;  %v8418_v15 = vand.u32 4294901760, %v5898_v40  ;;  %v508_v58 = vsub.f32 %v6022_v33, %v8138_v39  ;;  %v515_v54 = vsub.f32 %v6025_v56, %v8140_v51 }
  0x50   :  { %v8150_v17 = vand.u32 4294901760, %v6041_v34  ;;  %v6058_v59 = vsub.f32 %v78_v60, %v287_v32  ;;  %4771 = vmatpush3.bf16.msra.mxu1 %v4770_v53  ;;  %v6063_v40 = vsub.f32 %v79_v13, %v290_v7 }
  0x51   :  { %v6049_v44 = vpack.c.bf16 %v8418_v15, %v8417_v18  ;;  %v396_v22 = vsub.f32 %v6030_v31, %v8145_v23  ;;  %v239_v18 = vand.u32 4294901760, %v62_v16  ;;  %v242_v15 = vand.u32 4294901760, %v63_v28 }
  0x52   :  { %v509_v39 = vand.u32 4294901760, %v508_v58  ;;  %v516_v46 = vand.u32 4294901760, %v515_v54  ;;  %v403_v51 = vsub.f32 %v6041_v34, %v8150_v17  ;;  %v8152_v60 = vand.u32 4294901760, %v6058_v59 }
  0x53   :  { %8419 = vst [vmem:[#allocation14_spill] sm:$0xff] %v6049_v44  ;;  %4737 = vmatprep.subr.bf16.mxu0 %v6049_v44  ;;  %v397_v8 = vand.u32 4294901760, %v396_v22  ;;  %v8151_v53 = vand.u32 4294901760, %v6063_v40  ;;  %v6071_v37 = vsub.f32 %v62_v16, %v239_v18  ;;  %v6073_v23 = vsub.f32 %v63_v28, %v242_v15 }
  0x54   :  { %v4772_v13 = vpack.c.bf16 %v516_v46, %v509_v39  ;;  %v404_v27 = vand.u32 4294901760, %v403_v51  ;;  %v522_v58 = vsub.f32 %v6058_v59, %v8152_v60  ;;  %v8420_v54 = vand.u32 4294901760, %v5928_v45 }
  0x55   :  { %v8421_v44 = vand.u32 4294901760, %v5930_v49  ;;  %v529_v22 = vsub.f32 %v6063_v40, %v8151_v53  ;;  %v409_v16 = vand.u32 4294901760, %v6071_v37  ;;  %v416_v28 = vand.u32 4294901760, %v6073_v23 }
  0x56   :  { %v6089_v46 = vpack.c.bf16 %v284_v35, %v281_v1  ;;  %4773 = vmatprep.subr.bf16.mxu1 %v4772_v13  ;;  %v4774_v39 = vpack.c.bf16 %v404_v27, %v397_v8  ;;  %v523_v51 = vand.u32 4294901760, %v522_v58  ;;  %v6092_v45 = vpack.c.bf16 %v236_v57, %v233_v47 }
  0x57   :  { %v6082_v17 = vpack.c.bf16 %v8421_v44, %v8420_v54  ;;  %v6094_v49 = vpack.c.bf16 %v290_v7, %v287_v32  ;;  %v530_v44 = vand.u32 4294901760, %v529_v22  ;;  %v410_v54 = vsub.f32 %v6071_v37, %v409_v16 }
  0x58   :  { %v417_v53 = vsub.f32 %v6073_v23, %v416_v28  ;;  %v6099_v60 = vpack.c.bf16 %v242_v15, %v239_v18  ;;  %4775 = vmatpush3.bf16.msra.mxu1 %v4774_v39  ;;  %v4780_v27 = vpack.c.bf16 %v5703_v19, %v5696_v14  ;;  %v8423_v39 = vand.u32 4294901760, %v5703_v19 }
  0x59   :  { %4739 = vmatpush3.bf16.msra.mxu0 %v6082_v17  ;;  %v4776_v57 = vpack.c.bf16 %v530_v44, %v523_v51  ;;  %v411_v8 = vand.u32 4294901760, %v410_v54  ;;  %v8424_v51 = vand.u32 4294901760, %v5706_v20  ;;  %v8425_v44 = vand.u32 4294901760, %v5709_v21 }
  0x5a   :  { %4741 = vmatprep.subr.bf16.mxu0 %v6089_v46  ;;  %v418_v32 = vand.u32 4294901760, %v417_v53  ;;  %v8426_v54 = vand.u32 4294901760, %v5716_v24  ;;  %v8429_v19 = vand.u32 4294901760, %v5734_v30  ;;  %v8434_v13 = vand.u32 4294901760, %v5828_v42 }
  0x5b   :  { %4777 = vmatprep.subr.bf16.mxu1 %v4776_v57  ;;  %v6145_v58 = vpack.c.bf16 %v8425_v44, %v8424_v51  ;;  %v8427_v57 = vand.u32 4294901760, %v5721_v25  ;;  %v8431_v51 = vand.u32 4294901760, %v5791_v3  ;;  %v8435_v15 = vand.u32 4294901760, %v5833_v11 }
  0x5c   :  { %v4778_v22 = vpack.c.bf16 %v418_v32, %v411_v8  ;;  %v8422_v32 = vand.u32 4294901760, %v5696_v14  ;;  %v8428_v14 = vand.u32 4294901760, %v5726_v26  ;;  %v8432_v8 = vand.u32 4294901760, %v5801_v5 }
  0x5d   :  { %4743 = vmatpush3.bf16.msra.mxu0 %v6092_v45  ;;  %v6177_v18 = vpack.c.bf16 %v8435_v15, %v8434_v13  ;;  %v8444_v15 = vand.u32 4294901760, %v5941_v4  ;;  %v8445_v13 = vand.u32 4294901760, %v5959_v9 }
  0x5e   :  { %4745 = vmatprep.subr.bf16.mxu0 %v6094_v49  ;;  %4779 = vmatpush3.bf16.msra.mxu1 %v4778_v22  ;;  %v6139_v53 = vpack.c.bf16 %v8423_v39, %v8422_v32  ;;  %v6151_v22 = vpack.c.bf16 %v8427_v57, %v8426_v54  ;;  %v6159_v39 = vpack.c.bf16 %v8429_v19, %v8428_v14  ;;  %v8430_v32 = vand.u32 4294901760, %v5781_v62 }
  0x5f   :  { %4813 = vmatprep.subr.bf16.mxu1 %v5783_v63  ;;  %v8433_v54 = vand.u32 4294901760, %v5811_v10  ;;  %v8436_v14 = vand.u32 4294901760, %v5844_v43  ;;  %v8437_v19 = vand.u32 4294901760, %v5858_v55  ;;  %v6201_v35 = vpack.c.bf16 %v8445_v13, %v8444_v15 }
  0x60   :  { %v6165_v44 = vpack.c.bf16 %v8431_v51, %v8430_v32  ;;  %v8438_v32 = vand.u32 4294901760, %v5903_v48  ;;  %v8439_v51 = vand.u32 4294901760, %v5908_v41  ;;  %v8454_v15 = vand.u32 4294901760, %v6058_v59 }
  0x61   :  { %4747 = vmatpush3.bf16.msra.mxu0 %v6099_v60  ;;  %v6171_v57 = vpack.c.bf16 %v8433_v54, %v8432_v8  ;;  %v6183_v7 = vpack.c.bf16 %v8437_v19, %v8436_v14  ;;  %v8442_v8 = vand.u32 4294901760, %v5935_v0  ;;  %8446 = vst [vmem:[#allocation17_spill] sm:$0xff] %v6201_v35  ;;  %v8447_v14 = vand.u32 4294901760, %v5979_v29 }
  0x62   :  { %4781 = vmatprep.subr.bf16.mxu0 %v4780_v27  ;;  %v6189_v47 = vpack.c.bf16 %v8439_v51, %v8438_v32  ;;  %v8441_v27 = vand.u32 4294901760, %v5925_v61  ;;  %v8448_v19 = vand.u32 4294901760, %v5984_v50  ;;  %v8450_v32 = vand.u32 4294901760, %v6022_v33 }
  0x63   :  { %v8451_v51 = vand.u32 4294901760, %v6025_v56  ;;  %v8455_v13 = vand.u32 4294901760, %v6063_v40 }
  0x64   :  { %8440 = vst [vmem:[#allocation15_spill] sm:$0xff] %v6189_v47  ;;  %v6195_v54 = vpack.c.bf16 %v8442_v8, %v8441_v27  ;;  %v6207_v1 = vpack.c.bf16 %v8448_v19, %v8447_v14  ;;  %v8452_v27 = vand.u32 4294901760, %v6030_v31  ;;  %v8453_v8 = vand.u32 4294901760, %v6041_v34 }
  0x65   :  { %v6213_v47 = vpack.c.bf16 %v8451_v51, %v8450_v32  ;;  %v6225_v35 = vpack.c.bf16 %v8455_v13, %v8454_v15  ;;  %v6227_v14 = vpack.c.bf16 %v416_v28, %v409_v16  ;;  %v176_v19 = vlaneseq }
  0x66   :  { %8443 = vst [vmem:[#allocation16_spill] sm:$0xff] %v6195_v54  ;;  %8449 = vst [vmem:[#allocation18_spill] sm:$0xff] %v6207_v1  ;;  %v6219_v54 = vpack.c.bf16 %v8453_v8, %v8452_v27  ;;  %v8153_v27 = vmov 0.0   ;;  %v8155_v28 = vmov 1.0  }
  0x67   :  { %8456 = vst [vmem:[#allocation19_spill] sm:$0xff] %v6225_v35  ;;  %8457 = vst [vmem:[#allocation20_spill] sm:$0xff] %v6227_v14  ;;  %v6229_v1 = vand.u32 127, %v176_v19 }
  0x69   :  { %8458 = vst [vmem:[#allocation21_spill] sm:$0xff] %v6229_v1  ;;  %v6232_v32 = vadd.s32 128, %v6229_v1 }
  0x6b   :  { %8459 = vst [vmem:[#allocation22_spill] sm:$0xff] %v6232_v32 }
  0xa7   :  { %v6234_v51 = vpop.permute.xlu0 %182 }
  0xa8   :  { %vm185_vm0 = vcmp.eq.s32.totalorder %v6234_v51, %v6232_v32  ;;  %vm184_vm1 = vcmp.eq.s32.totalorder %v6234_v51, %v6229_v1 }
  0xa9   :  { %v3872_v16 = vsel %vm185_vm0, 1.0, %v8153_v27  ;;  %3875 = vmatprep.mubr.msk.f32.mxu1 %vm185_vm0, %v8155_v28  ;;  %v3871_v8 = vsel %vm184_vm1, 1.0, %v8153_v27 }
  0xaa   :  { %v293_v15 = vsub.f32 %v3872_v16, %v3872_v16  ;;  %v6252_v13 = vsub.f32 %v3871_v8, %v3871_v8  ;;  %3876 = vmatmul.mubr.msk.f32.vlgmr.msra.gmra.mrb[0].mxu1 %vm184_vm1, %v8155_v28  ;;  %v8460_v28 = vpack.c.bf16 %v5709_v21, %v5706_v20  ;;  %v8466_v20 = vld [vmem:[#allocation13_spill] sm:$0xff]  ;;  %v8467_v21 = vpack.c.bf16 %v5811_v10, %v5801_v5 }
  0xab   :  { %4815 = vmatpush3.bf16.msra.mxu1 %v5794_v6  ;;  %v8474_v5 = vpack.c.bf16 %v5858_v55, %v5844_v43 }
  0xac   :  { %4817 = vmatprep.subr.bf16.mxu1 %v5818_v36  ;;  %v294_v19 = vand.u32 4294901760, %v293_v15  ;;  %v8157_v14 = vand.u32 4294901760, %v6252_v13 }
  0xae   :  { %777 = vmatprep.mubr.f32.mxu1 %v294_v19  ;;  %v295_v35 = vsub.f32 %v293_v15, %v294_v19  ;;  %v301_v16 = vsub.f32 %v6252_v13, %v8157_v14  ;;  %v8461_v19 = vpack.c.bf16 %v5721_v25, %v5716_v24  ;;  %v8462_v14 = vld [vmem:[#allocation11_spill] sm:$0xff]  ;;  %v8468_v24 = vld [vmem:[#allocation14_spill] sm:$0xff]  ;;  %v8469_v25 = vpack.c.bf16 %v5833_v11, %v5828_v42  ;;  %v6305_v11 = vld [vmem:[#allocation2 + $0x170] sm:$0xff] }
  0xaf   :  { %4819 = vmatpush3.bf16.msra.mxu1 %v5874_v12  ;;  %8475 = vst [vmem:[#allocation23_spill] sm:$0xff] %v6305_v11  ;;  %v8162_v43 = vand.u32 4294901760, %v6305_v11 }
  0xb0   :  { %4821 = vmatprep.subr.bf16.mxu1 %v5896_v2  ;;  %v296_v8 = vand.u32 4294901760, %v295_v35  ;;  %v302_v27 = vand.u32 4294901760, %v301_v16  ;;  %v8463_v35 = vpack.c.bf16 %v5734_v30, %v5726_v26  ;;  %v8464_v16 = vld [vmem:[#allocation12_spill] sm:$0xff]  ;;  %v6290_v26 = vld [vmem:[#allocation2 + $0x160] sm:$0xff] }
  0xb1   :  { %8470 = vst [vmem:[#allocation11_spill] sm:$0xff] %v6290_v26  ;;  %v6292_v30 = vld [vmem:[#allocation2 + $0x168] sm:$0xff]  ;;  %v8161_v10 = vand.u32 4294901760, %v6290_v26 }
  0xb2   :  { %297 = vmatprep.mubr.f32.mxu0 %v296_v8  ;;  %8471 = vst [vmem:[#allocation12_spill] sm:$0xff] %v6292_v30  ;;  %v8160_v42 = vand.u32 4294901760, %v6292_v30 }
  0xb3   :  { %4823 = vmatpush3.bf16.msra.mxu1 %v5917_v38  ;;  %303 = vmatmul.mubr.f32.vlgmr.msra.gmra.mrb[0].mxu0 %v302_v27  ;;  %v8465_v27 = vpack.c.bf16 %v5791_v3, %v5781_v62  ;;  %v6295_v62 = vld [vmem:[#allocation2 + $0x1f0] sm:$0xff]  ;;  %v6297_v3 = vld [vmem:[#allocation2 + $0x1f8] sm:$0xff] }
  0xb4   :  { %4783 = vmatpush3.bf16.msra.mxu0 %v8460_v28  ;;  %670 = vmatprep.mubr.f32.mxu0 %v293_v15  ;;  %8472 = vst [vmem:[#allocation13_spill] sm:$0xff] %v6295_v62  ;;  %8473 = vst [vmem:[#allocation14_spill] sm:$0xff] %v6297_v3  ;;  %v6307_v28 = vld [vmem:[#allocation2 + $0x178] sm:$0xff]  ;;  %v8477_v15 = vpack.c.bf16 %v5908_v41, %v5903_v48  ;;  %v8158_v8 = vand.u32 4294901760, %v6295_v62  ;;  %v6324_v48 = vsub.f32 %v6290_v26, %v8161_v10 }
  0xb5   :  { %4825 = vmatprep.subr.bf16.mxu1 %v5947_v52  ;;  %4785 = vmatprep.subr.bf16.mxu0 %v8461_v19  ;;  %8476 = vst [vmem:[#allocation24_spill] sm:$0xff] %v6307_v28  ;;  %v8159_v19 = vand.u32 4294901760, %v6297_v3  ;;  %v8164_v55 = vand.u32 4294901760, %v6307_v28  ;;  %v6329_v41 = vsub.f32 %v6292_v30, %v8160_v42  ;;  %v6372_v42 = vld [vmem:[#allocation2 + $0x110] sm:$0xff]  ;;  %v6374_v10 = vld [vmem:[#allocation2 + $0x118] sm:$0xff] }
  0xb7   :  { %4827 = vmatpush3.bf16.msra.mxu1 %v8462_v14 }
  0xb8   :  { %4787 = vmatpush3.bf16.msra.mxu0 %v8463_v35  ;;  %4829 = vmatprep.subr.bf16.mxu1 %v8464_v16  ;;  %v8478_v35 = vpack.c.bf16 %v5935_v0, %v5925_v61  ;;  %v6336_v61 = vld [vmem:[#allocation2 + $0x188] sm:$0xff]  ;;  %v6338_v0 = vld [vmem:[#allocation2 + $0x100] sm:$0xff] }
  0xb9   :  { %4789 = vmatprep.subr.bf16.mxu0 %v8465_v27  ;;  %v8479_v27 = vpack.c.bf16 %v5959_v9, %v5941_v4  ;;  %v6352_v9 = vsub.f32 %v6297_v3, %v8159_v19  ;;  %v6355_v4 = vld [vmem:[#allocation2 + $0x198] sm:$0xff] }
  0xbb   :  { %4831 = vmatpush3.bf16.msra.mxu1 %v8466_v20 }
  0xbc   :  { %4791 = vmatpush3.bf16.msra.mxu0 %v8467_v21  ;;  %4833 = vmatprep.subr.bf16.mxu1 %v8468_v24  ;;  %v6334_v21 = vld [vmem:[#allocation2 + $0x180] sm:$0xff] }
  0xbd   :  { %4793 = vmatprep.subr.bf16.mxu0 %v8469_v25  ;;  %v6340_v25 = vld [vmem:[#allocation2 + $0x108] sm:$0xff]  ;;  %v8490_v19 = vand.u32 4294901760, %v6334_v21 }
  0xbf   :  { %4835 = vmatpush3.bf16.msra.mxu1 %v6082_v17 }
  0xc0   :  { %4795 = vmatpush3.bf16.msra.mxu0 %v8474_v5  ;;  %4837 = vmatprep.subr.bf16.mxu1 %v6089_v46  ;;  %v6342_v5 = vld [vmem:[#allocation2 + $0x190] sm:$0xff] }
  0xc1   :  { %4797 = vmatprep.subr.bf16.mxu0 %v8477_v15  ;;  %v6347_v15 = vsub.f32 %v6295_v62, %v8158_v8  ;;  %v8480_v8 = vpack.c.bf16 %v5984_v50, %v5979_v29  ;;  %v8559_v62 = vld [vmem:[#allocation19_spill] sm:$0xff] }
  0xc3   :  { %4839 = vmatpush3.bf16.msra.mxu1 %v6092_v45 }
  0xc4   :  { %4799 = vmatpush3.bf16.msra.mxu0 %v8478_v35  ;;  %4841 = vmatprep.subr.bf16.mxu1 %v6094_v49  ;;  %v6360_v35 = vsub.f32 %v6305_v11, %v8162_v43  ;;  %v8169_v43 = vand.u32 4294901760, %v6347_v15  ;;  %v8166_v11 = vand.u32 4294901760, %v6352_v9 }
  0xc5   :  { %4801 = vmatprep.subr.bf16.mxu0 %v8479_v27  ;;  %v6365_v27 = vsub.f32 %v6307_v28, %v8164_v55  ;;  %v8481_v55 = vpack.c.bf16 %v6025_v56, %v6022_v33  ;;  %v8483_v33 = vand.u32 4294901760, %v6324_v48  ;;  %v8484_v56 = vand.u32 4294901760, %v6329_v41 }
  0xc6   :  { %v8168_v50 = vand.u32 4294901760, %v6360_v35  ;;  %v8487_v28 = vpack.c.bf16 %v6041_v34, %v6030_v31  ;;  %v8492_v31 = vand.u32 4294901760, %v6336_v61  ;;  %v8494_v34 = vand.u32 4294901760, %v6338_v0 }
  0xc7   :  { %4843 = vmatpush3.bf16.msra.mxu1 %v6099_v60  ;;  %v8167_v29 = vand.u32 4294901760, %v6365_v27 }
  0xc8   :  { %4803 = vmatpush3.bf16.msra.mxu0 %v8480_v8  ;;  %4877 = vmatprep.subr.bf16.mxu1 %v5783_v63  ;;  %v8482_v8 = vand.u32 4294901760, %v6252_v13  ;;  %v8486_v63 = vmov 1.0  }
  0xc9   :  { %4805 = vmatprep.subr.bf16.mxu0 %v8481_v55  ;;  %v6394_v55 = vpack.c.bf16 %v8484_v56, %v8483_v33  ;;  %v6415_v33 = vpack.c.bf16 %v8166_v11, %v8169_v43  ;;  %v8489_v56 = vpack.c.bf16 %v6063_v40, %v6058_v59  ;;  %v6439_v59 = vpack.c.bf16 %v8167_v29, %v8168_v50 }
  0xca   :  { %781 = vmatmul.mubr.f32.vlgmr.msra.gmra.mrb[2].mxu1 %v8482_v8  ;;  %v6423_v8 = vsub.f32 %v6334_v21, %v8490_v19  ;;  %v8497_v40 = vand.u32 4294901760, %v6340_v25  ;;  %v8501_v11 = vand.u32 4294901760, %v6355_v4  ;;  %v8503_v29 = vand.u32 4294901760, %v6372_v42 }
  0xcb   :  { %8485 = vst [vmem:[#allocation25_spill] sm:$0xff] %v6394_v55  ;;  %4879 = vmatpush3.bf16.msra.mxu1 %v5794_v6  ;;  %3879 = vmatprep.mubr.msk.f32.mxu1 %vm185_vm0, %v8486_v63  ;;  %v6409_v6 = vld [vmem:[#allocation2 + $0x1a0] sm:$0xff]  ;;  %8488 = vst [vmem:[#allocation26_spill] sm:$0xff] %v6415_v33 }
  0xcc   :  { %4807 = vmatpush3.bf16.msra.mxu0 %v8487_v28  ;;  %4881 = vmatprep.subr.bf16.mxu1 %v5818_v36  ;;  %8491 = vst [vmem:[#allocation27_spill] sm:$0xff] %v6423_v8  ;;  %v6428_v36 = vsub.f32 %v6336_v61, %v8492_v31  ;;  %v6433_v28 = vsub.f32 %v6338_v0, %v8494_v34  ;;  %8496 = vst [vmem:[#allocation30_spill] sm:$0xff] %v6439_v59  ;;  %v8508_v33 = vand.u32 4294901760, %v6409_v6 }
  0xcd   :  { %4809 = vmatprep.subr.bf16.mxu0 %v8489_v56  ;;  %v6444_v19 = vsub.f32 %v6340_v25, %v8497_v40  ;;  %v8499_v56 = vand.u32 4294901760, %v6342_v5  ;;  %v6454_v34 = vsub.f32 %v6355_v4, %v8501_v11  ;;  %v6460_v50 = vsub.f32 %v6372_v42, %v8503_v29  ;;  %v6472_v11 = vld [vmem:[#allocation2 + $0x1a8] sm:$0xff] }
  0xce   :  { %8493 = vst [vmem:[#allocation28_spill] sm:$0xff] %v6428_v36  ;;  %8495 = vst [vmem:[#allocation29_spill] sm:$0xff] %v6433_v28  ;;  %v8505_v40 = vand.u32 4294901760, %v6374_v10  ;;  %v8507_v59 = vpack.c.bf16 %v6073_v23, %v6071_v37  ;;  %v8171_v29 = vand.u32 4294901760, %v6428_v36  ;;  %v6483_v23 = vld [vmem:[#allocation2 + $0x128] sm:$0xff]  ;;  %v8513_v32 = vand.u32 4294901760, %v6472_v11 }
  0xcf   :  { %8498 = vst [vmem:[#allocation31_spill] sm:$0xff] %v6444_v19  ;;  %v6449_v31 = vsub.f32 %v6342_v5, %v8499_v56  ;;  %8502 = vst [vmem:[#allocation33_spill] sm:$0xff] %v6454_v34  ;;  %4883 = vmatpush3.bf16.msra.mxu1 %v5874_v12  ;;  %v8170_v12 = vand.u32 4294901760, %v6423_v8  ;;  %v8175_v37 = vand.u32 4294901760, %v6454_v34  ;;  %v6493_v56 = vsub.f32 %v6409_v6, %v8508_v33 }
  0xd0   :  { %8504 = vst [vmem:[#allocation34_spill] sm:$0xff] %v6460_v50  ;;  %v6465_v43 = vsub.f32 %v6374_v10, %v8505_v40  ;;  %4811 = vmatpush3.bf16.msra.mxu0 %v8507_v59  ;;  %4885 = vmatprep.subr.bf16.mxu1 %v5896_v2  ;;  %v6478_v40 = vld [vmem:[#allocation2 + $0x120] sm:$0xff]  ;;  %v8176_v2 = vand.u32 4294901760, %v6460_v50  ;;  %v1293_v33 = vsub.f32 %v6428_v36, %v8171_v29 }
  0xd1   :  { %8500 = vst [vmem:[#allocation32_spill] sm:$0xff] %v6449_v31  ;;  %4845 = vmatprep.subr.bf16.mxu0 %v6139_v53  ;;  %v8174_v55 = vand.u32 4294901760, %v6449_v31  ;;  %8509 = vst [vmem:[#allocation36_spill] sm:$0xff] %v6493_v56 }
  0xd2   :  { %8506 = vst [vmem:[#allocation35_spill] sm:$0xff] %v6465_v43  ;;  %v8512_v29 = vand.u32 4294901760, %v6465_v43 }
  0xd3   :  { %673 = vmatmul.mubr.f32.vlgmr.msra.gmra.mrb[2].mxu0 %v6252_v13  ;;  %4887 = vmatpush3.bf16.msra.mxu1 %v5917_v38  ;;  %v1286_v13 = vsub.f32 %v6423_v8, %v8170_v12  ;;  %v8511_v38 = vand.u32 4294901760, %v6444_v19  ;;  %v1307_v12 = vsub.f32 %v6454_v34, %v8175_v37 }
  0xd4   :  { %4847 = vmatpush3.bf16.msra.mxu0 %v6145_v58  ;;  %3877 = vmatprep.mubr.msk.f32.mxu0 %vm185_vm0, %v8486_v63  ;;  %v8510_v58 = vand.u32 4294901760, %v6433_v28  ;;  %v1195_v53 = vsub.f32 %v6465_v43, %v8512_v29  ;;  %v1294_v29 = vand.u32 4294901760, %v1293_v33 }
  0xd5   :  { %4889 = vmatprep.subr.bf16.mxu1 %v5947_v52  ;;  %4849 = vmatprep.subr.bf16.mxu0 %v6151_v22  ;;  %v1181_v52 = vsub.f32 %v6444_v19, %v8511_v38  ;;  %v1300_v22 = vsub.f32 %v6449_v31, %v8174_v55  ;;  %v6533_v55 = vsub.f32 %v6472_v11, %v8513_v32  ;;  %v8517_v38 = vand.u32 4294901760, %v6483_v23  ;;  %v6548_v32 = vld [vmem:[#allocation2 + $0x1b0] sm:$0xff]  ;;  %v6550_v31 = vld [vmem:[#allocation2 + $0x1b8] sm:$0xff] }
  0xd6   :  { %v1174_v59 = vsub.f32 %v6433_v28, %v8510_v58  ;;  %v1188_v58 = vsub.f32 %v6460_v50, %v8176_v2  ;;  %v1287_v2 = vand.u32 4294901760, %v1286_v13  ;;  %v6552_v19 = vld [vmem:[#allocation2 + $0x130] sm:$0xff]  ;;  %v8519_v13 = vand.u32 4294901760, %v6493_v56 }
  0xd7   :  { %4891 = vmatpush3.bf16.msra.mxu1 %v8462_v14  ;;  %8514 = vst [vmem:[#allocation37_spill] sm:$0xff] %v6533_v55  ;;  %v8515_v14 = vand.u32 4294901760, %v6478_v40  ;;  %v6546_v50 = vsub.f32 %v6483_v23, %v8517_v38  ;;  %v1301_v34 = vand.u32 4294901760, %v1300_v22  ;;  %v6591_v38 = vld [vmem:[#allocation2 + $0x140] sm:$0xff] }
  0xd8   :  { %4851 = vmatpush3.bf16.msra.mxu0 %v6159_v39  ;;  %4893 = vmatprep.subr.bf16.mxu1 %v8464_v16  ;;  %v1175_v43 = vand.u32 4294901760, %v1174_v59  ;;  %v1182_v39 = vand.u32 4294901760, %v1181_v52  ;;  %v1308_v16 = vand.u32 4294901760, %v1307_v12  ;;  %v1196_v59 = vand.u32 4294901760, %v1195_v53  ;;  %v6563_v52 = vld [vmem:[#allocation2 + $0x1c0] sm:$0xff] }
  0xd9   :  { %v6540_v37 = vsub.f32 %v6478_v40, %v8515_v14  ;;  %4853 = vmatprep.subr.bf16.mxu0 %v6165_v44  ;;  %8518 = vst [vmem:[#allocation39_spill] sm:$0xff] %v6546_v50  ;;  %v6554_v14 = vld [vmem:[#allocation2 + $0x138] sm:$0xff]  ;;  %v1189_v44 = vand.u32 4294901760, %v1188_v58  ;;  %v6560_v33 = vsub.f32 %v6493_v56, %v8519_v13  ;;  %v6568_v12 = vadd.s32 384, %v6229_v1 }
  0xda   :  { %v6579_v56 = vpack.c.bf16 %v1182_v39, %v1175_v43  ;;  %v6583_v53 = vpack.c.bf16 %v1308_v16, %v1301_v34  ;;  %v8521_v58 = vand.u32 4294901760, %v6533_v55  ;;  %v8522_v43 = vand.u32 4294901760, %v6548_v32  ;;  %v8524_v39 = vld [vmem:[#allocation15_spill] sm:$0xff] }
  0xdb   :  { %8516 = vst [vmem:[#allocation38_spill] sm:$0xff] %v6540_v37  ;;  %4895 = vmatpush3.bf16.msra.mxu1 %v8466_v20  ;;  %8520 = vst [vmem:[#allocation40_spill] sm:$0xff] %v6568_v12  ;;  %v8191_v20 = vand.u32 4294901760, %v6540_v37  ;;  %v1315_v22 = vand.u32 4294901760, %v6560_v33  ;;  %vm187_vm2 = vcmp.eq.s32.totalorder %v6234_v51, %v6568_v12  ;;  %v8525_v16 = vand.u32 4294901760, %v6546_v50 }
  0xdc   :  { %4855 = vmatpush3.bf16.msra.mxu0 %v6171_v57  ;;  %4897 = vmatprep.subr.bf16.mxu1 %v8468_v24  ;;  %v6577_v57 = vld [vmem:[#allocation2 + $0x1c8] sm:$0xff]  ;;  %v4940_v24 = vpack.c.bf16 %v1294_v29, %v1287_v2  ;;  %v1321_v13 = vsub.f32 %v6533_v55, %v8521_v58  ;;  %v6605_v34 = vsub.f32 %v6548_v32, %v8522_v43  ;;  %v8528_v58 = vand.u32 4294901760, %v6552_v19 }
  0xdd   :  { %4857 = vmatprep.subr.bf16.mxu0 %v6177_v18  ;;  %v6585_v18 = vpack.c.bf16 %v1196_v59, %v1189_v44  ;;  %v6608_v29 = vld [vmem:[#allocation2 + $0x148] sm:$0xff]  ;;  %v6618_v44 = vsub.f32 %v6546_v50, %v8525_v16  ;;  %v8526_v59 = vand.u32 4294901760, %v6550_v31  ;;  %v8533_v16 = vand.u32 4294901760, %v6336_v61 }
  0xde   :  { %8523 = vst [vmem:[#allocation41_spill] sm:$0xff] %v6605_v34  ;;  %v6628_v43 = vsub.f32 %v6552_v19, %v8528_v58  ;;  %v8534_v50 = vand.u32 4294901760, %v6338_v0  ;;  %v8536_v58 = vand.u32 4294901760, %v6563_v52  ;;  %v8540_v36 = vand.u32 4294901760, %v6577_v57 }
  0xdf   :  { %4899 = vmatpush3.bf16.msra.mxu1 %v6082_v17  ;;  %v6600_v17 = vsub.f32 %v6540_v37, %v8191_v20  ;;  %v6623_v33 = vsub.f32 %v6550_v31, %v8526_v59  ;;  %v8530_v20 = vand.u32 4294901760, %v6554_v14  ;;  %v8535_v59 = vand.u32 4294901760, %v6340_v25  ;;  %v8542_v25 = vld [vmem:[#allocation17_spill] sm:$0xff] }
  0xe0   :  { %4859 = vmatpush3.bf16.msra.mxu0 %v6183_v7  ;;  %4901 = vmatprep.subr.bf16.mxu1 %v6089_v46  ;;  %v6610_v7 = vld [vmem:[#allocation2 + $0x1d0] sm:$0xff]  ;;  %v6612_v46 = vld [vmem:[#allocation2 + $0x1d8] sm:$0xff]  ;;  %8529 = vst [vmem:[#allocation42_spill] sm:$0xff] %v6628_v43  ;;  %v6650_v55 = vsub.f32 %v6563_v52, %v8536_v58  ;;  %v6672_v0 = vsub.f32 %v6577_v57, %v8540_v36 }
  0xe1   :  { %4861 = vmatprep.subr.bf16.mxu0 %v8524_v39  ;;  %8527 = vst [vmem:[#allocation15_spill] sm:$0xff] %v6623_v33  ;;  %v6633_v2 = vsub.f32 %v6554_v14, %v8530_v20  ;;  %v8532_v39 = vand.u32 4294901760, %v6334_v21  ;;  %v6645_v37 = vpack.c.bf16 %v8535_v59, %v8534_v50  ;;  %v8538_v21 = vmov 0.0   ;;  %v8539_v59 = vld [vmem:[#allocation16_spill] sm:$0xff] }
  0xe2   :  { %8537 = vst [vmem:[#allocation44_spill] sm:$0xff] %v6650_v55  ;;  %v3874_v61 = vsel %vm187_vm2, 1.0, %v8538_v21  ;;  %v1203_v58 = vand.u32 4294901760, %v6600_v17  ;;  %8541 = vst [vmem:[#allocation16_spill] sm:$0xff] %v6672_v0  ;;  %v1210_v50 = vand.u32 4294901760, %v6618_v44  ;;  %v6681_v17 = vld [vmem:[#allocation2 + $0x1e8] sm:$0xff] }
  0xe3   :  { %8531 = vst [vmem:[#allocation43_spill] sm:$0xff] %v6633_v2  ;;  %v6639_v28 = vpack.c.bf16 %v8533_v16, %v8532_v39  ;;  %4903 = vmatpush3.bf16.msra.mxu1 %v6092_v45  ;;  %v6661_v39 = vld [vmem:[#allocation2 + $0x150] sm:$0xff]  ;;  %v6663_v16 = vld [vmem:[#allocation2 + $0x158] sm:$0xff]  ;;  %v1322_v45 = vand.u32 4294901760, %v1321_v13  ;;  %v6679_v13 = vld [vmem:[#allocation2 + $0x1e0] sm:$0xff]  ;;  %v6683_v20 = vsub.f32 %v3874_v61, %v3874_v61  ;;  %v8543_v44 = vand.u32 4294901760, %v6591_v38 }
  0xe4   :  { %4863 = vmatpush3.bf16.msra.mxu0 %v8539_v59  ;;  %4905 = vmatprep.subr.bf16.mxu1 %v6094_v49  ;;  %v8544_v49 = vand.u32 4294901760, %v6608_v29  ;;  %v8545_v61 = vand.u32 4294901760, %v6610_v7  ;;  %v8547_v36 = vand.u32 4294901760, %v6612_v46  ;;  %v8550_v21 = vand.u32 4294901760, %v6623_v33 }
  0xe5   :  { %4865 = vmatprep.subr.bf16.mxu0 %v8542_v25  ;;  %v6692_v59 = vsub.f32 %v6591_v38, %v8543_v44  ;;  %v4948_v44 = vpack.c.bf16 %v1322_v45, %v1315_v22 }
  0xe6   :  { %v6697_v8 = vsub.f32 %v6608_v29, %v8544_v49  ;;  %v6702_v3 = vsub.f32 %v6610_v7, %v8545_v61  ;;  %v6707_v25 = vsub.f32 %v6612_v46, %v8547_v36  ;;  %v8549_v61 = vand.u32 4294901760, %v6605_v34 }
  0xe7   :  { %4907 = vmatpush3.bf16.msra.mxu1 %v6099_v60  ;;  %v8548_v60 = vld [vmem:[#allocation18_spill] sm:$0xff]  ;;  %v1335_v36 = vsub.f32 %v6623_v33, %v8550_v21  ;;  %v8554_v21 = vand.u32 4294901760, %v6661_v39  ;;  %v8566_v33 = vand.u32 4294901760, %v6342_v5 }
  0xe8   :  { %8546 = vst [vmem:[#allocation17_spill] sm:$0xff] %v6702_v3  ;;  %4867 = vmatpush3.bf16.msra.mxu0 %v8548_v60  ;;  %4941 = vmatprep.subr.bf16.mxu1 %v4940_v24  ;;  %v1328_v26 = vsub.f32 %v6605_v34, %v8549_v61  ;;  %v8551_v60 = vand.u32 4294901760, %v6628_v43  ;;  %v8552_v24 = vand.u32 4294901760, %v6633_v2  ;;  %v8553_v61 = vand.u32 4294901760, %v6650_v55 }
  0xe9   :  { %4869 = vmatprep.subr.bf16.mxu0 %v6213_v47  ;;  %v6737_v30 = vsub.f32 %v6661_v39, %v8554_v21  ;;  %v8558_v47 = vand.u32 4294901760, %v6681_v17  ;;  %v4950_v21 = vpack.c.bf16 %v1210_v50, %v1203_v58  ;;  %v8563_v50 = vand.u32 4294901760, %v6702_v3 }
  0xea   :  { %v1216_v22 = vsub.f32 %v6628_v43, %v8551_v60  ;;  %v1223_v45 = vsub.f32 %v6633_v2, %v8552_v24  ;;  %3880 = vmatmul.mubr.msk.f32.vlgmr.msra.gmra.mrb[4].mxu1 %vm184_vm1, %v8486_v63  ;;  %v1342_v49 = vsub.f32 %v6650_v55, %v8553_v61  ;;  %v8555_v60 = vand.u32 4294901760, %v6663_v16 }
  0xeb   :  { %4943 = vmatpush3.bf16.msra.mxu1 %v6579_v56  ;;  %3881 = vmatprep.mubr.msk.f32.mxu1 %vm187_vm2, %v8486_v63  ;;  %v8557_v55 = vand.u32 4294901760, %v6679_v13  ;;  %v6766_v61 = vsub.f32 %v6681_v17, %v8558_v47  ;;  %v1336_v2 = vand.u32 4294901760, %v1335_v36  ;;  %v8560_v43 = vand.u32 4294901760, %v6683_v20 }
  0xec   :  { %v6742_v24 = vsub.f32 %v6663_v16, %v8555_v60  ;;  %4871 = vmatpush3.bf16.msra.mxu0 %v6219_v54  ;;  %4945 = vmatprep.subr.bf16.mxu1 %v6583_v53  ;;  %v8556_v60 = vand.u32 4294901760, %v6672_v0  ;;  %v1329_v54 = vand.u32 4294901760, %v1328_v26  ;;  %v1217_v53 = vand.u32 4294901760, %v1216_v22  ;;  %v8565_v22 = vld [vmem:[#allocation20_spill] sm:$0xff] }
  0xed   :  { %v6761_v12 = vsub.f32 %v6679_v13, %v8557_v55  ;;  %4873 = vmatprep.subr.bf16.mxu0 %v8559_v62  ;;  %v8561_v47 = vand.u32 4294901760, %v6692_v59  ;;  %v8562_v62 = vand.u32 4294901760, %v6697_v8  ;;  %v1356_v58 = vsub.f32 %v6702_v3, %v8563_v50 }
  0xee   :  { %v1349_v56 = vsub.f32 %v6672_v0, %v8556_v60  ;;  %v1157_v60 = vsub.f32 %v6683_v20, %v8560_v43  ;;  %v1224_v0 = vand.u32 4294901760, %v1223_v45  ;;  %v8564_v43 = vand.u32 4294901760, %v6707_v25 }
  0xef   :  { %4947 = vmatpush3.bf16.msra.mxu1 %v6585_v18  ;;  %v1230_v34 = vsub.f32 %v6692_v59, %v8561_v47  ;;  %v1237_v26 = vsub.f32 %v6697_v8, %v8562_v62  ;;  %v1343_v18 = vand.u32 4294901760, %v1342_v49  ;;  %v4952_v62 = vpack.c.bf16 %v1336_v2, %v1329_v54 }
  0xf0   :  { %v1363_v36 = vsub.f32 %v6707_v25, %v8564_v43  ;;  %4875 = vmatpush3.bf16.msra.mxu0 %v8565_v22  ;;  %4949 = vmatprep.subr.bf16.mxu1 %v4948_v44  ;;  %v1350_v45 = vand.u32 4294901760, %v1349_v56  ;;  %v8567_v50 = vand.u32 4294901760, %v6355_v4  ;;  %v8568_v43 = vand.u32 4294901760, %v6372_v42 }
  0xf1   :  { %4909 = vmatprep.subr.bf16.mxu0 %v6639_v28  ;;  %v8569_v22 = vand.u32 4294901760, %v6374_v10  ;;  %v1158_v49 = vand.u32 4294901760, %v1157_v60  ;;  %v4954_v56 = vpack.c.bf16 %v1224_v0, %v1217_v53  ;;  %v8570_v55 = vand.u32 4294901760, %v6737_v30 }
  0xf2   :  { %v6795_v3 = vpack.c.bf16 %v8567_v50, %v8566_v33  ;;  %v8571_v2 = vand.u32 4294901760, %v6742_v24  ;;  %v1231_v42 = vand.u32 4294901760, %v1230_v34  ;;  %v1238_v10 = vand.u32 4294901760, %v1237_v26 }
  0xf3   :  { %v6801_v44 = vpack.c.bf16 %v8569_v22, %v8568_v43  ;;  %v1244_v47 = vsub.f32 %v6737_v30, %v8570_v55  ;;  %3878 = vmatmul.mubr.msk.f32.vlgmr.msra.gmra.mrb[4].mxu0 %vm184_vm1, %v8486_v63  ;;  %4951 = vmatpush3.bf16.msra.mxu1 %v4950_v21  ;;  %v1357_v4 = vand.u32 4294901760, %v1356_v58  ;;  %v1364_v33 = vand.u32 4294901760, %v1363_v36 }
  0xf4   :  { %v1251_v5 = vsub.f32 %v6742_v24, %v8571_v2  ;;  %4911 = vmatpush3.bf16.msra.mxu0 %v6645_v37  ;;  %1159 = vmatprep.mubr.f32.mxu0 %v1158_v49  ;;  %v4956_v0 = vpack.c.bf16 %v1350_v45, %v1343_v18  ;;  %v8572_v54 = vand.u32 4294901760, %v6761_v12  ;;  %v8573_v60 = vand.u32 4294901760, %v6766_v61 }
  0xf5   :  { %4953 = vmatprep.subr.bf16.mxu1 %v4952_v62  ;;  %4913 = vmatprep.subr.bf16.mxu0 %v6795_v3  ;;  %v8574_v34 = vand.u32 4294901760, %v6409_v6  ;;  %v8575_v21 = vand.u32 4294901760, %v6472_v11  ;;  %v8576_v58 = vand.u32 4294901760, %v6478_v40  ;;  %v8577_v36 = vand.u32 4294901760, %v6483_v23 }
  0xf6   :  { %v1370_v53 = vsub.f32 %v6761_v12, %v8572_v54  ;;  %v1377_v55 = vsub.f32 %v6766_v61, %v8573_v60  ;;  %v1245_v45 = vand.u32 4294901760, %v1244_v47  ;;  %v1252_v50 = vand.u32 4294901760, %v1251_v5 }
  0xf7   :  { %v6825_v26 = vpack.c.bf16 %v8575_v21, %v8574_v34  ;;  %v6831_v18 = vpack.c.bf16 %v8577_v36, %v8576_v58  ;;  %4955 = vmatpush3.bf16.msra.mxu1 %v4954_v56  ;;  %v4958_v43 = vpack.c.bf16 %v1238_v10, %v1231_v42  ;;  %v4960_v22 = vpack.c.bf16 %v1364_v33, %v1357_v4 }
  0xf8   :  { %v8578_v62 = vand.u32 4294901760, %v6324_v48  ;;  %v8579_v6 = vand.u32 4294901760, %v6329_v41  ;;  %4915 = vmatpush3.bf16.msra.mxu0 %v6801_v44  ;;  %4957 = vmatprep.subr.bf16.mxu1 %v4956_v0  ;;  %v1371_v40 = vand.u32 4294901760, %v1370_v53  ;;  %v1378_v23 = vand.u32 4294901760, %v1377_v55 }
  0xf9   :  { %v8580_v2 = vand.u32 4294901760, %v6347_v15  ;;  %v8581_v56 = vand.u32 4294901760, %v6352_v9  ;;  %4917 = vmatprep.subr.bf16.mxu0 %v6825_v26  ;;  %v8582_v42 = vand.u32 4294901760, %v6548_v32  ;;  %v8583_v10 = vand.u32 4294901760, %v6550_v31 }
  0xfa   :  { %v1258_v49 = vsub.f32 %v6324_v48, %v8578_v62  ;;  %v1265_v11 = vsub.f32 %v6329_v41, %v8579_v6  ;;  %v4962_v33 = vpack.c.bf16 %v1252_v50, %v1245_v45  ;;  %v6854_v0 = vadd.s32 256, %v6229_v1 }
  0xfb   :  { %v1384_v47 = vsub.f32 %v6347_v15, %v8580_v2  ;;  %v1391_v5 = vsub.f32 %v6352_v9, %v8581_v56  ;;  %v6851_v4 = vpack.c.bf16 %v8583_v10, %v8582_v42  ;;  %4959 = vmatpush3.bf16.msra.mxu1 %v4958_v43  ;;  %v8585_v60 = vand.u32 4294901760, %v6360_v35 }
  0xfc   :  { %8584 = vst [vmem:[#allocation18_spill] sm:$0xff] %v6854_v0  ;;  %v1259_v54 = vand.u32 4294901760, %v1258_v49  ;;  %v1266_v53 = vand.u32 4294901760, %v1265_v11  ;;  %v8586_v34 = vand.u32 4294901760, %v6365_v27  ;;  %4919 = vmatpush3.bf16.msra.mxu0 %v6831_v18  ;;  %4961 = vmatprep.subr.bf16.mxu1 %v4960_v22  ;;  %v8587_v31 = vand.u32 4294901760, %v6552_v19 }
  0xfd   :  { %v1272_v55 = vsub.f32 %v6360_v35, %v8585_v60  ;;  %v8588_v32 = vand.u32 4294901760, %v6554_v14  ;;  %v4964_v36 = vpack.c.bf16 %v1378_v23, %v1371_v40  ;;  %v1385_v45 = vand.u32 4294901760, %v1384_v47  ;;  %4921 = vmatprep.subr.bf16.mxu0 %v6851_v4 }
  0xfe   :  { %v1279_v21 = vsub.f32 %v6365_v27, %v8586_v34  ;;  %v1392_v50 = vand.u32 4294901760, %v1391_v5  ;;  %v8589_v43 = vand.u32 4294901760, %v6563_v52  ;;  %v8590_v62 = vand.u32 4294901760, %v6577_v57 }
  0xff   :  { %v6867_v58 = vpack.c.bf16 %v8588_v32, %v8587_v31  ;;  %4963 = vmatpush3.bf16.msra.mxu1 %v4962_v33  ;;  %v4966_v6 = vpack.c.bf16 %v1266_v53, %v1259_v54  ;;  %v1273_v22 = vand.u32 4294901760, %v1272_v55  ;;  %vm186_vm3 = vcmp.eq.s32.totalorder %v6234_v51, %v6854_v0  ;;  %v8604_v55 = vld [vmem:[#allocation13_spill] sm:$0xff] }
 0x100   :  { %v6874_v49 = vpack.c.bf16 %v8590_v62, %v8589_v43  ;;  %v1280_v11 = vand.u32 4294901760, %v1279_v21  ;;  %4965 = vmatprep.subr.bf16.mxu1 %v4964_v36  ;;  %v8591_v19 = vand.u32 4294901760, %v6591_v38  ;;  %v8592_v14 = vand.u32 4294901760, %v6608_v29  ;;  %v8609_v36 = vld [vmem:[#allocation23_spill] sm:$0xff] }
 0x101   :  { %4923 = vmatpush3.bf16.msra.mxu0 %v6867_v58  ;;  %v4968_v52 = vpack.c.bf16 %v1392_v50, %v1385_v45  ;;  %v8593_v57 = vand.u32 4294901760, %v6610_v7  ;;  %v8594_v23 = vand.u32 4294901760, %v6612_v46  ;;  %v8595_v47 = vmov 0.0   ;;  %v8611_v50 = vld [vmem:[#allocation24_spill] sm:$0xff] }
 0x102   :  { %v6883_v40 = vpack.c.bf16 %v8592_v14, %v8591_v19  ;;  %4925 = vmatprep.subr.bf16.mxu0 %v6874_v49  ;;  %v3873_v56 = vsel %vm186_vm3, 1.0, %v8595_v47  ;;  %v4970_v38 = vpack.c.bf16 %v1280_v11, %v1273_v22  ;;  %v8596_v29 = vand.u32 4294901760, %v6661_v39  ;;  %v8600_v39 = vld [vmem:[#allocation11_spill] sm:$0xff]  ;;  %v8614_v11 = vld [vmem:[#allocation28_spill] sm:$0xff]  ;;  %v8615_v14 = vld [vmem:[#allocation29_spill] sm:$0xff] }
 0x103   :  { %v6890_v2 = vpack.c.bf16 %v8594_v23, %v8593_v57  ;;  %4967 = vmatpush3.bf16.msra.mxu1 %v4966_v6  ;;  %v8597_v5 = vand.u32 4294901760, %v6663_v16  ;;  %v6904_v7 = vsub.f32 %v3873_v56, %v3873_v56  ;;  %v8598_v46 = vand.u32 4294901760, %v6679_v13  ;;  %v8602_v16 = vld [vmem:[#allocation12_spill] sm:$0xff]  ;;  %v8606_v13 = vld [vmem:[#allocation14_spill] sm:$0xff]  ;;  %v8613_v22 = vld [vmem:[#allocation27_spill] sm:$0xff] }
 0x104   :  { %4969 = vmatprep.subr.bf16.mxu1 %v4968_v52  ;;  %v8599_v10 = vand.u32 4294901760, %v6681_v17  ;;  %v8601_v54 = vand.u32 4294901760, %v8600_v39  ;;  %v8603_v53 = vand.u32 4294901760, %v8602_v16  ;;  %v8605_v34 = vand.u32 4294901760, %v8604_v55  ;;  %v8616_v52 = vld [vmem:[#allocation31_spill] sm:$0xff]  ;;  %v8617_v47 = vld [vmem:[#allocation32_spill] sm:$0xff] }
 0x105   :  { %4927 = vmatpush3.bf16.msra.mxu0 %v6883_v40  ;;  %v6901_v42 = vpack.c.bf16 %v8597_v5, %v8596_v29  ;;  %v8607_v21 = vand.u32 4294901760, %v8606_v13  ;;  %v1162_v31 = vand.u32 4294901760, %v6904_v7  ;;  %v8608_v32 = vand.u32 4294901760, %v6683_v20  ;;  %v8618_v56 = vld [vmem:[#allocation33_spill] sm:$0xff]  ;;  %v8619_v29 = vld [vmem:[#allocation34_spill] sm:$0xff]  ;;  %v8620_v5 = vld [vmem:[#allocation35_spill] sm:$0xff] }
 0x106   :  { %4929 = vmatprep.subr.bf16.mxu0 %v6890_v2  ;;  %v6910_v33 = vpack.c.bf16 %v8599_v10, %v8598_v46  ;;  %v6918_v60 = vpack.c.bf16 %v8603_v53, %v8601_v54  ;;  %v8610_v45 = vand.u32 4294901760, %v8609_v36  ;;  %v8612_v43 = vand.u32 4294901760, %v8611_v50  ;;  %v8621_v10 = vld [vmem:[#allocation36_spill] sm:$0xff]  ;;  %v8622_v39 = vld [vmem:[#allocation37_spill] sm:$0xff]  ;;  %v8623_v16 = vld [vmem:[#allocation38_spill] sm:$0xff] }
 0x107   :  { %4971 = vmatpush3.bf16.msra.mxu1 %v4970_v38  ;;  %v6925_v17 = vpack.c.bf16 %v8607_v21, %v8605_v34  ;;  %v1163_v6 = vsub.f32 %v6904_v7, %v1162_v31  ;;  %v4972_v19 = vpack.c.bf16 %v8614_v11, %v8613_v22  ;;  %v4974_v57 = vpack.c.bf16 %v8616_v52, %v8615_v14  ;;  %v8624_v53 = vld [vmem:[#allocation39_spill] sm:$0xff]  ;;  %v8625_v34 = vld [vmem:[#allocation41_spill] sm:$0xff]  ;;  %v8627_v21 = vld [vmem:[#allocation42_spill] sm:$0xff] }
 0x108   :  { %5005 = vmatprep.subr.bf16.mxu1 %v6639_v28  ;;  %v6941_v62 = vpack.c.bf16 %v8612_v43, %v8610_v45  ;;  %v4976_v38 = vpack.c.bf16 %v8618_v56, %v8617_v47  ;;  %v4978_v46 = vpack.c.bf16 %v8620_v5, %v8619_v29  ;;  %v4980_v54 = vpack.c.bf16 %v8622_v39, %v8621_v10  ;;  %v8629_v45 = vld [vmem:[#allocation44_spill] sm:$0xff] }
 0x109   :  { %4931 = vmatpush3.bf16.msra.mxu0 %v6901_v42  ;;  %v1164_v23 = vand.u32 4294901760, %v1163_v6  ;;  %v4982_v55 = vpack.c.bf16 %v8624_v53, %v8623_v16  ;;  %v8630_v50 = vld [vmem:[#allocation16_spill] sm:$0xff]  ;;  %v4990_v6 = vpack.c.bf16 %v6697_v8, %v6692_v59 }
 0x10a   :  { %4933 = vmatprep.subr.bf16.mxu0 %v6910_v33  ;;  %3882 = vmatmul.mubr.msk.f32.vlgmr.msra.gmra.mrb[6].mxu1 %vm186_vm3, %v8486_v63  ;;  %v4988_v43 = vpack.c.bf16 %v8630_v50, %v8629_v45 }
 0x10b   :  { %5007 = vmatpush3.bf16.msra.mxu1 %v6645_v37  ;;  %1639 = vmatprep.mubr.f32.mxu1 %v8608_v32  ;;  %v8628_v32 = vld [vmem:[#allocation43_spill] sm:$0xff] }
 0x10c   :  { %5009 = vmatprep.subr.bf16.mxu1 %v6795_v3  ;;  %v4986_v36 = vpack.c.bf16 %v8628_v32, %v8627_v21 }
 0x10d   :  { %4935 = vmatpush3.bf16.msra.mxu0 %v6918_v60 }
 0x10e   :  { %4937 = vmatprep.subr.bf16.mxu0 %v6925_v17 }
 0x10f   :  { %5011 = vmatpush3.bf16.msra.mxu1 %v6801_v44 }
 0x110   :  { %5013 = vmatprep.subr.bf16.mxu1 %v6825_v26 }
 0x111   :  { %4939 = vmatpush3.bf16.msra.mxu0 %v6941_v62 }
 0x112   :  { %4973 = vmatprep.subr.bf16.mxu0 %v4972_v19  ;;  %v8631_v19 = vld [vmem:[#allocation17_spill] sm:$0xff] }
 0x113   :  { %5015 = vmatpush3.bf16.msra.mxu1 %v6831_v18 }
 0x114   :  { %1165 = vmatmul.mubr.f32.vlgmr.msra.gmra.mrb[6].mxu0 %v1164_v23  ;;  %5017 = vmatprep.subr.bf16.mxu1 %v6851_v4  ;;  %v4994_v23 = vpack.c.bf16 %v6742_v24, %v6737_v30 }
 0x115   :  { %4975 = vmatpush3.bf16.msra.mxu0 %v4974_v57  ;;  %1532 = vmatprep.mubr.f32.mxu0 %v6683_v20  ;;  %v8626_v20 = vld [vmem:[#allocation15_spill] sm:$0xff]  ;;  %v4992_v57 = vpack.c.bf16 %v6707_v25, %v8631_v19 }
 0x116   :  { %4977 = vmatprep.subr.bf16.mxu0 %v4976_v38  ;;  %v4984_v13 = vpack.c.bf16 %v8626_v20, %v8625_v34  ;;  %v4996_v38 = vpack.c.bf16 %v6766_v61, %v6761_v12 }
 0x117   :  { %5019 = vmatpush3.bf16.msra.mxu1 %v6867_v58 }
 0x118   :  { %5021 = vmatprep.subr.bf16.mxu1 %v6874_v49 }
 0x119   :  { %4979 = vmatpush3.bf16.msra.mxu0 %v4978_v46  ;;  %v4998_v46 = vpack.c.bf16 %v6329_v41, %v6324_v48  ;;  %v8633_v48 = vand.u32 4294901760, %v8613_v22  ;;  %v8634_v41 = vand.u32 4294901760, %v8614_v11  ;;  %v8641_v11 = vand.u32 4294901760, %v8621_v10 }
 0x11a   :  { %4981 = vmatprep.subr.bf16.mxu0 %v4980_v54  ;;  %v5000_v54 = vpack.c.bf16 %v6352_v9, %v6347_v15  ;;  %v8635_v9 = vand.u32 4294901760, %v8615_v14  ;;  %v8649_v10 = vand.u32 4294901760, %v8629_v45 }
 0x11b   :  { %5023 = vmatpush3.bf16.msra.mxu1 %v6883_v40  ;;  %v5036_v15 = vpack.c.bf16 %v8634_v41, %v8633_v48 }
 0x11c   :  { %5025 = vmatprep.subr.bf16.mxu1 %v6890_v2 }
 0x11d   :  { %4983 = vmatpush3.bf16.msra.mxu0 %v4982_v55 }
 0x11e   :  { %4985 = vmatprep.subr.bf16.mxu0 %v4984_v13 }
 0x11f   :  { %5027 = vmatpush3.bf16.msra.mxu1 %v6901_v42 }
 0x120   :  { %5029 = vmatprep.subr.bf16.mxu1 %v6910_v33 }
 0x121   :  { %4987 = vmatpush3.bf16.msra.mxu0 %v4986_v36  ;;  %v161_v36 = vld [vmem:[#allocation5 + $0x188] sm:$0xff] }
 0x122   :  { %4989 = vmatprep.subr.bf16.mxu0 %v4988_v43  ;;  %v113_v43 = vld [vmem:[#allocation5 + $0x8] sm:$0xff] }
 0x123   :  { %5031 = vmatpush3.bf16.msra.mxu1 %v6918_v60 }
 0x124   :  { %5033 = vmatprep.subr.bf16.mxu1 %v6925_v17 }
 0x125   :  { %4991 = vmatpush3.bf16.msra.mxu0 %v4990_v6  ;;  %v2827_v6 = vand.u32 4294901760, %v161_v36 }
 0x126   :  { %4993 = vmatprep.subr.bf16.mxu0 %v4992_v57  ;;  %v1924_v57 = vand.u32 4294901760, %v113_v43 }
 0x127   :  { %5035 = vmatpush3.bf16.msra.mxu1 %v6941_v62  ;;  %v7090_v41 = vsub.f32 %v161_v36, %v2827_v6 }
 0x128   :  { %5069 = vmatprep.subr.bf16.mxu1 %v6639_v28  ;;  %v5002_v28 = vpack.c.bf16 %v6365_v27, %v6360_v35  ;;  %v8638_v35 = vand.u32 4294901760, %v8618_v56  ;;  %v8645_v56 = vand.u32 4294901760, %v8625_v34  ;;  %v8653_v34 = vand.u32 4294901760, %v8631_v19 }
 0x129   :  { %4995 = vmatpush3.bf16.msra.mxu0 %v4994_v23  ;;  %v144_v23 = vld [vmem:[#allocation5 + $0x100] sm:$0xff] }
 0x12a   :  { %4997 = vmatprep.subr.bf16.mxu0 %v4996_v38  ;;  %1643 = vmatmul.mubr.f32.vlgmr.msra.gmra.mrb[8].mxu1 %v1162_v31  ;;  %v145_v38 = vld [vmem:[#allocation5 + $0x108] sm:$0xff] }
 0x12b   :  { %5071 = vmatpush3.bf16.msra.mxu1 %v6645_v37  ;;  %3885 = vmatprep.mubr.msk.f32.mxu1 %vm187_vm2, %v8486_v63  ;;  %v8636_v37 = vand.u32 4294901760, %v8616_v52  ;;  %v8644_v52 = vand.u32 4294901760, %v8624_v53 }
 0x12c   :  { %5073 = vmatprep.subr.bf16.mxu1 %v6795_v3  ;;  %v8637_v3 = vand.u32 4294901760, %v8617_v47 }
 0x12d   :  { %4999 = vmatpush3.bf16.msra.mxu0 %v4998_v46  ;;  %v5038_v31 = vpack.c.bf16 %v8636_v37, %v8635_v9  ;;  %v7097_v37 = vsub.f32 %v113_v43, %v1924_v57 }
 0x12e   :  { %5001 = vmatprep.subr.bf16.mxu0 %v5000_v54  ;;  %v5040_v27 = vpack.c.bf16 %v8638_v35, %v8637_v3  ;;  %v2779_v3 = vand.u32 4294901760, %v145_v38 }
 0x12f   :  { %5075 = vmatpush3.bf16.msra.mxu1 %v6801_v44  ;;  %v8639_v44 = vand.u32 4294901760, %v8619_v29 }
 0x130   :  { %5077 = vmatprep.subr.bf16.mxu1 %v6825_v26  ;;  %v8640_v26 = vand.u32 4294901760, %v8620_v5 }
 0x131   :  { %5003 = vmatpush3.bf16.msra.mxu0 %v5002_v28 }
 0x132   :  { %5037 = vmatprep.subr.bf16.mxu0 %v5036_v15  ;;  %v5042_v22 = vpack.c.bf16 %v8640_v26, %v8639_v44  ;;  %v7105_v44 = vsub.f32 %v145_v38, %v2779_v3  ;;  %v130_v26 = vld [vmem:[#allocation5 + $0x90] sm:$0xff] }
 0x133   :  { %5079 = vmatpush3.bf16.msra.mxu1 %v6831_v18  ;;  %v8643_v18 = vand.u32 4294901760, %v8623_v16 }
 0x134   :  { %1535 = vmatmul.mubr.f32.vlgmr.msra.gmra.mrb[8].mxu0 %v6904_v7  ;;  %5081 = vmatprep.subr.bf16.mxu1 %v6851_v4  ;;  %v8642_v7 = vand.u32 4294901760, %v8622_v39  ;;  %v8646_v4 = vand.u32 4294901760, %v8626_v20  ;;  %v8650_v39 = vand.u32 4294901760, %v8630_v50  ;;  %v8654_v20 = vand.u32 4294901760, %v6707_v25  ;;  %v8659_v25 = vld [vmem:[#allocation25_spill] sm:$0xff]  ;;  %v112_v50 = vld [vmem:[#allocation5] sm:$0xff] }
 0x135   :  { %5039 = vmatpush3.bf16.msra.mxu0 %v5038_v31  ;;  %3883 = vmatprep.mubr.msk.f32.mxu0 %vm187_vm2, %v8486_v63  ;;  %v5046_v47 = vpack.c.bf16 %v8644_v52, %v8643_v18  ;;  %v1921_v19 = vand.u32 4294901760, %v112_v50  ;;  %v2776_v31 = vand.u32 4294901760, %v144_v23  ;;  %v163_v18 = vld [vmem:[#allocation5 + $0x198] sm:$0xff] }
 0x136   :  { %5041 = vmatprep.subr.bf16.mxu0 %v5040_v27  ;;  %v5044_v14 = vpack.c.bf16 %v8642_v7, %v8641_v11  ;;  %v5048_v29 = vpack.c.bf16 %v8646_v4, %v8645_v56  ;;  %v5052_v16 = vpack.c.bf16 %v8650_v39, %v8649_v10  ;;  %v5056_v13 = vpack.c.bf16 %v8654_v20, %v8653_v34  ;;  %v162_v11 = vld [vmem:[#allocation5 + $0x190] sm:$0xff]  ;;  %v115_v56 = vld [vmem:[#allocation5 + $0x18] sm:$0xff] }
 0x137   :  { %5083 = vmatpush3.bf16.msra.mxu1 %v6867_v58  ;;  %v8647_v58 = vand.u32 4294901760, %v8627_v21  ;;  %v7092_v15 = vpack.c.bf16 %v1924_v57, %v1921_v19  ;;  %v7094_v9 = vsub.f32 %v112_v50, %v1921_v19  ;;  %v7101_v35 = vpack.c.bf16 %v2779_v3, %v2776_v31  ;;  %v147_v10 = vld [vmem:[#allocation5 + $0x118] sm:$0xff]  ;;  %v117_v50 = vld [vmem:[#allocation5 + $0x28] sm:$0xff]  ;;  %v148_v57 = vld [vmem:[#allocation5 + $0x120] sm:$0xff] }
 0x138   :  { %5085 = vmatprep.subr.bf16.mxu1 %v6874_v49  ;;  %v8648_v49 = vand.u32 4294901760, %v8628_v32  ;;  %v7103_v27 = vsub.f32 %v144_v23, %v2776_v31  ;;  %v1975_v7 = vand.u32 4294901760, %v130_v26  ;;  %v2830_v52 = vand.u32 4294901760, %v162_v11  ;;  %v149_v23 = vld [vmem:[#allocation5 + $0x128] sm:$0xff] }
 0x139   :  { %5043 = vmatpush3.bf16.msra.mxu0 %v5042_v22  ;;  %8664 = vst [vmem:[#allocation11_spill] sm:$0xff] %v7092_v15  ;;  %8665 = vst [vmem:[#allocation12_spill] sm:$0xff] %v7101_v35  ;;  %v131_v22 = vld [vmem:[#allocation5 + $0x98] sm:$0xff]  ;;  %v1936_v19 = vand.u32 4294901760, %v117_v50  ;;  %v2788_v3 = vand.u32 4294901760, %v148_v57 }
 0x13a   :  { %5045 = vmatprep.subr.bf16.mxu0 %v5044_v14  ;;  %v5050_v5 = vpack.c.bf16 %v8648_v49, %v8647_v58  ;;  %v1978_v14 = vand.u32 4294901760, %v131_v22  ;;  %v1930_v49 = vand.u32 4294901760, %v115_v56  ;;  %v7110_v34 = vsub.f32 %v130_v26, %v1975_v7 }
 0x13b   :  { %5087 = vmatpush3.bf16.msra.mxu1 %v6883_v40  ;;  %v8651_v40 = vand.u32 4294901760, %v6692_v59  ;;  %v8658_v59 = vand.u32 4294901760, %v6766_v61  ;;  %v129_v61 = vld [vmem:[#allocation5 + $0x88] sm:$0xff]  ;;  %v2791_v26 = vand.u32 4294901760, %v149_v23 }
 0x13c   :  { %5089 = vmatprep.subr.bf16.mxu1 %v6890_v2  ;;  %v8652_v2 = vand.u32 4294901760, %v6697_v8  ;;  %v8657_v8 = vand.u32 4294901760, %v6761_v12  ;;  %v128_v12 = vld [vmem:[#allocation5 + $0x80] sm:$0xff]  ;;  %v7112_v20 = vsub.f32 %v131_v22, %v1978_v14 }
 0x13d   :  { %5047 = vmatpush3.bf16.msra.mxu0 %v5046_v47  ;;  %v114_v47 = vld [vmem:[#allocation5 + $0x10] sm:$0xff] }
 0x13e   :  { %5049 = vmatprep.subr.bf16.mxu0 %v5048_v29  ;;  %v5054_v53 = vpack.c.bf16 %v8652_v2, %v8651_v40  ;;  %v5060_v32 = vpack.c.bf16 %v8658_v59, %v8657_v8  ;;  %v2833_v29 = vand.u32 4294901760, %v163_v18  ;;  %v1927_v58 = vand.u32 4294901760, %v114_v47 }
 0x13f   :  { %5091 = vmatpush3.bf16.msra.mxu1 %v6901_v42  ;;  %v8655_v42 = vand.u32 4294901760, %v6737_v30  ;;  %v8660_v30 = vld [vmem:[#allocation26_spill] sm:$0xff]  ;;  %v2785_v2 = vand.u32 4294901760, %v147_v10  ;;  %v7126_v59 = vsub.f32 %v115_v56, %v1930_v49 }
 0x140   :  { %5093 = vmatprep.subr.bf16.mxu1 %v6910_v33  ;;  %v8656_v33 = vand.u32 4294901760, %v6742_v24  ;;  %v8661_v24 = vld [vmem:[#allocation30_spill] sm:$0xff]  ;;  %v7123_v8 = vsub.f32 %v114_v47, %v1927_v58 }
 0x141   :  { %5051 = vmatpush3.bf16.msra.mxu0 %v5050_v5  ;;  %v146_v5 = vld [vmem:[#allocation5 + $0x110] sm:$0xff]  ;;  %8670 = vst [vmem:[#allocation27_spill] sm:$0xff] %v7126_v59 }
 0x142   :  { %5053 = vmatprep.subr.bf16.mxu0 %v5052_v16  ;;  %v5058_v21 = vpack.c.bf16 %v8656_v33, %v8655_v42  ;;  %v7108_v16 = vpack.c.bf16 %v1978_v14, %v1975_v7  ;;  %v2782_v40 = vand.u32 4294901760, %v146_v5  ;;  %v7117_v42 = vsub.f32 %v162_v11, %v2830_v52  ;;  %8669 = vst [vmem:[#allocation24_spill] sm:$0xff] %v7123_v8 }
 0x143   :  { %5095 = vmatpush3.bf16.msra.mxu1 %v6918_v60  ;;  %v160_v60 = vld [vmem:[#allocation5 + $0x180] sm:$0xff]  ;;  %v7119_v33 = vsub.f32 %v163_v18, %v2833_v29  ;;  %v7143_v18 = vpack.c.bf16 %v2791_v26, %v2788_v3 }
 0x144   :  { %5097 = vmatprep.subr.bf16.mxu1 %v6925_v17  ;;  %v1969_v17 = vand.u32 4294901760, %v128_v12  ;;  %v2824_v45 = vand.u32 4294901760, %v160_v60  ;;  %8666 = vst [vmem:[#allocation13_spill] sm:$0xff] %v7108_v16 }
 0x145   :  { %5055 = vmatpush3.bf16.msra.mxu0 %v5054_v53  ;;  %8676 = vst [vmem:[#allocation34_spill] sm:$0xff] %v7143_v18 }
 0x146   :  { %5057 = vmatprep.subr.bf16.mxu0 %v5056_v13  ;;  %v7082_v54 = vsub.f32 %v128_v12, %v1969_v17  ;;  %v7086_v28 = vsub.f32 %v160_v60, %v2824_v45  ;;  %v7088_v48 = vpack.c.bf16 %v2827_v6, %v2824_v45  ;;  %v7114_v13 = vpack.c.bf16 %v2833_v29, %v2830_v52  ;;  %v133_v12 = vld [vmem:[#allocation5 + $0xa8] sm:$0xff]  ;;  %v116_v45 = vld [vmem:[#allocation5 + $0x20] sm:$0xff]  ;;  %v134_v29 = vld [vmem:[#allocation5 + $0xb0] sm:$0xff] }
 0x147   :  { %5099 = vmatpush3.bf16.msra.mxu1 %v6941_v62  ;;  %v1972_v62 = vand.u32 4294901760, %v129_v61  ;;  %v1933_v6 = vand.u32 4294901760, %v116_v45 }
 0x148   :  { %8663 = vst [vmem:[#allocation20_spill] sm:$0xff] %v7088_v48  ;;  %5293 = vmatprep.subr.bf16.mxu1 %v7088_v48  ;;  %8667 = vst [vmem:[#allocation14_spill] sm:$0xff] %v7114_v13 }
 0x149   :  { %5059 = vmatpush3.bf16.msra.mxu0 %v5058_v21  ;;  %v7080_v46 = vpack.c.bf16 %v1972_v62, %v1969_v17  ;;  %v7084_v51 = vsub.f32 %v129_v61, %v1972_v62  ;;  %v7121_v21 = vpack.c.bf16 %v1930_v49, %v1927_v58  ;;  %v164_v61 = vld [vmem:[#allocation5 + $0x1a0] sm:$0xff]  ;;  %v1984_v17 = vand.u32 4294901760, %v133_v12  ;;  %v165_v62 = vld [vmem:[#allocation5 + $0x1a8] sm:$0xff]  ;;  %v135_v58 = vld [vmem:[#allocation5 + $0xb8] sm:$0xff] }
 0x14a   :  { %5061 = vmatprep.subr.bf16.mxu0 %v5060_v32  ;;  %3886 = vmatmul.mubr.msk.f32.vlgmr.msra.gmra.mrb[10].mxu1 %vm186_vm3, %v8486_v63  ;;  %v7128_v32 = vpack.c.bf16 %v2785_v2, %v2782_v40  ;;  %v2836_v36 = vand.u32 4294901760, %v164_v61  ;;  %v2839_v43 = vand.u32 4294901760, %v165_v62  ;;  %v7140_v7 = vpack.c.bf16 %v1936_v19, %v1933_v6  ;;  %v166_v49 = vld [vmem:[#allocation5 + $0x1b0] sm:$0xff] }
 0x14b   :  { %8662 = vst [vmem:[#allocation19_spill] sm:$0xff] %v7080_v46  ;;  %8668 = vst [vmem:[#allocation23_spill] sm:$0xff] %v7121_v21  ;;  %v7150_v56 = vsub.f32 %v133_v12, %v1984_v17  ;;  %v7164_v12 = vsub.f32 %v149_v23, %v2791_v26  ;;  %v168_v23 = vld [vmem:[#allocation5 + $0x1c0] sm:$0xff]  ;;  %v169_v26 = vld [vmem:[#allocation5 + $0x1c8] sm:$0xff] }
 0x14c   :  { %8671 = vst [vmem:[#allocation28_spill] sm:$0xff] %v7128_v32  ;;  %v7138_v11 = vpack.c.bf16 %v2839_v43, %v2836_v36  ;;  %8675 = vst [vmem:[#allocation33_spill] sm:$0xff] %v7140_v7 }
 0x14d   :  { %5063 = vmatpush3.bf16.msra.mxu0 %v8659_v25  ;;  %v7130_v25 = vsub.f32 %v146_v5, %v2782_v40  ;;  %8678 = vst [vmem:[#allocation36_spill] sm:$0xff] %v7150_v56  ;;  %v7155_v5 = vsub.f32 %v165_v62, %v2839_v43  ;;  %v7162_v40 = vsub.f32 %v148_v57, %v2788_v3  ;;  %8684 = vst [vmem:[#allocation42_spill] sm:$0xff] %v7164_v12 }
 0x14e   :  { %5065 = vmatprep.subr.bf16.mxu0 %v8660_v30  ;;  %v7132_v30 = vsub.f32 %v147_v10, %v2785_v2  ;;  %8674 = vst [vmem:[#allocation32_spill] sm:$0xff] %v7138_v11  ;;  %v7157_v10 = vsub.f32 %v116_v45, %v1933_v6  ;;  %v167_v2 = vld [vmem:[#allocation5 + $0x1b8] sm:$0xff] }
 0x14f   :  { %8680 = vst [vmem:[#allocation38_spill] sm:$0xff] %v7155_v5  ;;  %8683 = vst [vmem:[#allocation15_spill] sm:$0xff] %v7162_v40  ;;  %v2845_v62 = vand.u32 4294901760, %v167_v2 }
 0x150   :  { %5295 = vmatpush3.bf16.xpose.msra.mxu1 %v7101_v35  ;;  %8672 = vst [vmem:[#allocation29_spill] sm:$0xff] %v7132_v30  ;;  %8681 = vst [vmem:[#allocation39_spill] sm:$0xff] %v7157_v10 }
 0x151   :  { %5067 = vmatpush3.bf16.msra.mxu0 %v8661_v24  ;;  %5297 = vmatprep.subr.bf16.mxu1 %v7114_v13  ;;  %v132_v24 = vld [vmem:[#allocation5 + $0xa0] sm:$0xff]  ;;  %v7176_v0 = vsub.f32 %v167_v2, %v2845_v62  ;;  %v154_v13 = vld [vmem:[#allocation5 + $0x150] sm:$0xff] }
 0x152   :  { %5101 = vmatprep.subr.bf16.mxu0 %v7080_v46  ;;  %v1981_v60 = vand.u32 4294901760, %v132_v24 }
 0x153   :  { %8690 = vst [vmem:[#allocation26_spill] sm:$0xff] %v7176_v0 }
 0x154   :  { %3884 = vmatmul.mubr.msk.f32.vlgmr.msra.gmra.mrb[10].mxu0 %vm186_vm3, %v8486_v63  ;;  %v7136_v31 = vpack.c.bf16 %v1984_v17, %v1981_v60  ;;  %v7148_v47 = vsub.f32 %v132_v24, %v1981_v60  ;;  %v119_v24 = vld [vmem:[#allocation5 + $0x38] sm:$0xff]  ;;  %v1990_v60 = vand.u32 4294901760, %v135_v58  ;;  %v2842_v17 = vand.u32 4294901760, %v166_v49  ;;  %v120_v63 = vld [vmem:[#allocation5 + $0x40] sm:$0xff] }
 0x155   :  { %v1942_v45 = vand.u32 4294901760, %v119_v24  ;;  %v1945_v2 = vand.u32 4294901760, %v120_v63 }
 0x156   :  { %8673 = vst [vmem:[#allocation31_spill] sm:$0xff] %v7136_v31  ;;  %8677 = vst [vmem:[#allocation35_spill] sm:$0xff] %v7148_v47  ;;  %v7170_v3 = vsub.f32 %v135_v58, %v1990_v60  ;;  %v7174_v55 = vpack.c.bf16 %v2845_v62, %v2842_v17 }
 0x158   :  { %5299 = vmatpush3.bf16.xpose.msra.mxu1 %v7128_v32  ;;  %8687 = vst [vmem:[#allocation16_spill] sm:$0xff] %v7170_v3  ;;  %8689 = vst [vmem:[#allocation25_spill] sm:$0xff] %v7174_v55 }
 0x159   :  { %5301 = vmatprep.subr.bf16.mxu1 %v7138_v11  ;;  %v2851_v11 = vand.u32 4294901760, %v169_v26 }
 0x15a   :  { %5103 = vmatpush3.bf16.xpose.msra.mxu0 %v7092_v15 }
 0x15b   :  { %5105 = vmatprep.subr.bf16.mxu0 %v7108_v16 }
 0x160   :  { %5303 = vmatpush3.bf16.xpose.msra.mxu1 %v7143_v18 }
 0x161   :  { %5305 = vmatprep.subr.bf16.mxu1 %v7174_v55 }
 0x162   :  { %5107 = vmatpush3.bf16.xpose.msra.mxu0 %v7121_v21 }
 0x163   :  { %5109 = vmatprep.subr.bf16.mxu0 %v7136_v31 }
 0x16a   :  { %5111 = vmatpush3.bf16.xpose.msra.mxu0 %v7140_v7  ;;  %v121_v7 = vld [vmem:[#allocation5 + $0x48] sm:$0xff] }
 0x17d   :  { %v3955_v4 = vpop.f32.mrb[0].mxu1 }
 0x17e   :  { %v3956_v39 = vpop.f32.mrb[1].mxu1 }
 0x17f   :  { %v3957_v53 = vadd.f32 %v3956_v39, %v3955_v4  ;;  %v7152_v4 = vsub.f32 %v164_v61, %v2836_v36  ;;  %v7159_v39 = vsub.f32 %v117_v50, %v1936_v19  ;;  %v1987_v61 = vand.u32 4294901760, %v134_v29  ;;  %v150_v36 = vld [vmem:[#allocation5 + $0x130] sm:$0xff]  ;;  %v136_v50 = vld [vmem:[#allocation5 + $0xc0] sm:$0xff]  ;;  %v137_v19 = vld [vmem:[#allocation5 + $0xc8] sm:$0xff] }
 0x180   :  { %v2794_v6 = vand.u32 4294901760, %v150_v36 }
 0x181   :  { %8679 = vst [vmem:[#allocation37_spill] sm:$0xff] %v7152_v4  ;;  %8682 = vst [vmem:[#allocation41_spill] sm:$0xff] %v7159_v39  ;;  %v7168_v57 = vsub.f32 %v134_v29, %v1987_v61  ;;  %v7183_v29 = vsub.f32 %v119_v24, %v1942_v45  ;;  %v1948_v24 = vand.u32 4294901760, %v121_v7 }
 0x183   :  { %8686 = vst [vmem:[#allocation44_spill] sm:$0xff] %v7168_v57  ;;  %8693 = vst [vmem:[#allocation46_spill] sm:$0xff] %v7183_v29 }
 0x186   :  { %v3920_v38 = vpop.f32.mrb[0].mxu0 }
 0x187   :  { %v3921_v22 = vpop.f32.mrb[1].mxu0 }
 0x188   :  { %v3922_v14 = vadd.f32 %v3921_v22, %v3920_v38  ;;  %v151_v38 = vld [vmem:[#allocation5 + $0x138] sm:$0xff]  ;;  %v7166_v22 = vpack.c.bf16 %v1990_v60, %v1987_v61  ;;  %v7185_v61 = vsub.f32 %v150_v36, %v2794_v6  ;;  %v1996_v60 = vand.u32 4294901760, %v137_v19 }
 0x189   :  { %v2797_v58 = vand.u32 4294901760, %v151_v38 }
 0x18a   :  { %v7146_v52 = vadd.f32 %v3957_v53, %v3922_v14  ;;  %v118_v53 = vld [vmem:[#allocation5 + $0x30] sm:$0xff]  ;;  %8685 = vst [vmem:[#allocation43_spill] sm:$0xff] %v7166_v22  ;;  %v7172_v14 = vsub.f32 %v166_v49, %v2842_v17  ;;  %5113 = vmatprep.subr.bf16.mxu0 %v7166_v22  ;;  %8694 = vst [vmem:[#allocation47_spill] sm:$0xff] %v7185_v61  ;;  %v1993_v49 = vand.u32 4294901760, %v136_v50  ;;  %v2848_v17 = vand.u32 4294901760, %v168_v23  ;;  %v153_v22 = vld [vmem:[#allocation5 + $0x148] sm:$0xff] }
 0x18b   :  { %v1939_v43 = vand.u32 4294901760, %v118_v53  ;;  %v7189_v62 = vpack.c.bf16 %v2797_v58, %v2794_v6  ;;  %v7197_v31 = vsub.f32 %v137_v19, %v1996_v60  ;;  %v7206_v6 = vsub.f32 %v120_v63, %v1945_v2  ;;  %v138_v63 = vld [vmem:[#allocation5 + $0xd0] sm:$0xff] }
 0x18c   :  { %8688 = vst [vmem:[#allocation17_spill] sm:$0xff] %v7172_v14  ;;  %v7195_v36 = vpack.c.bf16 %v1996_v60, %v1993_v49  ;;  %v7199_v55 = vpack.c.bf16 %v2851_v11, %v2848_v17  ;;  %v7201_v32 = vsub.f32 %v168_v23, %v2848_v17  ;;  %v7212_v19 = vpack.c.bf16 %v1948_v24, %v1945_v2  ;;  %v123_v2 = vld [vmem:[#allocation5 + $0x58] sm:$0xff] }
 0x18d   :  { %v7178_v1 = vpack.c.bf16 %v1942_v45, %v1939_v43  ;;  %v7180_v18 = vsub.f32 %v118_v53, %v1939_v43  ;;  %8695 = vst [vmem:[#allocation48_spill] sm:$0xff] %v7189_v62  ;;  %v7191_v53 = vsub.f32 %v151_v38, %v2797_v58  ;;  %v7193_v43 = vsub.f32 %v136_v50, %v1993_v49  ;;  %v152_v45 = vld [vmem:[#allocation5 + $0x140] sm:$0xff] }
 0x18e   :  { %8698 = vst [vmem:[#allocation51_spill] sm:$0xff] %v7195_v36  ;;  %8699 = vst [vmem:[#allocation52_spill] sm:$0xff] %v7197_v31  ;;  %5307 = vmatpush3.bf16.xpose.msra.mxu1 %v7189_v62  ;;  %v7208_v38 = vsub.f32 %v121_v7, %v1948_v24  ;;  %v2800_v50 = vand.u32 4294901760, %v152_v45  ;;  %v2803_v58 = vand.u32 4294901760, %v153_v22  ;;  %v170_v7 = vld [vmem:[#allocation5 + $0x1d0] sm:$0xff] }
 0x18f   :  { %8691 = vst [vmem:[#allocation30_spill] sm:$0xff] %v7178_v1  ;;  %8692 = vst [vmem:[#allocation45_spill] sm:$0xff] %v7180_v18  ;;  %5115 = vmatpush3.bf16.xpose.msra.mxu0 %v7178_v1  ;;  %v7204_v1 = vsub.f32 %v169_v26, %v2851_v11  ;;  %5309 = vmatprep.subr.bf16.mxu1 %v7199_v55  ;;  %v139_v11 = vld [vmem:[#allocation5 + $0xd8] sm:$0xff]  ;;  %v1999_v26 = vand.u32 4294901760, %v138_v63  ;;  %v122_v62 = vld [vmem:[#allocation5 + $0x50] sm:$0xff] }
 0x190   :  { %8696 = vst [vmem:[#allocation49_spill] sm:$0xff] %v7191_v53  ;;  %8697 = vst [vmem:[#allocation50_spill] sm:$0xff] %v7193_v43  ;;  %5117 = vmatprep.subr.bf16.mxu0 %v7195_v36  ;;  %v7214_v49 = vsub.f32 %v152_v45, %v2800_v50  ;;  %v7216_v23 = vsub.f32 %v153_v22, %v2803_v58  ;;  %v7218_v60 = vpack.c.bf16 %v2803_v58, %v2800_v50  ;;  %v155_v50 = vld [vmem:[#allocation5 + $0x158] sm:$0xff]  ;;  %v158_v18 = vld [vmem:[#allocation5 + $0x170] sm:$0xff] }
 0x191   :  { %8700 = vst [vmem:[#allocation53_spill] sm:$0xff] %v7199_v55  ;;  %8701 = vst [vmem:[#allocation54_spill] sm:$0xff] %v7201_v32  ;;  %v2002_v17 = vand.u32 4294901760, %v139_v11  ;;  %v171_v55 = vld [vmem:[#allocation5 + $0x1d8] sm:$0xff]  ;;  %v2854_v36 = vand.u32 4294901760, %v170_v7  ;;  %v1951_v21 = vand.u32 4294901760, %v122_v62  ;;  %v7224_v48 = vsub.f32 %v138_v63, %v1999_v26 }
 0x192   :  { %8702 = vst [vmem:[#allocation55_spill] sm:$0xff] %v7204_v1  ;;  %8703 = vst [vmem:[#allocation56_spill] sm:$0xff] %v7206_v6  ;;  %v2857_v45 = vand.u32 4294901760, %v171_v55  ;;  %v1954_v22 = vand.u32 4294901760, %v123_v2  ;;  %v2809_v35 = vand.u32 4294901760, %v155_v50  ;;  %v127_v53 = vld [vmem:[#allocation5 + $0x78] sm:$0xff] }
 0x193   :  { %8704 = vst [vmem:[#allocation57_spill] sm:$0xff] %v7208_v38  ;;  %8705 = vst [vmem:[#allocation58_spill] sm:$0xff] %v7212_v19  ;;  %v7222_v16 = vpack.c.bf16 %v2002_v17, %v1999_v26  ;;  %v7237_v6 = vsub.f32 %v122_v62, %v1951_v21  ;;  %v173_v62 = vld [vmem:[#allocation5 + $0x1e8] sm:$0xff] }
 0x194   :  { %8706 = vst [vmem:[#allocation59_spill] sm:$0xff] %v7214_v49  ;;  %8707 = vst [vmem:[#allocation60_spill] sm:$0xff] %v7216_v23  ;;  %v7228_v46 = vpack.c.bf16 %v2857_v45, %v2854_v36  ;;  %v7231_v23 = vsub.f32 %v170_v7, %v2854_v36  ;;  %v7233_v49 = vsub.f32 %v171_v55, %v2857_v45  ;;  %v140_v36 = vld [vmem:[#allocation5 + $0xe0] sm:$0xff]  ;;  %v141_v7 = vld [vmem:[#allocation5 + $0xe8] sm:$0xff] }
 0x195   :  { %8708 = vst [vmem:[#allocation61_spill] sm:$0xff] %v7218_v60  ;;  %8709 = vst [vmem:[#allocation62_spill] sm:$0xff] %v7222_v16  ;;  %v7235_v38 = vpack.c.bf16 %v1954_v22, %v1951_v21  ;;  %v7240_v1 = vsub.f32 %v123_v2, %v1954_v22  ;;  %v7246_v26 = vsub.f32 %v155_v50, %v2809_v35  ;;  %v172_v55 = vld [vmem:[#allocation5 + $0x1e0] sm:$0xff]  ;;  %v2008_v21 = vand.u32 4294901760, %v141_v7  ;;  %v125_v2 = vld [vmem:[#allocation5 + $0x68] sm:$0xff] }
 0x196   :  { %5311 = vmatpush3.bf16.xpose.msra.mxu1 %v7218_v60  ;;  %8710 = vst [vmem:[#allocation63_spill] sm:$0xff] %v7224_v48  ;;  %v7226_v60 = vsub.f32 %v139_v11, %v2002_v17  ;;  %8712 = vst [vmem:[#allocation65_spill] sm:$0xff] %v7228_v46  ;;  %v2005_v17 = vand.u32 4294901760, %v140_v36  ;;  %v124_v45 = vld [vmem:[#allocation5 + $0x60] sm:$0xff]  ;;  %v2863_v22 = vand.u32 4294901760, %v173_v62  ;;  %v174_v48 = vld [vmem:[#allocation5 + $0x1f0] sm:$0xff] }
 0x197   :  { %5119 = vmatpush3.bf16.xpose.msra.mxu0 %v7212_v19  ;;  %v2806_v19 = vand.u32 4294901760, %v154_v13  ;;  %8713 = vst [vmem:[#allocation66_spill] sm:$0xff] %v7231_v23  ;;  %8714 = vst [vmem:[#allocation67_spill] sm:$0xff] %v7233_v49  ;;  %5313 = vmatprep.subr.bf16.mxu1 %v7228_v46  ;;  %v1960_v46 = vand.u32 4294901760, %v125_v2  ;;  %v142_v23 = vld [vmem:[#allocation5 + $0xf0] sm:$0xff]  ;;  %v7273_v14 = vsub.f32 %v141_v7, %v2008_v21 }
 0x198   :  { %8711 = vst [vmem:[#allocation64_spill] sm:$0xff] %v7226_v60  ;;  %5121 = vmatprep.subr.bf16.mxu0 %v7222_v16  ;;  %8715 = vst [vmem:[#allocation68_spill] sm:$0xff] %v7235_v38  ;;  %v7250_v50 = vpack.c.bf16 %v2008_v21, %v2005_v17  ;;  %v143_v60 = vld [vmem:[#allocation5 + $0xf8] sm:$0xff]  ;;  %v2011_v31 = vand.u32 4294901760, %v142_v23  ;;  %v7277_v57 = vsub.f32 %v173_v62, %v2863_v22 }
 0x199   :  { %8716 = vst [vmem:[#allocation69_spill] sm:$0xff] %v7237_v6  ;;  %8717 = vst [vmem:[#allocation70_spill] sm:$0xff] %v7240_v1  ;;  %v7242_v63 = vpack.c.bf16 %v2809_v35, %v2806_v19  ;;  %v7244_v11 = vsub.f32 %v154_v13, %v2806_v19  ;;  %v156_v13 = vld [vmem:[#allocation5 + $0x160] sm:$0xff]  ;;  %v157_v19 = vld [vmem:[#allocation5 + $0x168] sm:$0xff]  ;;  %v2014_v43 = vand.u32 4294901760, %v143_v60  ;;  %v7282_v40 = vsub.f32 %v125_v2, %v1960_v46 }
 0x19a   :  { %8720 = vst [vmem:[#allocation73_spill] sm:$0xff] %v7246_v26  ;;  %8721 = vst [vmem:[#allocation74_spill] sm:$0xff] %v7250_v50  ;;  %v2815_v16 = vand.u32 4294901760, %v157_v19 }
 0x19b   :  { %8718 = vst [vmem:[#allocation71_spill] sm:$0xff] %v7242_v63  ;;  %8719 = vst [vmem:[#allocation72_spill] sm:$0xff] %v7244_v11  ;;  %v7291_v7 = vsub.f32 %v143_v60, %v2014_v43 }
 0x19c   :  { %8729 = vst [vmem:[#allocation82_spill] sm:$0xff] %v7273_v14  ;;  %v7286_v10 = vsub.f32 %v157_v19, %v2815_v16  ;;  %v8314_v19 = vand.u32 4294901760, %v7126_v59 }
 0x19d   :  { %v4025_v24 = vpop.f32.mrb[2].mxu1 }
 0x19e   :  { %v4026_v58 = vpop.f32.mrb[3].mxu1  ;;  %5315 = vmatpush3.bf16.xpose.msra.mxu1 %v7242_v63 }
 0x19f   :  { %v4027_v15 = vadd.f32 %v4026_v58, %v4025_v24  ;;  %5123 = vmatpush3.bf16.xpose.msra.mxu0 %v7235_v38  ;;  %v2860_v24 = vand.u32 4294901760, %v172_v55  ;;  %v1957_v58 = vand.u32 4294901760, %v124_v45  ;;  %v2812_v38 = vand.u32 4294901760, %v156_v13 }
 0x1a0   :  { %5125 = vmatprep.subr.bf16.mxu0 %v7250_v50  ;;  %v126_v50 = vld [vmem:[#allocation5 + $0x70] sm:$0xff] }
 0x1a1   :  { %v7252_v11 = vpack.c.bf16 %v2863_v22, %v2860_v24  ;;  %v7254_v63 = vpack.c.bf16 %v1960_v46, %v1957_v58  ;;  %v7257_v6 = vpack.c.bf16 %v2815_v16, %v2812_v38  ;;  %v1963_v29 = vand.u32 4294901760, %v126_v50 }
 0x1a2   :  { %v7275_v3 = vsub.f32 %v172_v55, %v2860_v24  ;;  %v7280_v12 = vsub.f32 %v124_v45, %v1957_v58  ;;  %v7284_v39 = vsub.f32 %v156_v13, %v2812_v38  ;;  %v8312_v58 = vand.u32 4294901760, %v7123_v8 }
 0x1a3   :  { %8722 = vst [vmem:[#allocation75_spill] sm:$0xff] %v7252_v11  ;;  %8723 = vst [vmem:[#allocation76_spill] sm:$0xff] %v7254_v63  ;;  %5317 = vmatprep.subr.bf16.mxu1 %v7252_v11  ;;  %v1966_v11 = vand.u32 4294901760, %v127_v53  ;;  %v7298_v21 = vsub.f32 %v126_v50, %v1963_v29 }
 0x1a4   :  { %8724 = vst [vmem:[#allocation77_spill] sm:$0xff] %v7257_v6  ;;  %8730 = vst [vmem:[#allocation83_spill] sm:$0xff] %v7275_v3 }
 0x1a5   :  { %v7269_v0 = vpack.c.bf16 %v1966_v11, %v1963_v29  ;;  %8731 = vst [vmem:[#allocation84_spill] sm:$0xff] %v7298_v21  ;;  %v7300_v46 = vsub.f32 %v127_v53, %v1966_v11 }
 0x1a6   :  { %v3990_v35 = vpop.f32.mrb[2].mxu0  ;;  %5319 = vmatpush3.bf16.xpose.msra.mxu1 %v7257_v6  ;;  %v7271_v6 = vsub.f32 %v140_v36, %v2005_v17  ;;  %v7289_v36 = vsub.f32 %v142_v23, %v2011_v31 }
 0x1a7   :  { %v3991_v26 = vpop.f32.mrb[3].mxu0  ;;  %5127 = vmatpush3.bf16.xpose.msra.mxu0 %v7254_v63  ;;  %8727 = vst [vmem:[#allocation80_spill] sm:$0xff] %v7269_v0  ;;  %8732 = vst [vmem:[#allocation85_spill] sm:$0xff] %v7300_v46 }
 0x1a8   :  { %v3992_v1 = vadd.f32 %v3991_v26, %v3990_v35  ;;  %v175_v26 = vld [vmem:[#allocation5 + $0x1f8] sm:$0xff]  ;;  %v2866_v35 = vand.u32 4294901760, %v174_v48  ;;  %8728 = vst [vmem:[#allocation81_spill] sm:$0xff] %v7271_v6 }
 0x1a9   :  { %v2869_v61 = vand.u32 4294901760, %v175_v26 }
 0x1aa   :  { %v675_v49 = vadd.f32 %v3992_v1, %v7146_v52  ;;  %v159_v1 = vld [vmem:[#allocation5 + $0x178] sm:$0xff]  ;;  %v7265_v52 = vpack.c.bf16 %v2014_v43, %v2011_v31  ;;  %v7293_v55 = vsub.f32 %v174_v48, %v2866_v35  ;;  %v8324_v31 = vand.u32 4294901760, %v7082_v54 }
 0x1ab   :  { %v7267_v63 = vpack.c.bf16 %v2869_v61, %v2866_v35  ;;  %v7295_v17 = vsub.f32 %v175_v26, %v2869_v61  ;;  %v8323_v43 = vand.u32 4294901760, %v7084_v51  ;;  %v8315_v48 = vand.u32 4294901760, %v7086_v28 }
 0x1ac   :  { %v7262_v32 = vadd.f32 %v4027_v15, %v675_v49  ;;  %8725 = vst [vmem:[#allocation78_spill] sm:$0xff] %v7265_v52  ;;  %v2818_v15 = vand.u32 4294901760, %v158_v18  ;;  %v2821_v49 = vand.u32 4294901760, %v159_v1  ;;  %5129 = vmatprep.subr.bf16.mxu0 %v7265_v52  ;;  %v8313_v61 = vand.u32 4294901760, %v7090_v41  ;;  %v8744_v52 = vld [vmem:[#allocation15_spill] sm:$0xff] }
 0x1ad   :  { %8726 = vst [vmem:[#allocation79_spill] sm:$0xff] %v7267_v63  ;;  %5321 = vmatprep.subr.bf16.mxu1 %v7267_v63  ;;  %v2144_v29 = vsub.f32 %v7082_v54, %v8324_v31  ;;  %v2999_v53 = vsub.f32 %v7086_v28, %v8315_v48  ;;  %v2046_v26 = vsub.f32 %v7123_v8, %v8312_v58  ;;  %v8745_v8 = vld [vmem:[#allocation42_spill] sm:$0xff] }
 0x1ae   :  { %v7302_v38 = vpack.c.bf16 %v2821_v49, %v2818_v15  ;;  %v7304_v16 = vsub.f32 %v158_v18, %v2818_v15  ;;  %v7306_v62 = vsub.f32 %v159_v1, %v2821_v49  ;;  %v2151_v18 = vsub.f32 %v7084_v51, %v8323_v43 }
 0x1af   :  { %5131 = vmatpush3.bf16.xpose.msra.mxu0 %v7269_v0  ;;  %v3006_v23 = vsub.f32 %v7090_v41, %v8313_v61  ;;  %v2145_v60 = vand.u32 4294901760, %v2144_v29  ;;  %v3000_v24 = vand.u32 4294901760, %v2999_v53  ;;  %v2053_v1 = vsub.f32 %v7126_v59, %v8314_v19 }
 0x1b0   :  { %8733 = vst [vmem:[#allocation86_spill] sm:$0xff] %v7302_v38  ;;  %8734 = vst [vmem:[#allocation87_spill] sm:$0xff] %v7304_v16  ;;  %5323 = vmatpush3.bf16.xpose.msra.mxu1 %v7302_v38  ;;  %v2152_v11 = vand.u32 4294901760, %v2151_v18  ;;  %v2047_v15 = vand.u32 4294901760, %v2046_v26 }
 0x1b1   :  { %8735 = vst [vmem:[#allocation88_spill] sm:$0xff] %v7306_v62  ;;  %v3007_v45 = vand.u32 4294901760, %v3006_v23  ;;  %v2054_v49 = vand.u32 4294901760, %v2053_v1 }
 0x1b2   :  { %v5132_v2 = vpack.c.bf16 %v2152_v11, %v2145_v60 }
 0x1b3   :  { %v5324_v22 = vpack.c.bf16 %v3007_v45, %v3000_v24  ;;  %v7333_v29 = vpack.c.bf16 %v2054_v49, %v2047_v15 }
 0x1b4   :  { %5133 = vmatprep.subr.bf16.mxu0 %v5132_v2 }
 0x1b5   :  { %5325 = vmatprep.subr.bf16.mxu1 %v5324_v22 }
 0x1bd   :  { %v4095_v13 = vpop.f32.mrb[4].mxu1 }
 0x1be   :  { %v4096_v50 = vpop.f32.mrb[5].mxu1 }
 0x1bf   :  { %v4097_v35 = vadd.f32 %v4096_v50, %v4095_v13 }
 0x1c6   :  { %v4060_v18 = vpop.f32.mrb[4].mxu0 }
 0x1c7   :  { %v4061_v53 = vpop.f32.mrb[5].mxu0 }
 0x1c8   :  { %v4062_v23 = vadd.f32 %v4061_v53, %v4060_v18 }
 0x1ca   :  { %v951_v60 = vadd.f32 %v4062_v23, %v7262_v32 }
 0x1cc   :  { %v1055_v11 = vadd.f32 %v4097_v35, %v951_v60 }
 0x1dd   :  { %v4165_v24 = vpop.f32.mrb[6].mxu1 }
 0x1de   :  { %v4166_v45 = vpop.f32.mrb[7].mxu1 }
 0x1df   :  { %v4167_v2 = vadd.f32 %v4166_v45, %v4165_v24 }
 0x1e7   :  { %v4130_v22 = vpop.f32.mrb[6].mxu0 }
 0x1e8   :  { %v4131_v58 = vpop.f32.mrb[7].mxu0 }
 0x1e9   :  { %v4132_v13 = vadd.f32 %v4131_v58, %v4130_v22  ;;  %v8321_v58 = vand.u32 4294901760, %v7094_v9  ;;  %v8318_v22 = vand.u32 4294901760, %v7103_v27 }
 0x1eb   :  { %v1167_v50 = vadd.f32 %v4132_v13, %v1055_v11  ;;  %v8316_v13 = vand.u32 4294901760, %v7105_v44 }
 0x1ed   :  { %v1399_v61 = vadd.f32 %v4167_v2, %v1167_v50  ;;  %v8319_v2 = vand.u32 4294901760, %v7097_v37 }
 0x1fd   :  { %v4235_v1 = vpop.f32.mrb[8].mxu1 }
 0x1fe   :  { %v4236_v15 = vpop.f32.mrb[9].mxu1 }
 0x1ff   :  { %v4237_v49 = vadd.f32 %v4236_v15, %v4235_v1  ;;  %v8322_v1 = vand.u32 4294901760, %v7117_v42 }
 0x207   :  { %v4200_v19 = vpop.f32.mrb[8].mxu0 }
 0x208   :  { %v4201_v48 = vpop.f32.mrb[9].mxu0 }
 0x209   :  { %v4202_v18 = vadd.f32 %v4201_v48, %v4200_v19  ;;  %v2032_v48 = vsub.f32 %v7094_v9, %v8321_v58  ;;  %v8320_v19 = vand.u32 4294901760, %v7112_v20 }
 0x20b   :  { %v1537_v53 = vadd.f32 %v4202_v18, %v1399_v61  ;;  %v8317_v61 = vand.u32 4294901760, %v7110_v34  ;;  %v2039_v18 = vsub.f32 %v7097_v37, %v8319_v2 }
 0x20d   :  { %v1645_v32 = vadd.f32 %v4237_v49, %v1537_v53  ;;  %v8325_v49 = vand.u32 4294901760, %v7119_v33  ;;  %v2887_v53 = vsub.f32 %v7103_v27, %v8318_v22 }
 0x20f   :  { %v2888_v22 = vand.u32 4294901760, %v2887_v53 }
 0x21d   :  { %v4305_v35 = vpop.f32.mrb[10].mxu1 }
 0x21e   :  { %v4306_v23 = vpop.f32.mrb[11].mxu1 }
 0x21f   :  { %v4307_v60 = vadd.f32 %v4306_v23, %v4305_v35  ;;  %v2033_v23 = vand.u32 4294901760, %v2032_v48  ;;  %v8330_v48 = vand.u32 4294901760, %v7130_v25 }
 0x221   :  { %v2901_v53 = vsub.f32 %v7130_v25, %v8330_v48  ;;  %v8741_v48 = vand.u32 4294901760, %v7155_v5 }
 0x223   :  { %v3034_v63 = vsub.f32 %v7155_v5, %v8741_v48 }
 0x227   :  { %v4270_v24 = vpop.f32.mrb[10].mxu0 }
 0x228   :  { %v4271_v45 = vpop.f32.mrb[11].mxu0 }
 0x229   :  { %v4272_v11 = vadd.f32 %v4271_v45, %v4270_v24  ;;  %v2165_v24 = vsub.f32 %v7112_v20, %v8320_v19  ;;  %v3013_v45 = vsub.f32 %v7117_v42, %v8322_v1 }
 0x22b   :  { %v1813_v50 = vadd.f32 %v4272_v11, %v1645_v32  ;;  %v2894_v32 = vsub.f32 %v7105_v44, %v8316_v13  ;;  %v3014_v26 = vand.u32 4294901760, %v3013_v45  ;;  %v8739_v45 = vand.u32 4294901760, %v7150_v56 }
 0x22d   :  { %v1917_v15 = vadd.f32 %v4307_v60, %v1813_v50  ;;  %v2158_v60 = vsub.f32 %v7110_v34, %v8317_v61  ;;  %v3020_v50 = vsub.f32 %v7119_v33, %v8325_v49  ;;  %v2040_v61 = vand.u32 4294901760, %v2039_v18 }
 0x22e   :  { %v2895_v2 = vand.u32 4294901760, %v2894_v32  ;;  %v2166_v49 = vand.u32 4294901760, %v2165_v24  ;;  %v8737_v32 = vand.u32 4294901760, %v7132_v30  ;;  %v2179_v43 = vsub.f32 %v7150_v56, %v8739_v45 }
 0x22f   :  { %v7358_v35 = vand.u32 4294901760, %v1917_v15  ;;  %v2159_v31 = vand.u32 4294901760, %v2158_v60  ;;  %v3021_v18 = vand.u32 4294901760, %v3020_v50  ;;  %v5134_v1 = vpack.c.bf16 %v2040_v61, %v2033_v23 }
 0x230   :  { %v2908_v19 = vsub.f32 %v7132_v30, %v8737_v32  ;;  %v5326_v38 = vpack.c.bf16 %v2895_v2, %v2888_v22  ;;  %v8740_v50 = vand.u32 4294901760, %v7152_v4  ;;  %v2902_v61 = vand.u32 4294901760, %v2901_v53  ;;  %v8743_v32 = vld [vmem:[#allocation41_spill] sm:$0xff] }
 0x231   :  { %v7370_v11 = vsub.f32 %v1917_v15, %v7358_v35  ;;  %v8738_v15 = vand.u32 4294901760, %v7148_v47  ;;  %v5136_v2 = vpack.c.bf16 %v2166_v49, %v2159_v31  ;;  %v5328_v22 = vpack.c.bf16 %v3021_v18, %v3014_v26  ;;  %v8746_v31 = vld [vmem:[#allocation44_spill] sm:$0xff]  ;;  %v8748_v18 = vld [vmem:[#allocation17_spill] sm:$0xff] }
 0x232   :  { %v3027_v0 = vsub.f32 %v7152_v4, %v8740_v50  ;;  %v2909_v23 = vand.u32 4294901760, %v2908_v19  ;;  %v8346_v45 = vand.u32 4294901760, %v8743_v32  ;;  %v8348_v50 = vand.u32 4294901760, %v8745_v8  ;;  %v8747_v19 = vld [vmem:[#allocation16_spill] sm:$0xff] }
 0x233   :  { %v7379_v58 = vand.u32 4294901760, %v7370_v11  ;;  %v2172_v60 = vsub.f32 %v7148_v47, %v8738_v15  ;;  %v2180_v48 = vand.u32 4294901760, %v2179_v43  ;;  %v3035_v4 = vand.u32 4294901760, %v3034_v63 }
 0x234   :  { %v3028_v5 = vand.u32 4294901760, %v3027_v0  ;;  %v8349_v26 = vand.u32 4294901760, %v8746_v31  ;;  %v8353_v49 = vand.u32 4294901760, %v8747_v19  ;;  %v8354_v53 = vand.u32 4294901760, %v8748_v18 }
 0x235   :  { %8736 = vst [vmem:[#allocation89_spill] sm:$0xff] %v7379_v58  ;;  %v2020_v13 = vsub.f32 %v7370_v11, %v7379_v58  ;;  %v2173_v59 = vand.u32 4294901760, %v2172_v60  ;;  %v2067_v0 = vsub.f32 %v8743_v32, %v8346_v45  ;;  %v8750_v63 = vand.u32 4294901760, %v8744_v52 }
 0x236   :  { %v5330_v60 = vpack.c.bf16 %v2909_v23, %v2902_v61  ;;  %v3041_v45 = vsub.f32 %v8748_v18, %v8354_v53  ;;  %v8756_v53 = vld [vmem:[#allocation50_spill] sm:$0xff]  ;;  %v8759_v61 = vld [vmem:[#allocation55_spill] sm:$0xff] }
 0x237   :  { %v2021_v24 = vand.u32 4294901760, %v2020_v13  ;;  %v8742_v13 = vld [vmem:[#allocation39_spill] sm:$0xff]  ;;  %v2915_v43 = vsub.f32 %v8744_v52, %v8750_v63  ;;  %v5140_v58 = vpack.c.bf16 %v2180_v48, %v2173_v59  ;;  %v8753_v59 = vld [vmem:[#allocation46_spill] sm:$0xff]  ;;  %v8755_v48 = vld [vmem:[#allocation49_spill] sm:$0xff]  ;;  %v8363_v18 = vand.u32 4294901760, %v8756_v53 }
 0x238   :  { %v8345_v15 = vand.u32 4294901760, %v8742_v13  ;;  %v8763_v56 = vand.u32 4294901760, %v8755_v48 }
 0x239   :  { %4340 = vmatprep.mubr.f32.mxu0 %v2021_v24  ;;  %4544 = vmatprep.mubr.f32.mxu1 %v2021_v24  ;;  %v2916_v32 = vand.u32 4294901760, %v2915_v43 }
 0x23a   :  { %4341 = vmatmul.mubr.f32.vlgmr.msra.gmra.mrb[12].mxu0 %v2021_v24  ;;  %4545 = vmatmul.mubr.f32.vlgmr.msra.gmra.mrb[12].mxu1 %v2021_v24  ;;  %v8749_v24 = vld [vmem:[#allocation26_spill] sm:$0xff] }
 0x23b   :  { %5135 = vmatpush3.bf16.xpose.msra.mxu0 %v5134_v1  ;;  %5327 = vmatpush3.bf16.xpose.msra.mxu1 %v5326_v38  ;;  %v2060_v38 = vsub.f32 %v8742_v13, %v8345_v15  ;;  %v2922_v1 = vsub.f32 %v8745_v8, %v8348_v50  ;;  %v2193_v15 = vsub.f32 %v8747_v19, %v8353_v49  ;;  %v8751_v63 = vand.u32 4294901760, %v8749_v24  ;;  %v8752_v50 = vld [vmem:[#allocation45_spill] sm:$0xff]  ;;  %v8757_v19 = vld [vmem:[#allocation52_spill] sm:$0xff] }
 0x23c   :  { %4374 = vmatprep.mubr.f32.mxu0 %v7358_v35  ;;  %4578 = vmatprep.mubr.f32.mxu1 %v7358_v35  ;;  %v2068_v8 = vand.u32 4294901760, %v2067_v0  ;;  %v8367_v13 = vand.u32 4294901760, %v8757_v19  ;;  %v8760_v0 = vand.u32 4294901760, %v8752_v50 }
 0x23d   :  { %5137 = vmatprep.subr.bf16.mxu0 %v5136_v2  ;;  %5329 = vmatprep.subr.bf16.mxu1 %v5328_v22  ;;  %v5332_v2 = vpack.c.bf16 %v3035_v4, %v3028_v5  ;;  %v2186_v22 = vsub.f32 %v8746_v31, %v8349_v26  ;;  %v3048_v52 = vsub.f32 %v8749_v24, %v8751_v63  ;;  %v8754_v5 = vld [vmem:[#allocation47_spill] sm:$0xff]  ;;  %v2061_v31 = vand.u32 4294901760, %v2060_v38  ;;  %v8758_v63 = vld [vmem:[#allocation54_spill] sm:$0xff] }
 0x23e   :  { %v2923_v49 = vand.u32 4294901760, %v2922_v1  ;;  %v2194_v4 = vand.u32 4294901760, %v2193_v15  ;;  %v3042_v26 = vand.u32 4294901760, %v3041_v45  ;;  %v2074_v43 = vsub.f32 %v8752_v50, %v8760_v0  ;;  %v8768_v50 = vld [vmem:[#allocation59_spill] sm:$0xff] }
 0x23f   :  { %v2187_v23 = vand.u32 4294901760, %v2186_v22  ;;  %v3049_v38 = vand.u32 4294901760, %v3048_v52  ;;  %v2200_v52 = vsub.f32 %v8756_v53, %v8363_v18  ;;  %v2207_v45 = vsub.f32 %v8757_v19, %v8367_v13  ;;  %v8767_v53 = vld [vmem:[#allocation57_spill] sm:$0xff]  ;;  %v8769_v19 = vld [vmem:[#allocation60_spill] sm:$0xff] }
 0x240   :  { %v5334_v15 = vpack.c.bf16 %v2923_v49, %v2916_v32  ;;  %v8764_v22 = vand.u32 4294901760, %v8758_v63  ;;  %v8376_v13 = vand.u32 4294901760, %v8768_v50 }
 0x242   :  { %v3055_v0 = vsub.f32 %v8758_v63, %v8764_v22  ;;  %v2201_v22 = vand.u32 4294901760, %v2200_v52  ;;  %v2208_v63 = vand.u32 4294901760, %v2207_v45 }
 0x243   :  { %5139 = vmatpush3.bf16.xpose.msra.mxu0 %v7333_v29  ;;  %5331 = vmatpush3.bf16.xpose.msra.mxu1 %v5330_v60  ;;  %v8761_v29 = vand.u32 4294901760, %v8753_v59  ;;  %v8762_v60 = vand.u32 4294901760, %v8754_v5 }
 0x244   :  { %5141 = vmatprep.subr.bf16.mxu0 %v5140_v58  ;;  %5333 = vmatprep.subr.bf16.mxu1 %v5332_v2  ;;  %v2936_v58 = vsub.f32 %v8755_v48, %v8763_v56  ;;  %v5142_v2 = vpack.c.bf16 %v2068_v8, %v2061_v31  ;;  %v5336_v56 = vpack.c.bf16 %v3049_v38, %v3042_v26  ;;  %v2075_v8 = vand.u32 4294901760, %v2074_v43  ;;  %v8766_v48 = vld [vmem:[#allocation56_spill] sm:$0xff]  ;;  %v8770_v26 = vld [vmem:[#allocation63_spill] sm:$0xff]  ;;  %v8772_v38 = vld [vmem:[#allocation66_spill] sm:$0xff] }
 0x245   :  { %v2081_v1 = vsub.f32 %v8753_v59, %v8761_v29  ;;  %v2929_v24 = vsub.f32 %v8754_v5, %v8762_v60  ;;  %v8765_v29 = vand.u32 4294901760, %v8759_v61  ;;  %v5144_v5 = vpack.c.bf16 %v2194_v4, %v2187_v23 }
 0x246   :  { %v2937_v49 = vand.u32 4294901760, %v2936_v58  ;;  %v8374_v18 = vand.u32 4294901760, %v8766_v48  ;;  %v8375_v59 = vand.u32 4294901760, %v8767_v53  ;;  %v3056_v30 = vand.u32 4294901760, %v3055_v0 }
 0x247   :  { %v3062_v60 = vsub.f32 %v8759_v61, %v8765_v29  ;;  %v2082_v32 = vand.u32 4294901760, %v2081_v1  ;;  %v2930_v31 = vand.u32 4294901760, %v2929_v24  ;;  %v8377_v4 = vand.u32 4294901760, %v8770_v26  ;;  %v8771_v24 = vld [vmem:[#allocation64_spill] sm:$0xff]  ;;  %v8773_v1 = vld [vmem:[#allocation67_spill] sm:$0xff] }
 0x248   :  { %v8380_v23 = vand.u32 4294901760, %v8771_v24  ;;  %v8381_v43 = vand.u32 4294901760, %v8772_v38  ;;  %v8383_v58 = vand.u32 4294901760, %v8773_v1  ;;  %v2088_v47 = vsub.f32 %v8766_v48, %v8374_v18 }
 0x249   :  { %v3063_v29 = vand.u32 4294901760, %v3062_v60  ;;  %v5146_v45 = vpack.c.bf16 %v2082_v32, %v2075_v8  ;;  %v5338_v0 = vpack.c.bf16 %v2937_v49, %v2930_v31  ;;  %v5148_v60 = vpack.c.bf16 %v2208_v63, %v2201_v22  ;;  %v8775_v8 = vld [vmem:[#allocation69_spill] sm:$0xff]  ;;  %v8776_v63 = vld [vmem:[#allocation70_spill] sm:$0xff]  ;;  %v8777_v31 = vld [vmem:[#allocation72_spill] sm:$0xff] }
 0x24a   :  { %v2214_v18 = vsub.f32 %v8770_v26, %v8377_v4  ;;  %v8778_v22 = vld [vmem:[#allocation73_spill] sm:$0xff]  ;;  %v2089_v4 = vand.u32 4294901760, %v2088_v47  ;;  %v8779_v47 = vand.u32 4294901760, %v8775_v8 }
 0x24b   :  { %5143 = vmatpush3.bf16.xpose.msra.mxu0 %v5142_v2  ;;  %5335 = vmatpush3.bf16.xpose.msra.mxu1 %v5334_v15  ;;  %v2095_v2 = vsub.f32 %v8767_v53, %v8375_v59  ;;  %v8774_v15 = vand.u32 4294901760, %v8769_v19  ;;  %v2221_v59 = vsub.f32 %v8771_v24, %v8380_v23  ;;  %v8782_v32 = vand.u32 4294901760, %v8778_v22 }
 0x24c   :  { %5145 = vmatprep.subr.bf16.mxu0 %v5144_v5  ;;  %5337 = vmatprep.subr.bf16.mxu1 %v5336_v56  ;;  %v2943_v5 = vsub.f32 %v8768_v50, %v8376_v13  ;;  %v5340_v56 = vpack.c.bf16 %v3063_v29, %v3056_v30  ;;  %v3069_v13 = vsub.f32 %v8772_v38, %v8381_v43  ;;  %v8385_v43 = vand.u32 4294901760, %v7271_v6 }
 0x24d   :  { %v2950_v52 = vsub.f32 %v8769_v19, %v8774_v15  ;;  %v3076_v15 = vsub.f32 %v8773_v1, %v8383_v58  ;;  %v2096_v26 = vand.u32 4294901760, %v2095_v2  ;;  %v8388_v38 = vand.u32 4294901760, %v7273_v14 }
 0x24e   :  { %v2944_v19 = vand.u32 4294901760, %v2943_v5  ;;  %v8391_v58 = vand.u32 4294901760, %v7275_v3  ;;  %v2215_v30 = vand.u32 4294901760, %v2214_v18  ;;  %v2222_v49 = vand.u32 4294901760, %v2221_v59 }
 0x24f   :  { %v2951_v23 = vand.u32 4294901760, %v2950_v52  ;;  %v3070_v1 = vand.u32 4294901760, %v3069_v13  ;;  %v3077_v29 = vand.u32 4294901760, %v3076_v15  ;;  %v2102_v2 = vsub.f32 %v8775_v8, %v8779_v47 }
 0x250   :  { %v8780_v5 = vand.u32 4294901760, %v8776_v63  ;;  %v5150_v18 = vpack.c.bf16 %v2096_v26, %v2089_v4  ;;  %v2228_v13 = vsub.f32 %v7271_v6, %v8385_v43  ;;  %v3083_v15 = vsub.f32 %v7275_v3, %v8391_v58 }
 0x251   :  { %v5342_v59 = vpack.c.bf16 %v2951_v23, %v2944_v19  ;;  %v8783_v47 = vand.u32 4294901760, %v7277_v57  ;;  %v2103_v26 = vand.u32 4294901760, %v2102_v2  ;;  %v8406_v43 = vand.u32 4294901760, %v7280_v12 }
 0x252   :  { %v2109_v52 = vsub.f32 %v8776_v63, %v8780_v5  ;;  %v8405_v6 = vand.u32 4294901760, %v7282_v40  ;;  %v2229_v58 = vand.u32 4294901760, %v2228_v13 }
 0x253   :  { %5147 = vmatpush3.bf16.xpose.msra.mxu0 %v5146_v45  ;;  %5339 = vmatpush3.bf16.xpose.msra.mxu1 %v5338_v0  ;;  %v8781_v45 = vand.u32 4294901760, %v8777_v31  ;;  %v3090_v5 = vsub.f32 %v7277_v57, %v8783_v47  ;;  %v2116_v2 = vsub.f32 %v7280_v12, %v8406_v43 }
 0x254   :  { %5149 = vmatprep.subr.bf16.mxu0 %v5148_v60  ;;  %5341 = vmatprep.subr.bf16.mxu1 %v5340_v56  ;;  %v2964_v60 = vsub.f32 %v8778_v22, %v8782_v32  ;;  %v2235_v56 = vsub.f32 %v7273_v14, %v8388_v38  ;;  %v5344_v32 = vpack.c.bf16 %v3077_v29, %v3070_v1  ;;  %v2110_v19 = vand.u32 4294901760, %v2109_v52 }
 0x255   :  { %v2957_v0 = vsub.f32 %v8777_v31, %v8781_v45  ;;  %v5152_v45 = vpack.c.bf16 %v2222_v49, %v2215_v30  ;;  %v8404_v38 = vand.u32 4294901760, %v7284_v39  ;;  %v8403_v14 = vand.u32 4294901760, %v7286_v10 }
 0x256   :  { %v2965_v23 = vand.u32 4294901760, %v2964_v60  ;;  %v2236_v3 = vand.u32 4294901760, %v2235_v56  ;;  %v3084_v22 = vand.u32 4294901760, %v3083_v15  ;;  %v3091_v47 = vand.u32 4294901760, %v3090_v5 }
 0x257   :  { %v2958_v4 = vand.u32 4294901760, %v2957_v0  ;;  %v8397_v1 = vand.u32 4294901760, %v7289_v36  ;;  %v8396_v30 = vand.u32 4294901760, %v7291_v7  ;;  %v8395_v49 = vand.u32 4294901760, %v7293_v55 }
 0x258   :  { %v8398_v29 = vand.u32 4294901760, %v7295_v17  ;;  %v2123_v52 = vsub.f32 %v7282_v40, %v8405_v6  ;;  %v2971_v0 = vsub.f32 %v7284_v39, %v8404_v38  ;;  %v2978_v60 = vsub.f32 %v7286_v10, %v8403_v14  ;;  %v8804_v38 = vld [vmem:[#allocation50_spill] sm:$0xff]  ;;  %v8805_v6 = vld [vmem:[#allocation52_spill] sm:$0xff] }
 0x259   :  { %v5156_v13 = vpack.c.bf16 %v2236_v3, %v2229_v58  ;;  %v5348_v56 = vpack.c.bf16 %v3091_v47, %v3084_v22  ;;  %v2242_v15 = vsub.f32 %v7289_v36, %v8397_v1  ;;  %v2249_v5 = vsub.f32 %v7291_v7, %v8396_v30 }
 0x25a   :  { %v2972_v3 = vand.u32 4294901760, %v2971_v0  ;;  %v2979_v58 = vand.u32 4294901760, %v2978_v60  ;;  %v8402_v22 = vand.u32 4294901760, %v7298_v21  ;;  %v8399_v47 = vand.u32 4294901760, %v7306_v62 }
 0x25b   :  { %5151 = vmatpush3.bf16.xpose.msra.mxu0 %v5150_v18  ;;  %5343 = vmatpush3.bf16.xpose.msra.mxu1 %v5342_v59  ;;  %v5154_v18 = vpack.c.bf16 %v2110_v19, %v2103_v26  ;;  %v5346_v59 = vpack.c.bf16 %v2965_v23, %v2958_v4  ;;  %v2117_v26 = vand.u32 4294901760, %v2116_v2  ;;  %v2124_v19 = vand.u32 4294901760, %v2123_v52 }
 0x25c   :  { %5153 = vmatprep.subr.bf16.mxu0 %v5152_v45  ;;  %5345 = vmatprep.subr.bf16.mxu1 %v5344_v32  ;;  %v3097_v45 = vsub.f32 %v7293_v55, %v8395_v49  ;;  %v3104_v32 = vsub.f32 %v7295_v17, %v8398_v29  ;;  %v8401_v4 = vand.u32 4294901760, %v7300_v46  ;;  %v8400_v23 = vand.u32 4294901760, %v7304_v16 }
 0x25d   :  { %v2243_v49 = vand.u32 4294901760, %v2242_v15  ;;  %v2250_v30 = vand.u32 4294901760, %v2249_v5  ;;  %v5158_v2 = vpack.c.bf16 %v2124_v19, %v2117_v26  ;;  %v5350_v52 = vpack.c.bf16 %v2979_v58, %v2972_v3 }
 0x25e   :  { %v3098_v1 = vand.u32 4294901760, %v3097_v45  ;;  %v3105_v29 = vand.u32 4294901760, %v3104_v32  ;;  %v2130_v0 = vsub.f32 %v7298_v21, %v8402_v22  ;;  %v2137_v60 = vsub.f32 %v7300_v46, %v8401_v4  ;;  %v8803_v22 = vld [vmem:[#allocation49_spill] sm:$0xff] }
 0x25f   :  { %v5164_v3 = vpack.c.bf16 %v7084_v51, %v7082_v54  ;;  %v5356_v58 = vpack.c.bf16 %v7090_v41, %v7086_v28  ;;  %v5180_v43 = vpack.c.bf16 %v8805_v6, %v8804_v38 }
 0x260   :  { %v2131_v15 = vand.u32 4294901760, %v2130_v0  ;;  %v2138_v5 = vand.u32 4294901760, %v2137_v60  ;;  %v8785_v0 = vld [vmem:[#allocation35_spill] sm:$0xff]  ;;  %v8786_v60 = vld [vmem:[#allocation36_spill] sm:$0xff] }
 0x262   :  { %v5162_v26 = vpack.c.bf16 %v2138_v5, %v2131_v15  ;;  %v8789_v15 = vld [vmem:[#allocation27_spill] sm:$0xff]  ;;  %v8790_v5 = vld [vmem:[#allocation24_spill] sm:$0xff] }
 0x263   :  { %5155 = vmatpush3.bf16.xpose.msra.mxu0 %v5154_v18  ;;  %5347 = vmatpush3.bf16.xpose.msra.mxu1 %v5346_v59  ;;  %v2985_v18 = vsub.f32 %v7304_v16, %v8400_v23  ;;  %v2992_v59 = vsub.f32 %v7306_v62, %v8399_v47  ;;  %v8798_v47 = vld [vmem:[#allocation17_spill] sm:$0xff]  ;;  %v8799_v23 = vld [vmem:[#allocation26_spill] sm:$0xff] }
 0x264   :  { %5157 = vmatprep.subr.bf16.mxu0 %v5156_v13  ;;  %5349 = vmatprep.subr.bf16.mxu1 %v5348_v56  ;;  %v5160_v13 = vpack.c.bf16 %v2250_v30, %v2243_v49  ;;  %v5352_v56 = vpack.c.bf16 %v3105_v29, %v3098_v1  ;;  %v5166_v1 = vpack.c.bf16 %v7097_v37, %v7094_v9 }
 0x265   :  { %v2986_v45 = vand.u32 4294901760, %v2985_v18  ;;  %v2993_v32 = vand.u32 4294901760, %v2992_v59  ;;  %v5358_v30 = vpack.c.bf16 %v7105_v44, %v7103_v27  ;;  %v5168_v49 = vpack.c.bf16 %v7112_v20, %v7110_v34  ;;  %v8787_v59 = vld [vmem:[#allocation37_spill] sm:$0xff] }
 0x266   :  { %v5360_v29 = vpack.c.bf16 %v7119_v33, %v7117_v42  ;;  %v5172_v18 = vpack.c.bf16 %v8786_v60, %v8785_v0  ;;  %v5368_v4 = vpack.c.bf16 %v8799_v23, %v8798_v47 }
 0x267   :  { %v5354_v19 = vpack.c.bf16 %v2993_v32, %v2986_v45  ;;  %v8791_v45 = vpack.c.bf16 %v8789_v15, %v8790_v5  ;;  %v8792_v32 = vld [vmem:[#allocation39_spill] sm:$0xff] }
 0x26b   :  { %5159 = vmatpush3.bf16.xpose.msra.mxu0 %v5158_v2  ;;  %5351 = vmatpush3.bf16.xpose.msra.mxu1 %v5350_v52  ;;  %v8784_v2 = vld [vmem:[#allocation29_spill] sm:$0xff] }
 0x26c   :  { %5161 = vmatprep.subr.bf16.mxu0 %v5160_v13  ;;  %5353 = vmatprep.subr.bf16.mxu1 %v5352_v56  ;;  %v5362_v52 = vpack.c.bf16 %v8784_v2, %v7130_v25  ;;  %v8788_v13 = vld [vmem:[#allocation38_spill] sm:$0xff] }
 0x26d   :  { %v5364_v56 = vpack.c.bf16 %v8788_v13, %v8787_v59 }
 0x273   :  { %5163 = vmatpush3.bf16.xpose.msra.mxu0 %v5162_v26  ;;  %5355 = vmatpush3.bf16.xpose.msra.mxu1 %v5354_v19  ;;  %v8793_v26 = vld [vmem:[#allocation41_spill] sm:$0xff] }
 0x274   :  { %5165 = vmatprep.subr.bf16.mxu0 %v5164_v3  ;;  %5357 = vmatprep.subr.bf16.mxu1 %v5356_v58  ;;  %v5174_v19 = vpack.c.bf16 %v8793_v26, %v8792_v32  ;;  %v8794_v3 = vld [vmem:[#allocation15_spill] sm:$0xff]  ;;  %v8795_v58 = vld [vmem:[#allocation42_spill] sm:$0xff] }
 0x27a   :  { %4375 = vmatmul.mubr.f32.vlgmr.msra.gmra.mrb[12].mxu0 %v7358_v35  ;;  %4579 = vmatmul.mubr.f32.vlgmr.msra.gmra.mrb[12].mxu1 %v7358_v35 }
 0x27b   :  { %5167 = vmatpush3.bf16.xpose.msra.mxu0 %v5166_v1  ;;  %4408 = vmatprep.mubr.f32.mxu0 %v7370_v11  ;;  %v5366_v1 = vpack.c.bf16 %v8795_v58, %v8794_v3  ;;  %v8806_v58 = vld [vmem:[#allocation54_spill] sm:$0xff] }
 0x27c   :  { %5359 = vmatpush3.bf16.xpose.msra.mxu1 %v5358_v30  ;;  %4612 = vmatprep.mubr.f32.mxu1 %v7370_v11  ;;  %v8796_v30 = vld [vmem:[#allocation44_spill] sm:$0xff]  ;;  %v5372_v3 = vpack.c.bf16 %v8759_v61, %v8806_v58 }
 0x27d   :  { %5169 = vmatprep.subr.bf16.mxu0 %v5168_v49  ;;  %5361 = vmatprep.subr.bf16.mxu1 %v5360_v29  ;;  %v8797_v49 = vld [vmem:[#allocation16_spill] sm:$0xff] }
 0x27e   :  { %v5176_v29 = vpack.c.bf16 %v8797_v49, %v8796_v30 }
 0x283   :  { %5171 = vmatpush3.bf16.xpose.msra.mxu0 %v8791_v45  ;;  %v8800_v45 = vld [vmem:[#allocation45_spill] sm:$0xff] }
 0x284   :  { %5363 = vmatpush3.bf16.xpose.msra.mxu1 %v5362_v52  ;;  %5173 = vmatprep.subr.bf16.mxu0 %v5172_v18  ;;  %v8801_v52 = vld [vmem:[#allocation46_spill] sm:$0xff] }
 0x285   :  { %5365 = vmatprep.subr.bf16.mxu1 %v5364_v56  ;;  %v5178_v18 = vpack.c.bf16 %v8801_v52, %v8800_v45  ;;  %v8802_v56 = vld [vmem:[#allocation47_spill] sm:$0xff] }
 0x286   :  { %v5370_v14 = vpack.c.bf16 %v8803_v22, %v8802_v56  ;;  %v8809_v22 = vld [vmem:[#allocation66_spill] sm:$0xff]  ;;  %v8810_v56 = vld [vmem:[#allocation67_spill] sm:$0xff] }
 0x287   :  { %v5376_v45 = vpack.c.bf16 %v8810_v56, %v8809_v22 }
 0x28b   :  { %5175 = vmatpush3.bf16.xpose.msra.mxu0 %v5174_v19  ;;  %v5182_v19 = vpack.c.bf16 %v8767_v53, %v8766_v48  ;;  %v8813_v53 = vld [vmem:[#allocation82_spill] sm:$0xff] }
 0x28c   :  { %5367 = vmatpush3.bf16.xpose.msra.mxu1 %v5366_v1  ;;  %5177 = vmatprep.subr.bf16.mxu0 %v5176_v29  ;;  %v8808_v29 = vld [vmem:[#allocation63_spill] sm:$0xff] }
 0x28d   :  { %5369 = vmatprep.subr.bf16.mxu1 %v5368_v4  ;;  %v8807_v4 = vld [vmem:[#allocation60_spill] sm:$0xff]  ;;  %v5184_v52 = vpack.c.bf16 %v8771_v24, %v8808_v29 }
 0x28e   :  { %v5374_v1 = vpack.c.bf16 %v8807_v4, %v8768_v50  ;;  %v8814_v4 = vld [vmem:[#allocation83_spill] sm:$0xff] }
 0x28f   :  { %v5380_v50 = vpack.c.bf16 %v7277_v57, %v8814_v4 }
 0x293   :  { %5179 = vmatpush3.bf16.xpose.msra.mxu0 %v5178_v18  ;;  %v8812_v18 = vld [vmem:[#allocation81_spill] sm:$0xff] }
 0x294   :  { %5371 = vmatpush3.bf16.xpose.msra.mxu1 %v5370_v14  ;;  %5181 = vmatprep.subr.bf16.mxu0 %v5180_v43  ;;  %v5186_v14 = vpack.c.bf16 %v8776_v63, %v8775_v8  ;;  %v8811_v43 = vld [vmem:[#allocation73_spill] sm:$0xff]  ;;  %v5188_v48 = vpack.c.bf16 %v8813_v53, %v8812_v18 }
 0x295   :  { %5373 = vmatprep.subr.bf16.mxu1 %v5372_v3  ;;  %v5378_v3 = vpack.c.bf16 %v8811_v43, %v8777_v31 }
 0x29b   :  { %5183 = vmatpush3.bf16.xpose.msra.mxu0 %v5182_v19  ;;  %v5192_v19 = vpack.c.bf16 %v7291_v7, %v7289_v36 }
 0x29c   :  { %5375 = vmatpush3.bf16.xpose.msra.mxu1 %v5374_v1  ;;  %5185 = vmatprep.subr.bf16.mxu0 %v5184_v52  ;;  %v5190_v52 = vpack.c.bf16 %v7282_v40, %v7280_v12  ;;  %v5384_v1 = vpack.c.bf16 %v7295_v17, %v7293_v55 }
 0x29d   :  { %5377 = vmatprep.subr.bf16.mxu1 %v5376_v45  ;;  %v5382_v45 = vpack.c.bf16 %v7286_v10, %v7284_v39 }
 0x2a3   :  { %5187 = vmatpush3.bf16.xpose.msra.mxu0 %v5186_v14  ;;  %v8815_v14 = vld [vmem:[#allocation19_spill] sm:$0xff] }
 0x2a4   :  { %5379 = vmatpush3.bf16.xpose.msra.mxu1 %v5378_v3  ;;  %5189 = vmatprep.subr.bf16.mxu0 %v5188_v48  ;;  %v5194_v48 = vpack.c.bf16 %v7300_v46, %v7298_v21  ;;  %v8816_v3 = vld [vmem:[#allocation20_spill] sm:$0xff]  ;;  %v8830_v46 = vld [vmem:[#allocation30_spill] sm:$0xff] }
 0x2a5   :  { %5381 = vmatprep.subr.bf16.mxu1 %v5380_v50  ;;  %v5386_v50 = vpack.c.bf16 %v7306_v62, %v7304_v16  ;;  %v8825_v62 = vld [vmem:[#allocation32_spill] sm:$0xff]  ;;  %v8828_v16 = vld [vmem:[#allocation43_spill] sm:$0xff] }
 0x2a6   :  { %v8850_v21 = vld [vmem:[#allocation80_spill] sm:$0xff] }
 0x2ab   :  { %5191 = vmatpush3.bf16.xpose.msra.mxu0 %v5190_v52  ;;  %v8817_v52 = vld [vmem:[#allocation11_spill] sm:$0xff] }
 0x2ac   :  { %5383 = vmatpush3.bf16.xpose.msra.mxu1 %v5382_v45  ;;  %5193 = vmatprep.subr.bf16.mxu0 %v5192_v19  ;;  %v8818_v45 = vld [vmem:[#allocation89_spill] sm:$0xff]  ;;  %v8819_v19 = vld [vmem:[#allocation12_spill] sm:$0xff] }
 0x2ad   :  { %5385 = vmatprep.subr.bf16.mxu1 %v5384_v1  ;;  %v8820_v1 = vld [vmem:[#allocation13_spill] sm:$0xff] }
 0x2b3   :  { %5195 = vmatpush3.bf16.xpose.msra.mxu0 %v5194_v48  ;;  %v8821_v48 = vld [vmem:[#allocation14_spill] sm:$0xff] }
 0x2b4   :  { %5387 = vmatpush3.bf16.xpose.msra.mxu1 %v5386_v50  ;;  %5197 = vmatprep.subr.bf16.mxu0 %v8815_v14  ;;  %v8822_v50 = vld [vmem:[#allocation23_spill] sm:$0xff]  ;;  %v8823_v14 = vld [vmem:[#allocation28_spill] sm:$0xff] }
 0x2b5   :  { %5389 = vmatprep.subr.bf16.mxu1 %v8816_v3  ;;  %v8824_v3 = vld [vmem:[#allocation31_spill] sm:$0xff] }
 0x2ba   :  { %4409 = vmatmul.mubr.f32.vlgmr.msra.gmra.mrb[12].mxu0 %v7370_v11 }
 0x2bb   :  { %4613 = vmatmul.mubr.f32.vlgmr.msra.gmra.mrb[12].mxu1 %v7370_v11  ;;  %5199 = vmatpush3.bf16.xpose.msra.mxu0 %v8817_v52  ;;  %v8826_v11 = vld [vmem:[#allocation33_spill] sm:$0xff]  ;;  %v8827_v52 = vld [vmem:[#allocation34_spill] sm:$0xff] }
 0x2bc   :  { %4442 = vmatprep.mubr.f32.mxu0 %v8818_v45  ;;  %5391 = vmatpush3.bf16.xpose.msra.mxu1 %v8819_v19  ;;  %v8829_v19 = vld [vmem:[#allocation25_spill] sm:$0xff] }
 0x2bd   :  { %4646 = vmatprep.mubr.f32.mxu1 %v8818_v45  ;;  %5201 = vmatprep.subr.bf16.mxu0 %v8820_v1  ;;  %v8831_v1 = vld [vmem:[#allocation48_spill] sm:$0xff] }
 0x2be   :  { %5393 = vmatprep.subr.bf16.mxu1 %v8821_v48  ;;  %v8832_v48 = vld [vmem:[#allocation51_spill] sm:$0xff] }
 0x2c3   :  { %5203 = vmatpush3.bf16.xpose.msra.mxu0 %v8822_v50  ;;  %v8833_v50 = vld [vmem:[#allocation53_spill] sm:$0xff] }
 0x2c4   :  { %5395 = vmatpush3.bf16.xpose.msra.mxu1 %v8823_v14  ;;  %5205 = vmatprep.subr.bf16.mxu0 %v8824_v3  ;;  %v8834_v14 = vld [vmem:[#allocation58_spill] sm:$0xff]  ;;  %v8835_v3 = vld [vmem:[#allocation61_spill] sm:$0xff] }
 0x2c5   :  { %5397 = vmatprep.subr.bf16.mxu1 %v8825_v62  ;;  %v8836_v62 = vld [vmem:[#allocation62_spill] sm:$0xff] }
 0x2cb   :  { %5207 = vmatpush3.bf16.xpose.msra.mxu0 %v8826_v11  ;;  %v8837_v11 = vld [vmem:[#allocation65_spill] sm:$0xff] }
 0x2cc   :  { %5399 = vmatpush3.bf16.xpose.msra.mxu1 %v8827_v52  ;;  %5209 = vmatprep.subr.bf16.mxu0 %v8828_v16  ;;  %v8838_v52 = vld [vmem:[#allocation68_spill] sm:$0xff]  ;;  %v8839_v16 = vld [vmem:[#allocation71_spill] sm:$0xff] }
 0x2cd   :  { %5401 = vmatprep.subr.bf16.mxu1 %v8829_v19  ;;  %v8840_v19 = vld [vmem:[#allocation74_spill] sm:$0xff] }
 0x2d3   :  { %5211 = vmatpush3.bf16.xpose.msra.mxu0 %v8830_v46  ;;  %v8841_v46 = vld [vmem:[#allocation75_spill] sm:$0xff] }
 0x2d4   :  { %5403 = vmatpush3.bf16.xpose.msra.mxu1 %v8831_v1  ;;  %5213 = vmatprep.subr.bf16.mxu0 %v8832_v48  ;;  %v8842_v1 = vld [vmem:[#allocation76_spill] sm:$0xff]  ;;  %v8843_v48 = vld [vmem:[#allocation77_spill] sm:$0xff] }
 0x2d5   :  { %5405 = vmatprep.subr.bf16.mxu1 %v8833_v50  ;;  %v8844_v50 = vld [vmem:[#allocation78_spill] sm:$0xff] }
 0x2db   :  { %5215 = vmatpush3.bf16.xpose.msra.mxu0 %v8834_v14  ;;  %v8845_v14 = vld [vmem:[#allocation79_spill] sm:$0xff] }
 0x2dc   :  { %5407 = vmatpush3.bf16.xpose.msra.mxu1 %v8835_v3  ;;  %5217 = vmatprep.subr.bf16.mxu0 %v8836_v62  ;;  %v8846_v62 = vand.u32 4294901760, %v7082_v54  ;;  %v8854_v54 = vand.u32 4294901760, %v7103_v27  ;;  %v8860_v27 = vand.u32 4294901760, %v8790_v5 }
 0x2dd   :  { %5409 = vmatprep.subr.bf16.mxu1 %v8837_v11  ;;  %v8847_v11 = vand.u32 4294901760, %v7084_v51  ;;  %v8855_v51 = vand.u32 4294901760, %v7105_v44  ;;  %v8861_v44 = vand.u32 4294901760, %v8789_v15  ;;  %v8866_v15 = vand.u32 4294901760, %v8787_v59 }
 0x2df   :  { %v5228_v3 = vpack.c.bf16 %v8847_v11, %v8846_v62  ;;  %v5422_v62 = vpack.c.bf16 %v8855_v51, %v8854_v54  ;;  %v5618_v54 = vmov 2   ;;  %v8870_v51 = vld [vmem:[#allocation15_spill] sm:$0xff] }
 0x2e0   :  { %v8871_v59 = vand.u32 4294901760, %v8870_v51  ;;  %v8894_v51 = vld [vmem:[#allocation59_spill] sm:$0xff] }
 0x2e3   :  { %5219 = vmatpush3.bf16.xpose.msra.mxu0 %v8838_v52  ;;  %v8848_v52 = vand.u32 4294901760, %v7086_v28  ;;  %v8856_v28 = vand.u32 4294901760, %v7110_v34  ;;  %v5234_v34 = vpack.c.bf16 %v8861_v44, %v8860_v27  ;;  %v5622_v27 = vmov 5  }
 0x2e4   :  { %5411 = vmatpush3.bf16.xpose.msra.mxu1 %v8839_v16  ;;  %5221 = vmatprep.subr.bf16.mxu0 %v8840_v19  ;;  %v8849_v16 = vand.u32 4294901760, %v7090_v41  ;;  %v8857_v41 = vand.u32 4294901760, %v7112_v20  ;;  %v5536_v20 = vld [vmem:[%s8107_s1] sm:$0xff]  ;;  %s5624_s1 = smov [#allocation7]  }
 0x2e5   :  { %5413 = vmatprep.subr.bf16.mxu1 %v8841_v46  ;;  %v8851_v46 = vld [vmem:[#allocation86_spill] sm:$0xff]  ;;  %s3861_s18 = sshll.u32 %s5624_s1, 4  ;;  %s3862_s18 = int_to_ptr.vmem [resolvable:$true] %s3861_s18 }
 0x2e6   :  { %v5420_v19 = vpack.c.bf16 %v8849_v16, %v8848_v52  ;;  %v5232_v16 = vpack.c.bf16 %v8857_v41, %v8856_v28  ;;  %v8859_v52 = vand.u32 4294901760, %v7119_v33  ;;  %v8862_v33 = vand.u32 4294901760, %v7130_v25  ;;  %s5581_s20 = scalar_lea.vmem %s3862_s18, 16  ;;  %s5585_s21 = scalar_lea.vmem %s3862_s18, 32 }
 0x2e7   :  { %v5619_v25 = vmov 6   ;;  %v8874_v41 = vand.u32 4294901760, %v8796_v30  ;;  %v8878_v30 = vld [vmem:[#allocation45_spill] sm:$0xff]  ;;  %p5582_p2 = scmp.ne.s32.totalorder %s3862_s18, %s5581_s20  ;;  %p5586_p3 = scmp.lt.s32.totalorder %s3862_s18, %s3862_s18 }
 0x2e8   :  { %v8879_v44 = vand.u32 4294901760, %v8878_v30  ;;  %p5587_p4 = scmp.lt.s32.totalorder %s5585_s21, %s5581_s20 }
 0x2ea   :  { %p5588_p5 = por %p5587_p4, %p5586_p3 }
 0x2eb   :  { %5223 = vmatpush3.bf16.xpose.msra.mxu0 %v8842_v1 }
 0x2ec   :  { %5415 = vmatpush3.bf16.xpose.msra.mxu1 %v8843_v48  ;;  %5225 = vmatprep.subr.bf16.mxu0 %v8844_v50  ;;  %v8852_v50 = vand.u32 4294901760, %v7094_v9  ;;  %p5589_p6 = pnand %p5588_p5, %p5582_p2 }
 0x2ed   :  { %5417 = vmatprep.subr.bf16.mxu1 %v8845_v14  ;;  %v8853_v14 = vand.u32 4294901760, %v7097_v37  ;;  %v5616_v37 = vmov 1  }
 0x2ee   :  { %5523 = vset.pattern.permute.xlu1 %v5616_v37 }
 0x2ef   :  { %v5230_v48 = vpack.c.bf16 %v8853_v14, %v8852_v50  ;;  %3652 = vperm.xlu1 %5523, %v5536_v20   ;;  %v8863_v14 = vand.u32 4294901760, %v8784_v2  ;;  %v8867_v50 = vand.u32 4294901760, %v8788_v13  ;;  %v8868_v2 = vand.u32 4294901760, %v8792_v32 }
 0x2f0   :  { %v5620_v32 = vmov 4  }
 0x2f1   :  { %v5428_v11 = vpack.c.bf16 %v8867_v50, %v8866_v15  ;;  %v8888_v15 = vand.u32 4294901760, %v8806_v58  ;;  %v8889_v50 = vand.u32 4294901760, %v8759_v61  ;;  %v8898_v61 = vand.u32 4294901760, %v8808_v29 }
 0x2f2   :  { %v8904_v29 = vand.u32 4294901760, %v8777_v31 }
 0x2f3   :  { %5227 = vmatpush3.bf16.xpose.msra.mxu0 %v8850_v21  ;;  %5524 = vset.pattern.permute.xlu1 %v5618_v54  ;;  %v5623_v54 = vmov 7  }
 0x2f4   :  { %5419 = vmatpush3.bf16.xpose.msra.mxu1 %v8851_v46  ;;  %5229 = vmatprep.subr.bf16.mxu0 %v5228_v3  ;;  %v8858_v3 = vand.u32 4294901760, %v7117_v42  ;;  %v5617_v42 = vmov 3  }
 0x2f5   :  { %5421 = vmatprep.subr.bf16.mxu1 %v5420_v19  ;;  %5525 = vset.pattern.permute.xlu0 %v5617_v42  ;;  %v8864_v19 = vand.u32 4294901760, %v8785_v0  ;;  %v8869_v0 = vand.u32 4294901760, %v8793_v26  ;;  %v5621_v26 = vmov 8  }
 0x2f6   :  { %v5424_v9 = vpack.c.bf16 %v8859_v52, %v8858_v3  ;;  %3694 = vperm.xlu0 %5525, %v5536_v20   ;;  %3673 = vperm.xlu1 %5524, %v5536_v20   ;;  %v8876_v52 = vand.u32 4294901760, %v8798_v47  ;;  %v8882_v47 = vld [vmem:[#allocation47_spill] sm:$0xff] }
 0x2fa   :  { %4443 = vmatmul.mubr.f32.vlgmr.msra.gmra.mrb[12].mxu0 %v8818_v45  ;;  %5528 = vset.pattern.permute.xlu0 %v5619_v25  ;;  %v8890_v25 = vld [vmem:[#allocation56_spill] sm:$0xff] }
 0x2fb   :  { %4647 = vmatmul.mubr.f32.vlgmr.msra.gmra.mrb[12].mxu1 %v8818_v45  ;;  %5231 = vmatpush3.bf16.xpose.msra.mxu0 %v5230_v48  ;;  %v5426_v45 = vpack.c.bf16 %v8863_v14, %v8862_v33  ;;  %v8865_v48 = vand.u32 4294901760, %v8786_v60  ;;  %v5238_v60 = vpack.c.bf16 %v8869_v0, %v8868_v2  ;;  %v8884_v33 = vld [vmem:[#allocation49_spill] sm:$0xff]  ;;  %v8891_v2 = vand.u32 4294901760, %v8890_v25 }
 0x2fc   :  { %4476 = vmatprep.mubr.f32.mxu0 %v7358_v35  ;;  %5423 = vmatpush3.bf16.xpose.msra.mxu1 %v5422_v62  ;;  %v8872_v62 = vld [vmem:[#allocation42_spill] sm:$0xff]  ;;  %v8885_v14 = vand.u32 4294901760, %v8884_v33  ;;  %v8892_v0 = vld [vmem:[#allocation57_spill] sm:$0xff] }
 0x2fd   :  { %4680 = vmatprep.mubr.f32.mxu1 %v7358_v35  ;;  %5233 = vmatprep.subr.bf16.mxu0 %v5232_v16  ;;  %v5236_v5 = vpack.c.bf16 %v8865_v48, %v8864_v19  ;;  %v8873_v13 = vand.u32 4294901760, %v8872_v62  ;;  %v8875_v16 = vand.u32 4294901760, %v8797_v49  ;;  %v8880_v49 = vld [vmem:[#allocation46_spill] sm:$0xff]  ;;  %v8886_v19 = vand.u32 4294901760, %v8804_v38  ;;  %v8936_v25 = vld [vmem:[#allocation33_spill] sm:$0xff] }
 0x2fe   :  { %5425 = vmatprep.subr.bf16.mxu1 %v5424_v9  ;;  %3757 = vperm.xlu0 %5528, %v5536_v20   ;;  %v8877_v9 = vand.u32 4294901760, %v8799_v23  ;;  %v8883_v23 = vand.u32 4294901760, %v8882_v47  ;;  %v8887_v48 = vand.u32 4294901760, %v8805_v6  ;;  %v8895_v6 = vand.u32 4294901760, %v8894_v51  ;;  %v8941_v51 = vld [vmem:[#allocation48_spill] sm:$0xff] }
 0x2ff   :  { %v5430_v28 = vpack.c.bf16 %v8873_v13, %v8871_v59  ;;  %v5240_v3 = vpack.c.bf16 %v8875_v16, %v8874_v41  ;;  %5526 = vset.pattern.permute.xlu1 %v5620_v32  ;;  %v8896_v59 = vld [vmem:[#allocation60_spill] sm:$0xff]  ;;  %v8899_v13 = vand.u32 4294901760, %v8771_v24  ;;  %v8900_v41 = vand.u32 4294901760, %v8809_v22 }
 0x300   :  { %v5432_v37 = vpack.c.bf16 %v8877_v9, %v8876_v52  ;;  %3715 = vperm.xlu1 %5526, %v5536_v20   ;;  %v8897_v62 = vand.u32 4294901760, %v8896_v59  ;;  %v8901_v16 = vand.u32 4294901760, %v8810_v56  ;;  %v8902_v52 = vand.u32 4294901760, %v8775_v8  ;;  %v8943_v59 = vld [vmem:[#allocation53_spill] sm:$0xff] }
 0x301   :  { %v8903_v9 = vand.u32 4294901760, %v8776_v63  ;;  %v8905_v24 = vand.u32 4294901760, %v8811_v43  ;;  %v8906_v22 = vand.u32 4294901760, %v8812_v18  ;;  %v8907_v56 = vand.u32 4294901760, %v8813_v53 }
 0x302   :  { %5531 = vset.pattern.permute.xlu0 %v5621_v26  ;;  %v5438_v58 = vpack.c.bf16 %v8897_v62, %v8895_v6  ;;  %v8910_v8 = vand.u32 4294901760, %v7280_v12  ;;  %v8911_v63 = vand.u32 4294901760, %v7282_v40  ;;  %v8912_v43 = vand.u32 4294901760, %v7284_v39  ;;  %v8918_v40 = vld [vmem:[#allocation84_spill] sm:$0xff]  ;;  %v8920_v39 = vld [vmem:[#allocation85_spill] sm:$0xff]  ;;  %v8942_v6 = vld [vmem:[#allocation51_spill] sm:$0xff] }
 0x303   :  { %5235 = vmatpush3.bf16.xpose.msra.mxu0 %v5234_v34  ;;  %v8881_v34 = vand.u32 4294901760, %v8880_v49  ;;  %v5442_v32 = vpack.c.bf16 %v8905_v24, %v8904_v29  ;;  %v8913_v18 = vand.u32 4294901760, %v7286_v10  ;;  %v8916_v49 = vand.u32 4294901760, %v7293_v55  ;;  %v8926_v55 = vld [vmem:[#allocation19_spill] sm:$0xff]  ;;  %v8944_v62 = vld [vmem:[#allocation58_spill] sm:$0xff] }
 0x304   :  { %5427 = vmatpush3.bf16.xpose.msra.mxu1 %v5426_v45  ;;  %5237 = vmatprep.subr.bf16.mxu0 %v5236_v5  ;;  %v5434_v45 = vpack.c.bf16 %v8885_v14, %v8883_v23  ;;  %v5244_v5 = vpack.c.bf16 %v8887_v48, %v8886_v19  ;;  %v5254_v31 = vpack.c.bf16 %v8911_v63, %v8910_v8  ;;  %v8919_v12 = vand.u32 4294901760, %v8918_v40  ;;  %v8922_v23 = vld [vmem:[#allocation87_spill] sm:$0xff]  ;;  %v8929_v19 = vld [vmem:[#allocation12_spill] sm:$0xff]  ;;  %v8930_v48 = vld [vmem:[#allocation13_spill] sm:$0xff] }
 0x305   :  { %5429 = vmatprep.subr.bf16.mxu1 %v5428_v11  ;;  %5527 = vset.pattern.permute.xlu1 %v5622_v27  ;;  %v5242_v42 = vpack.c.bf16 %v8881_v34, %v8879_v44  ;;  %v5436_v11 = vpack.c.bf16 %v8889_v50, %v8888_v15  ;;  %v8909_v27 = vand.u32 4294901760, %v7277_v57  ;;  %v5446_v53 = vpack.c.bf16 %v8913_v18, %v8912_v43  ;;  %v8932_v15 = vld [vmem:[#allocation23_spill] sm:$0xff]  ;;  %v8933_v50 = vld [vmem:[#allocation28_spill] sm:$0xff] }
 0x306   :  { %3736 = vperm.xlu1 %5527, %v5536_v20   ;;  %v8914_v44 = vand.u32 4294901760, %v7289_v36  ;;  %v8917_v34 = vand.u32 4294901760, %v7295_v17  ;;  %v8921_v47 = vand.u32 4294901760, %v8920_v39  ;;  %v8923_v33 = vand.u32 4294901760, %v8922_v23  ;;  %v8924_v36 = vld [vmem:[#allocation88_spill] sm:$0xff] }
 0x307   :  { %v8925_v14 = vand.u32 4294901760, %v8924_v36  ;;  %v8927_v17 = vld [vmem:[#allocation20_spill] sm:$0xff] }
 0x308   :  { %v5258_v10 = vpack.c.bf16 %v8921_v47, %v8919_v12 }
 0x30a   :  { %5529 = vset.pattern.permute.xlu1 %v5623_v54  ;;  %v8935_v54 = vld [vmem:[#allocation32_spill] sm:$0xff] }
 0x30b   :  { %5239 = vmatpush3.bf16.xpose.msra.mxu0 %v5238_v60  ;;  %3778 = vperm.xlu1 %5529, %v5536_v20   ;;  %v8893_v60 = vand.u32 4294901760, %v8892_v0  ;;  %v8938_v0 = vld [vmem:[#allocation43_spill] sm:$0xff] }
 0x30c   :  { %5431 = vmatpush3.bf16.xpose.msra.mxu1 %v5430_v28  ;;  %5241 = vmatprep.subr.bf16.mxu0 %v5240_v3  ;;  %v5248_v28 = vpack.c.bf16 %v8899_v13, %v8898_v61  ;;  %v5440_v3 = vpack.c.bf16 %v8901_v16, %v8900_v41  ;;  %v8946_v61 = vld [vmem:[#allocation62_spill] sm:$0xff]  ;;  %v8947_v13 = vld [vmem:[#allocation65_spill] sm:$0xff]  ;;  %v8949_v41 = vld [vmem:[#allocation71_spill] sm:$0xff] }
 0x30d   :  { %5433 = vmatprep.subr.bf16.mxu1 %v5432_v37  ;;  %v5246_v38 = vpack.c.bf16 %v8893_v60, %v8891_v2  ;;  %v5250_v37 = vpack.c.bf16 %v8903_v9, %v8902_v52  ;;  %v8937_v2 = vld [vmem:[#allocation34_spill] sm:$0xff]  ;;  %v8939_v60 = vld [vmem:[#allocation25_spill] sm:$0xff] }
 0x30e   :  { %v8950_v16 = vld [vmem:[#allocation74_spill] sm:$0xff]  ;;  %v8952_v52 = vld [vmem:[#allocation77_spill] sm:$0xff] }
 0x30f   :  { %5530 = vset.pattern.permute.xlu1 %v5621_v26  ;;  %v5252_v26 = vpack.c.bf16 %v8907_v56, %v8906_v22  ;;  %v8953_v9 = vld [vmem:[#allocation78_spill] sm:$0xff] }
 0x310   :  { %3799 = vperm.xlu1 %5530, %v5536_v20   ;;  %v8908_v20 = vand.u32 4294901760, %v8814_v4  ;;  %v8915_v4 = vand.u32 4294901760, %v7291_v7  ;;  %v5450_v7 = vpack.c.bf16 %v8925_v14, %v8923_v33 }
 0x312   :  { %v5444_v30 = vpack.c.bf16 %v8909_v27, %v8908_v20  ;;  %v5256_v57 = vpack.c.bf16 %v8915_v4, %v8914_v44  ;;  %v8955_v20 = vld [vmem:[#allocation21_spill] sm:$0xff]  ;;  %v8958_v27 = vld [vmem:[#allocation40_spill] sm:$0xff] }
 0x313   :  { %5243 = vmatpush3.bf16.xpose.msra.mxu0 %v5242_v42  ;;  %v5448_v42 = vpack.c.bf16 %v8917_v34, %v8916_v49 }
 0x314   :  { %5435 = vmatpush3.bf16.xpose.msra.mxu1 %v5434_v45  ;;  %5245 = vmatprep.subr.bf16.mxu0 %v5244_v5  ;;  %v8928_v45 = vld [vmem:[#allocation11_spill] sm:$0xff]  ;;  %v8931_v5 = vld [vmem:[#allocation14_spill] sm:$0xff] }
 0x315   :  { %5437 = vmatprep.subr.bf16.mxu1 %v5436_v11  ;;  %v8934_v11 = vld [vmem:[#allocation31_spill] sm:$0xff] }
 0x31b   :  { %5247 = vmatpush3.bf16.xpose.msra.mxu0 %v5246_v38  ;;  %v8940_v38 = vld [vmem:[#allocation30_spill] sm:$0xff] }
 0x31c   :  { %5439 = vmatpush3.bf16.xpose.msra.mxu1 %v5438_v58  ;;  %5249 = vmatprep.subr.bf16.mxu0 %v5248_v28  ;;  %v8945_v58 = vld [vmem:[#allocation61_spill] sm:$0xff]  ;;  %v8948_v28 = vld [vmem:[#allocation68_spill] sm:$0xff] }
 0x31d   :  { %5441 = vmatprep.subr.bf16.mxu1 %v5440_v3  ;;  %v8951_v3 = vld [vmem:[#allocation75_spill] sm:$0xff] }
 0x323   :  { %5251 = vmatpush3.bf16.xpose.msra.mxu0 %v5250_v37  ;;  %v8954_v37 = vld [vmem:[#allocation79_spill] sm:$0xff] }
 0x324   :  { %5443 = vmatpush3.bf16.xpose.msra.mxu1 %v5442_v32  ;;  %5253 = vmatprep.subr.bf16.mxu0 %v5252_v26 }
 0x325   :  { %5445 = vmatprep.subr.bf16.mxu1 %v5444_v30 }
 0x32b   :  { %5255 = vmatpush3.bf16.xpose.msra.mxu0 %v5254_v31 }
 0x32c   :  { %5447 = vmatpush3.bf16.xpose.msra.mxu1 %v5446_v53  ;;  %5257 = vmatprep.subr.bf16.mxu0 %v5256_v57 }
 0x32d   :  { %5449 = vmatprep.subr.bf16.mxu1 %v5448_v42 }
 0x333   :  { %5259 = vmatpush3.bf16.xpose.msra.mxu0 %v5258_v10 }
 0x334   :  { %5451 = vmatpush3.bf16.xpose.msra.mxu1 %v5450_v7  ;;  %5261 = vmatprep.subr.bf16.mxu0 %v8926_v55 }
 0x335   :  { %5453 = vmatprep.subr.bf16.mxu1 %v8927_v17 }
 0x33a   :  { %4477 = vmatmul.mubr.f32.vlgmr.msra.gmra.mrb[12].mxu0 %v7358_v35 }
 0x33b   :  { %4681 = vmatmul.mubr.f32.vlgmr.msra.gmra.mrb[12].mxu1 %v7358_v35  ;;  %5263 = vmatpush3.bf16.xpose.msra.mxu0 %v8928_v45 }
 0x33c   :  { %4510 = vmatprep.mubr.f32.mxu0 %v7358_v35  ;;  %5455 = vmatpush3.bf16.xpose.msra.mxu1 %v8929_v19 }
 0x33d   :  { %4714 = vmatprep.mubr.f32.mxu1 %v7358_v35  ;;  %5265 = vmatprep.subr.bf16.mxu0 %v8930_v48 }
 0x33e   :  { %5457 = vmatprep.subr.bf16.mxu1 %v8931_v5 }
 0x343   :  { %5267 = vmatpush3.bf16.xpose.msra.mxu0 %v8932_v15 }
 0x344   :  { %5459 = vmatpush3.bf16.xpose.msra.mxu1 %v8933_v50  ;;  %5269 = vmatprep.subr.bf16.mxu0 %v8934_v11 }
 0x345   :  { %5461 = vmatprep.subr.bf16.mxu1 %v8935_v54 }
 0x34b   :  { %5271 = vmatpush3.bf16.xpose.msra.mxu0 %v8936_v25 }
 0x34c   :  { %5463 = vmatpush3.bf16.xpose.msra.mxu1 %v8937_v2  ;;  %5273 = vmatprep.subr.bf16.mxu0 %v8938_v0 }
 0x34d   :  { %5465 = vmatprep.subr.bf16.mxu1 %v8939_v60 }
 0x353   :  { %5275 = vmatpush3.bf16.xpose.msra.mxu0 %v8940_v38 }
 0x354   :  { %5467 = vmatpush3.bf16.xpose.msra.mxu1 %v8941_v51  ;;  %5277 = vmatprep.subr.bf16.mxu0 %v8942_v6 }
 0x355   :  { %5469 = vmatprep.subr.bf16.mxu1 %v8943_v59 }
 0x35b   :  { %5279 = vmatpush3.bf16.xpose.msra.mxu0 %v8944_v62 }
 0x35c   :  { %5471 = vmatpush3.bf16.xpose.msra.mxu1 %v8945_v58  ;;  %5281 = vmatprep.subr.bf16.mxu0 %v8946_v61 }
 0x35d   :  { %5473 = vmatprep.subr.bf16.mxu1 %v8947_v13 }
 0x363   :  { %5283 = vmatpush3.bf16.xpose.msra.mxu0 %v8948_v28 }
 0x364   :  { %5475 = vmatpush3.bf16.xpose.msra.mxu1 %v8949_v41  ;;  %5285 = vmatprep.subr.bf16.mxu0 %v8950_v16 }
 0x365   :  { %5477 = vmatprep.subr.bf16.mxu1 %v8951_v3 }
 0x36b   :  { %5287 = vmatpush3.bf16.xpose.msra.mxu0 %v8842_v1  ;;  %v3632_v1 = vpop.permute.xlu0 %3631 }
 0x36c   :  { %5479 = vmatpush3.bf16.xpose.msra.mxu1 %v8952_v52  ;;  %5289 = vmatprep.subr.bf16.mxu0 %v8953_v9  ;;  %vm3633_vm4 = vcmp.eq.s32.totalorder %v8955_v20, %v3632_v1 }
 0x36d   :  { %5481 = vmatprep.subr.bf16.mxu1 %v8954_v37 }
 0x36e   :  { %v3653_v29 = vpop.permute.xlu1 %3652 }
 0x36f   :  { %vm3654_vm6 = vcmp.eq.s32.totalorder %v8955_v20, %v3653_v29  ;;  %vm3657_vm13 = vcmp.eq.s32.totalorder %v8958_v27, %v3653_v29 }
 0x373   :  { %5291 = vmatpush3.bf16.xpose.msra.mxu0 %v8850_v21  ;;  %v8956_v21 = vld [vmem:[#allocation22_spill] sm:$0xff] }
 0x374   :  { %5483 = vmatpush3.bf16.xpose.msra.mxu1 %v8851_v46  ;;  %vm3634_vm5 = vcmp.eq.s32.totalorder %v8956_v21, %v3632_v1  ;;  %vm3655_vm7 = vcmp.eq.s32.totalorder %v8956_v21, %v3653_v29 }
 0x375   :  { %v7861_v24 = vpop.permute.xlu1 %3673  ;;  %v7867_v56 = vpop.permute.xlu0 %3694 }
 0x376   :  { %vm3675_vm10 = vcmp.eq.s32.totalorder %v8955_v20, %v7861_v24  ;;  %vm3678_vm0 = vcmp.eq.s32.totalorder %v8958_v27, %v7861_v24  ;;  %vm3699_vm11 = vcmp.eq.s32.totalorder %v8958_v27, %v7867_v56 }
 0x37a   :  { %4511 = vmatmul.mubr.f32.vlgmr.msra.gmra.mrb[12].mxu0 %v7358_v35 }
 0x37b   :  { %4715 = vmatmul.mubr.f32.vlgmr.msra.gmra.mrb[12].mxu1 %v7358_v35  ;;  %v8957_v35 = vld [vmem:[#allocation18_spill] sm:$0xff] }
 0x37c   :  { %vm3635_vm8 = vcmp.eq.s32.totalorder %v8957_v35, %v3632_v1  ;;  %vm3656_vm3 = vcmp.eq.s32.totalorder %v8957_v35, %v3653_v29  ;;  %vm3677_vm2 = vcmp.eq.s32.totalorder %v8957_v35, %v7861_v24 }
 0x37d   :  { %v7873_v46 = vpop.permute.xlu0 %3757 }
 0x37e   :  { %vm3761_vm12 = vcmp.eq.s32.totalorder %v8957_v35, %v7873_v46 }
 0x37f   :  { %v7863_v32 = vpop.permute.xlu1 %3715 }
 0x380   :  { %vm3717_vm14 = vcmp.eq.s32.totalorder %v8955_v20, %v7863_v32  ;;  %vm3718_vm15 = vcmp.eq.s32.totalorder %v8956_v21, %v7863_v32  ;;  %vm3720_vm1 = vcmp.eq.s32.totalorder %v8958_v27, %v7863_v32 }
 0x385   :  { %v7865_v22 = vpop.permute.xlu1 %3736 }
 0x38a   :  { %v7869_v26 = vpop.permute.xlu1 %3778 }
 0x38b   :  { %vm3781_vm9 = vcmp.eq.s32.totalorder %v8956_v21, %v7869_v26 }
 0x38f   :  { %v7887_v30 = vpop.permute.xlu1 %3799 }
 0x44d   :  { %v7907_v8 = vpop.f32.mrb[12].mxu0 }
 0x44e   :  { %v7919_v63 = vpop.f32.mrb[12].mxu1  ;;  %v7921_v31 = vpop.f32.mrb[13].mxu0  ;;  %v3658_v43 = vsel %vm3654_vm6, %v7907_v8, 0.0  ;;  %v3637_v18 = vsel %vm3633_vm4, %v7907_v8, 0.0  ;;  %v3721_v57 = vsel %vm3717_vm14, %v7907_v8, 0.0  ;;  %vm3762_vm4 = vcmp.eq.s32.totalorder %v8958_v27, %v7873_v46 }
 0x44f   :  { %v7935_v53 = vpop.f32.mrb[13].mxu1  ;;  %v3659_v44 = vsel %vm3655_vm7, %v7921_v31, 0.0  ;;  %v3638_v4 = vsel %vm3634_vm5, %v7921_v31, 0.0  ;;  %vm3740_vm6 = vcmp.eq.s32.totalorder %v8957_v35, %v7865_v22  ;;  %v3660_v49 = vsel %vm3656_vm3, %v7919_v63, 0.0 }
 0x450   :  { %v3662_v34 = vadd.f32 %v3659_v44, %v3658_v43  ;;  %v3641_v42 = vadd.f32 %v3638_v4, %v3637_v18  ;;  %v3679_v40 = vsel %vm3675_vm10, %v7907_v8, 0.0  ;;  %vm3803_vm5 = vcmp.eq.s32.totalorder %v8957_v35, %v7887_v30 }
 0x451   :  { %v3661_v12 = vsel %vm3657_vm13, %v7935_v53, 0.0  ;;  %v3639_v39 = vsel %vm3635_vm8, %v7919_v63, 0.0  ;;  %v3722_v47 = vsel %vm3718_vm15, %v7921_v31, 0.0  ;;  %vm8959_vm7 = vcmp.eq.s32.totalorder %v8956_v21, %v7861_v24 }
 0x452   :  { %v3680_v10 = vsel %vm8959_vm7, %v7921_v31, 0.0  ;;  %vm3741_vm10 = vcmp.eq.s32.totalorder %v8958_v27, %v7865_v22  ;;  %v3663_v23 = vadd.f32 %v3662_v34, %v3660_v49  ;;  %vm8960_vm13 = vcmp.eq.s32.totalorder %v8958_v27, %v3632_v1 }
 0x453   :  { %v3640_v33 = vsel %vm8960_vm13, %v7935_v53, 0.0  ;;  %v3642_v36 = vadd.f32 %v3641_v42, %v3639_v39  ;;  %v3725_v14 = vadd.f32 %v3722_v47, %v3721_v57  ;;  %vm3804_vm8 = vcmp.eq.s32.totalorder %v8958_v27, %v7887_v30 }
 0x454   :  { %vm3782_vm14 = vcmp.eq.s32.totalorder %v8957_v35, %v7869_v26  ;;  %vm8961_vm15 = vcmp.eq.s32.totalorder %v8957_v35, %v7863_v32  ;;  %v3683_v55 = vadd.f32 %v3680_v10, %v3679_v40  ;;  %vm8962_vm3 = vcmp.eq.s32.totalorder %v8955_v20, %v7867_v56 }
 0x455   :  { %v3723_v7 = vsel %vm8961_vm15, %v7919_v63, 0.0  ;;  %v3700_v17 = vsel %vm8962_vm3, %v7907_v8, 0.0  ;;  %vm8963_vm7 = vcmp.eq.s32.totalorder %v8956_v21, %v7867_v56  ;;  %v3664_v19 = vadd.f32 %v3663_v23, %v3661_v12 }
 0x456   :  { %v3701_v45 = vsel %vm8963_vm7, %v7921_v31, 0.0  ;;  %v3643_v48 = vadd.f32 %v3642_v36, %v3640_v33  ;;  %v3726_v5 = vadd.f32 %v3725_v14, %v3723_v7  ;;  %v3681_v15 = vsel %vm3677_vm2, %v7919_v63, 0.0 }
 0x457   :  { %v3724_v50 = vsel %vm3720_vm1, %v7935_v53, 0.0  ;;  %v3684_v11 = vadd.f32 %v3683_v55, %v3681_v15  ;;  %v3704_v54 = vadd.f32 %v3701_v45, %v3700_v17  ;;  %vm8964_vm13 = vcmp.eq.s32.totalorder %v8955_v20, %v7873_v46  ;;  %3665 = vadd.xlane.f32.xlu1 %v3664_v19 }
 0x458   :  { %v3763_v25 = vsel %vm8964_vm13, %v7907_v8, 0.0  ;;  %3644 = vadd.xlane.f32.xlu0 %v3643_v48  ;;  %v3727_v2 = vadd.f32 %v3726_v5, %v3724_v50  ;;  %v3682_v0 = vsel %vm3678_vm0, %v7935_v53, 0.0  ;;  %vm8965_vm2 = vcmp.eq.s32.totalorder %v8957_v35, %v7867_v56 }
 0x459   :  { %v3702_v60 = vsel %vm8965_vm2, %v7919_v63, 0.0  ;;  %vm8966_vm1 = vcmp.eq.s32.totalorder %v8956_v21, %v7873_v46  ;;  %v3685_v51 = vadd.f32 %v3684_v11, %v3682_v0  ;;  %vm8967_vm15 = vcmp.eq.s32.totalorder %v8955_v20, %v7865_v22 }
 0x45a   :  { %v3764_v38 = vsel %vm8966_vm1, %v7921_v31, 0.0  ;;  %v3705_v6 = vadd.f32 %v3704_v54, %v3702_v60  ;;  %v3742_v62 = vsel %vm8967_vm15, %v7907_v8, 0.0  ;;  %v3703_v58 = vsel %vm3699_vm11, %v7935_v53, 0.0 }
 0x45b   :  { %v3767_v59 = vadd.f32 %v3764_v38, %v3763_v25  ;;  %v3765_v61 = vsel %vm3761_vm12, %v7919_v63, 0.0  ;;  %vm8968_vm0 = vcmp.eq.s32.totalorder %v8956_v21, %v7865_v22  ;;  %vm8969_vm3 = vcmp.eq.s32.totalorder %v8955_v20, %v7887_v30  ;;  %3728 = vadd.xlane.f32.xlu1 %v3727_v2 }
 0x45c   :  { %v3743_v13 = vsel %vm8968_vm0, %v7921_v31, 0.0  ;;  %v3805_v28 = vsel %vm8969_vm3, %v7907_v8, 0.0  ;;  %v3706_v41 = vadd.f32 %v3705_v6, %v3703_v58  ;;  %vm8970_vm11 = vcmp.eq.s32.totalorder %v8956_v21, %v7887_v30  ;;  %3686 = vadd.xlane.f32.xlu0 %v3685_v51 }
 0x45d   :  { %v3768_v16 = vadd.f32 %v3767_v59, %v3765_v61  ;;  %v3746_v3 = vadd.f32 %v3743_v13, %v3742_v62  ;;  %v3806_v52 = vsel %vm8970_vm11, %v7921_v31, 0.0  ;;  %v3766_v9 = vsel %vm3762_vm4, %v7935_v53, 0.0 }
 0x45e   :  { %v3744_v37 = vsel %vm3740_vm6, %v7919_v63, 0.0  ;;  %v3809_v29 = vadd.f32 %v3806_v52, %v3805_v28  ;;  %vm8971_vm12 = vcmp.eq.s32.totalorder %v8955_v20, %v7869_v26  ;;  %v3807_v56 = vsel %vm3803_vm5, %v7919_v63, 0.0 }
 0x45f   :  { %v3784_v24 = vsel %vm8971_vm12, %v7907_v8, 0.0  ;;  %v3769_v32 = vadd.f32 %v3768_v16, %v3766_v9  ;;  %v3747_v1 = vadd.f32 %v3746_v3, %v3744_v37  ;;  %v3785_v46 = vsel %vm3781_vm9, %v7921_v31, 0.0 }
 0x460   :  { %v3745_v43 = vsel %vm3741_vm10, %v7935_v53, 0.0  ;;  %v3810_v18 = vadd.f32 %v3809_v29, %v3807_v56  ;;  %vm3783_vm4 = vcmp.eq.s32.totalorder %v8958_v27, %v7869_v26  ;;  %v3788_v8 = vadd.f32 %v3785_v46, %v3784_v24  ;;  %3707 = vadd.xlane.f32.xlu0 %v3706_v41 }
 0x461   :  { %v3748_v44 = vadd.f32 %v3747_v1, %v3745_v43  ;;  %v3808_v4 = vsel %vm3804_vm8, %v7935_v53, 0.0  ;;  %v3786_v21 = vsel %vm3782_vm14, %v7919_v63, 0.0  ;;  %3770 = vadd.xlane.f32.xlu1 %v3769_v32  ;;  %v3787_v57 = vsel %vm3783_vm4, %v7935_v53, 0.0 }
 0x462   :  { %v3811_v22 = vadd.f32 %v3810_v18, %v3808_v4  ;;  %v3789_v31 = vadd.f32 %v3788_v8, %v3786_v21  ;;  %vm3667_vm9 = vcmp.eq.s32.totalorder %v8955_v20, 1  ;;  %vm3646_vm6 = vcmp.eq.s32.totalorder %v8955_v20, 0 }
 0x463   :  { %vm3688_vm5 = vcmp.eq.s32.totalorder %v8955_v20, 2  ;;  %vm3709_vm10 = vcmp.eq.s32.totalorder %v8955_v20, 3  ;;  %vm3730_vm8 = vcmp.eq.s32.totalorder %v8955_v20, 4  ;;  %vm3751_vm14 = vcmp.eq.s32.totalorder %v8955_v20, 5 }
 0x464   :  { %v3790_v49 = vadd.f32 %v3789_v31, %v3787_v57  ;;  %3749 = vadd.xlane.f32.xlu0 %v3748_v44  ;;  %vm3772_vm7 = vcmp.eq.s32.totalorder %v8955_v20, 6  ;;  %vm3793_vm13 = vcmp.eq.s32.totalorder %v8955_v20, 7  ;;  %vm3814_vm2 = vcmp.eq.s32.totalorder %v8955_v20, 8 }
 0x465   :  { %3812 = vadd.xlane.f32.xlu1 %v3811_v22  ;;  %v8972_v11 = vmov 1.0   ;;  %vm3828_vm1 = vcmask 72704   ;;  %vm3841_vm15 = vcmask 7168  }
 0x466   :  { %v3819_v54 = vsel %vm3646_vm6, -1.0, %v8972_v11 }
 0x468   :  { %3791 = vadd.xlane.f32.xlu0 %v3790_v49 }
 0x4e4   :  { %v3666_v34 = vpop.xlane.xlu1 %3665 }
 0x4e5   :  { %v3645_v27 = vpop.xlane.xlu0 %3644  ;;  %v3670_v26 = vsel %vm3667_vm9, %v3666_v34, 0.0 }
 0x4e6   :  { %v3649_v35 = vsel %vm3646_vm6, %v3645_v27, 0.0 }
 0x4e7   :  { %v3671_v53 = vadd.f32 %v3670_v26, %v3649_v35 }
 0x4e8   :  { %v3729_v30 = vpop.xlane.xlu1 %3728 }
 0x4e9   :  { %v3687_v63 = vpop.xlane.xlu0 %3686  ;;  %v3733_v23 = vsel %vm3730_vm8, %v3729_v30, 0.0 }
 0x4ea   :  { %v3691_v42 = vsel %vm3688_vm5, %v3687_v63, 0.0 }
 0x4eb   :  { %v3692_v40 = vadd.f32 %v3691_v42, %v3671_v53 }
 0x4ed   :  { %v3708_v12 = vpop.xlane.xlu0 %3707 }
 0x4ee   :  { %v3712_v39 = vsel %vm3709_vm10, %v3708_v12, 0.0  ;;  %v3771_v47 = vpop.xlane.xlu1 %3770 }
 0x4ef   :  { %v3713_v10 = vadd.f32 %v3712_v39, %v3692_v40  ;;  %v3775_v55 = vsel %vm3772_vm7, %v3771_v47, 0.0 }
 0x4f1   :  { %v3734_v33 = vadd.f32 %v3733_v23, %v3713_v10  ;;  %v3750_v36 = vpop.xlane.xlu0 %3749 }
 0x4f2   :  { %v3754_v14 = vsel %vm3751_vm14, %v3750_v36, 0.0  ;;  %v3813_v17 = vpop.xlane.xlu1 %3812 }
 0x4f3   :  { %v3755_v7 = vadd.f32 %v3754_v14, %v3734_v33  ;;  %v3817_v15 = vsel %vm3814_vm2, %v3813_v17, 0.0 }
 0x4f5   :  { %v3776_v45 = vadd.f32 %v3775_v55, %v3755_v7  ;;  %v3792_v19 = vpop.xlane.xlu0 %3791 }
 0x4f6   :  { %v3796_v48 = vsel %vm3793_vm13, %v3792_v19, 0.0 }
 0x4f7   :  { %v3797_v5 = vadd.f32 %v3796_v48, %v3776_v45 }
 0x4f9   :  { %v3818_v50 = vadd.f32 %v3817_v15, %v3797_v5 }
 0x4fb   :  { %v3887_v25 = vclamps-f32 %v3818_v50, 10.0 }
 0x4fd   :  { %v3822_v2 = vmul.f32 %v3887_v25, %v3819_v54 }
 0x4ff   :  { %v3823_v0 = vmul.f32 1.442695, %v3822_v2 }
 0x501   :  { %5532 = vpow2.f32 %v3823_v0 }
 0x50b   :  { %v5533_v60 = vpop.eup %5532 }
 0x50c   :  { %v3825_v38 = vadd.f32 1.0, %v5533_v60 }
 0x50e   :  { %5534 = vlog2.f32 %v3825_v38 }
 0x518   :  { %v5535_v51 = vpop.eup %5534 }
 0x519   :  { %v3827_v6 = vmul.f32 0.6931472, %v5535_v51 }
 0x51b   :  { %v3829_v59 = vsel %vm3828_vm1, %v3827_v6, 0.0 }
 0x51c   :  { %3830 = vadd.xlane.f32.xlu0 %v3829_v59 }
 0x5a9   :  { %v3831_v62 = vpop.xlane.xlu0 %3830 }
 0x5aa   :  { %v3842_v58 = vsel %vm3841_vm15, %v3831_v62, 0.0 }
 0x5ab   :  { %3843 = vadd.xlane.f32.xlu1 %v3842_v58 }
 0x638   :  { %v3844_v61 = vpop.xlane.xlu1 %3843 }
 0x639   :  { %v3845_v13 = vrot.slane %v3844_v61, 4 }
 0x63b   :  { %v3846_v20 = vadd.f32 %v3845_v13, %v3844_v61 }
 0x63d   :  { %v3847_v28 = vrot.slane %v3846_v20, 2 }
 0x63f   :  { %v3848_v41 = vadd.f32 %v3847_v28, %v3846_v20 }
 0x641   :  { %v3849_v16 = vrot.slane %v3848_v41, 1 }
 0x643   :  { %v3850_v3 = vadd.f32 %v3849_v16, %v3848_v41 }
 0x645   :  { %5504 = vpush %v3850_v3 }
 0x676   :  { %s5505_s19 = spop %5504 }
 0x677   :  { %v3852_v52 = vstv %s5505_s19 }
 0x678   :  { %3854 = vst [vmem:[#allocation7] sm:$0x1] %v3852_v52 }
 0x679   :  { %5592 = shalt.err (!%p5589_p6)
}
 0x67a   :  { %s5593_s24 = scalar_lea.hbm %s8110_s4, 16 }
 0x67b   :  { %p5594_p7 = scmp.ne.s32.totalorder %s8110_s4, %s5593_s24  ;;  %p5597_p8 = scmp.lt.u32.totalorder %s5593_s24, %s8110_s4 }
 0x67d   :  { %p5599_p9 = pnand %p5597_p8, %p5594_p7 }
 0x67f   :  { %5602 = shalt.err (!%p5599_p9)
}
 0x680   :  { %3864 = dma.vmem_to_hbm [thread:$0]  %s3862_s18, 16, %s8110_s4, [#allocation4]  }
 0x681   :  { %5607 = dma.done.wait [#allocation4], 16  }
 0x682   :  { %5608 = vsyncadd [#allocation4], 4294967280 }
 0x683   :  { %3868 = vsyncpa [#allocation3], 1 }
 0x684   :  { %3869 = vsyncpa [#allocation6], 1 }
 0x685   :  { %3870 = vsyncpa [#allocation4], 1 }

// kernel: tpu_custom_call.1
= control target key start
LH: loop header
LB: loop body
LE: loop exit
PB: predicated region body
PF: predicated region fallthrough
CT: control target
= control target key end

     0   :  { %9 = vsyncpa [#allocation3], 0  ;;  %s1442_s0 = inlined_call_operand.vmem [shape: s32[8,1], index: 0, kind: input, shape index: {}]   ;;  %s1443_s1 = inlined_call_operand.vmem [shape: s32[8,9], index: 1, kind: input, shape index: {}]   ;;  %s1444_s2 = inlined_call_operand.hbm [shape: f32[512,128], index: 2, kind: input, shape index: {}]   ;;  %s1445_s3 = inlined_call_operand.hbm [shape: f32[512,128], index: 3, kind: input, shape index: {}]   ;;  %s1446_s4 = inlined_call_operand.hbm [shape: f32[1,1,128], index: 4, kind: output, shape index: {}]  }
   0x1   :  { %10 = vsyncpa [#allocation6], 0 }
   0x2   :  { %11 = vsyncpa [#allocation4], 0  ;;  %s1097_s15 = smov [#allocation2]   ;;  %s1025_s19 = scalar_lea.hbm %s1444_s2, 8192 }
   0x3   :  { %s21_s16 = sshll.u32 %s1097_s15, 4  ;;  %p1026_p0 = scmp.ne.s32.totalorder %s1444_s2, %s1025_s19  ;;  %s22_s16 = int_to_ptr.vmem [resolvable:$true] %s21_s16 }
   0x4   :  { %p1029_p1 = scmp.lt.u32.totalorder %s1025_s19, %s1444_s2 }
   0x6   :  { %p1031_p2 = pnand %p1029_p1, %p1026_p0 }
   0x8   :  { %1034 = shalt.err (!%p1031_p2)
}
   0x9   :  { %s1035_s24 = scalar_lea.vmem %s22_s16, 8192  ;;  %p1040_p4 = scmp.lt.s32.totalorder %s22_s16, %s22_s16 }
   0xa   :  { %p1036_p3 = scmp.ne.s32.totalorder %s22_s16, %s1035_s24  ;;  %p1041_p5 = scmp.lt.s32.totalorder %s1035_s24, %s1035_s24 }
   0xc   :  { %p1042_p6 = por %p1041_p5, %p1040_p4 }
   0xe   :  { %p1043_p7 = pnand %p1042_p6, %p1036_p3 }
  0x10   :  { %1046 = shalt.err (!%p1043_p7)
}
  0x11   :  { %s1098_s25 = smov 128   ;;  %s1099_s26 = smov 8  }
  0x12   :  { %27 = dma.hbm_to_vmem [thread:$0]  %s1444_s2, 8192, %s22_s16, [#allocation3], %s1098_s25, %s1098_s25, %s1099_s26  }
  0x13   :  { %s1100_s29 = smov [#allocation5]   ;;  %s1047_s7 = scalar_lea.hbm %s1445_s3, 8192 }
  0x14   :  { %s33_s30 = sshll.u32 %s1100_s29, 4  ;;  %p1048_p8 = scmp.ne.s32.totalorder %s1445_s3, %s1047_s7  ;;  %s34_s30 = int_to_ptr.vmem [resolvable:$true] %s33_s30 }
  0x15   :  { %p1051_p9 = scmp.lt.u32.totalorder %s1047_s7, %s1445_s3 }
  0x17   :  { %p1053_p10 = pnand %p1051_p9, %p1048_p8 }
  0x19   :  { %1056 = shalt.err (!%p1053_p10)
}
  0x1a   :  { %s1057_s12 = scalar_lea.vmem %s34_s30, 8192  ;;  %p1062_p12 = scmp.lt.s32.totalorder %s34_s30, %s34_s30 }
  0x1b   :  { %p1058_p11 = scmp.ne.s32.totalorder %s34_s30, %s1057_s12  ;;  %p1063_p13 = scmp.lt.s32.totalorder %s1057_s12, %s1057_s12 }
  0x1d   :  { %p1064_p0 = por %p1063_p13, %p1062_p12 }
  0x1f   :  { %p1065_p1 = pnand %p1064_p0, %p1058_p11 }
  0x21   :  { %1068 = shalt.err (!%p1065_p1)
}
  0x22   :  { %39 = dma.hbm_to_vmem [thread:$0]  %s1445_s3, 8192, %s34_s30, [#allocation6], %s1098_s25, %s1098_s25, %s1099_s26  }
  0x23   :  { %1091 = dma.done.wait [#allocation3], 8192  }
  0x24   :  { %1092 = vsyncadd [#allocation3], 4294959104 }
  0x25   :  { %1093 = dma.done.wait [#allocation6], 8192  }
  0x26   :  { %1094 = vsyncadd [#allocation6], 4294959104  ;;  %v1101_v0 = vmov 0   ;;  %v46_v1 = vld [vmem:[%s1442_s0] sm:$0xff]  ;;  %v64_v3 = vld [vmem:[#allocation2 + $0x80] sm:$0xff]  ;;  %s1111_s0 = smov [#allocation7]  }
  0x27   :  { %1011 = vset.pattern.permute.xlu0 %v1101_v0  ;;  %v1167_v2 = vld [vmem:[%s1443_s1] sm:$0xff]  ;;  %v65_v4 = vld [vmem:[#allocation2 + $0x88] sm:$0xff]  ;;  %v96_v5 = vld [vmem:[#allocation2 + $0x180] sm:$0xff]  ;;  %s709_s1 = sshll.u32 %s1111_s0, 4  ;;  %s710_s1 = int_to_ptr.vmem [resolvable:$true] %s709_s1 }
  0x28   :  { %182 = vperm.xlu0 %1011, %v46_v1   ;;  %v97_v6 = vld [vmem:[#allocation2 + $0x188] sm:$0xff]  ;;  %v866_v7 = vpack.c.bf16 %v65_v4, %v64_v3  ;;  %v48_v9 = vld [vmem:[#allocation2] sm:$0xff]  ;;  %v66_v14 = vld [vmem:[#allocation2 + $0x90] sm:$0xff]  ;;  %s1069_s18 = scalar_lea.vmem %s710_s1, 16  ;;  %s1073_s19 = scalar_lea.vmem %s710_s1, 32 }
  0x29   :  { %v898_v8 = vpack.c.bf16 %v97_v6, %v96_v5  ;;  %v49_v10 = vld [vmem:[#allocation2 + $0x8] sm:$0xff]  ;;  %v80_v11 = vld [vmem:[#allocation2 + $0x100] sm:$0xff]  ;;  %v67_v15 = vld [vmem:[#allocation2 + $0x98] sm:$0xff]  ;;  %p1070_p2 = scmp.ne.s32.totalorder %s710_s1, %s1069_s18  ;;  %p1074_p3 = scmp.lt.s32.totalorder %s710_s1, %s710_s1 }
  0x2a   :  { %v868_v12 = vpack.c.bf16 %v49_v10, %v48_v9  ;;  %v81_v13 = vld [vmem:[#allocation2 + $0x108] sm:$0xff]  ;;  %867 = vmatprep.subr.bf16.mxu0 %v866_v7  ;;  %v870_v17 = vpack.c.bf16 %v67_v15, %v66_v14  ;;  %v98_v18 = vld [vmem:[#allocation2 + $0x190] sm:$0xff]  ;;  %v99_v19 = vld [vmem:[#allocation2 + $0x198] sm:$0xff]  ;;  %p1075_p4 = scmp.lt.s32.totalorder %s1073_s19, %s1069_s18 }
  0x2b   :  { %899 = vmatprep.subr.bf16.mxu1 %v898_v8  ;;  %v900_v16 = vpack.c.bf16 %v81_v13, %v80_v11  ;;  %v50_v20 = vld [vmem:[#allocation2 + $0x10] sm:$0xff]  ;;  %v902_v21 = vpack.c.bf16 %v99_v19, %v98_v18  ;;  %v51_v22 = vld [vmem:[#allocation2 + $0x18] sm:$0xff]  ;;  %v68_v27 = vld [vmem:[#allocation2 + $0xa0] sm:$0xff] }
  0x2c   :  { %479 = vperm.xlu0 %1011, %v1167_v2   ;;  %869 = vmatpush3.bf16.msra.mxu0 %v868_v12  ;;  %v82_v23 = vld [vmem:[#allocation2 + $0x110] sm:$0xff]  ;;  %v83_v24 = vld [vmem:[#allocation2 + $0x118] sm:$0xff]  ;;  %v872_v25 = vpack.c.bf16 %v51_v22, %v50_v20  ;;  %v69_v28 = vld [vmem:[#allocation2 + $0xa8] sm:$0xff]  ;;  %p1076_p5 = por %p1075_p4, %p1074_p3 }
  0x2d   :  { %901 = vmatpush3.bf16.msra.mxu1 %v900_v16  ;;  %871 = vmatprep.subr.bf16.mxu0 %v870_v17  ;;  %v904_v26 = vpack.c.bf16 %v83_v24, %v82_v23  ;;  %v100_v29 = vld [vmem:[#allocation2 + $0x1a0] sm:$0xff]  ;;  %v874_v30 = vpack.c.bf16 %v69_v28, %v68_v27  ;;  %v101_v31 = vld [vmem:[#allocation2 + $0x1a8] sm:$0xff]  ;;  %v70_v37 = vld [vmem:[#allocation2 + $0xb0] sm:$0xff] }
  0x2e   :  { %903 = vmatprep.subr.bf16.mxu1 %v902_v21  ;;  %v52_v32 = vld [vmem:[#allocation2 + $0x20] sm:$0xff]  ;;  %v53_v33 = vld [vmem:[#allocation2 + $0x28] sm:$0xff]  ;;  %v906_v34 = vpack.c.bf16 %v101_v31, %v100_v29  ;;  %v71_v39 = vld [vmem:[#allocation2 + $0xb8] sm:$0xff]  ;;  %p1077_p6 = pnand %p1076_p5, %p1070_p2 }
  0x2f   :  { %v84_v35 = vld [vmem:[#allocation2 + $0x120] sm:$0xff]  ;;  %v85_v36 = vld [vmem:[#allocation2 + $0x128] sm:$0xff]  ;;  %v876_v38 = vpack.c.bf16 %v53_v33, %v52_v32  ;;  %v102_v40 = vld [vmem:[#allocation2 + $0x1b0] sm:$0xff]  ;;  %v878_v43 = vpack.c.bf16 %v71_v39, %v70_v37 }
  0x30   :  { %873 = vmatpush3.bf16.msra.mxu0 %v872_v25  ;;  %v103_v41 = vld [vmem:[#allocation2 + $0x1b8] sm:$0xff]  ;;  %v908_v42 = vpack.c.bf16 %v85_v36, %v84_v35  ;;  %v54_v44 = vld [vmem:[#allocation2 + $0x30] sm:$0xff]  ;;  %v72_v49 = vld [vmem:[#allocation2 + $0xc0] sm:$0xff] }
  0x31   :  { %905 = vmatpush3.bf16.msra.mxu1 %v904_v26  ;;  %875 = vmatprep.subr.bf16.mxu0 %v874_v30  ;;  %v55_v45 = vld [vmem:[#allocation2 + $0x38] sm:$0xff]  ;;  %v86_v46 = vld [vmem:[#allocation2 + $0x130] sm:$0xff]  ;;  %v910_v47 = vpack.c.bf16 %v103_v41, %v102_v40  ;;  %v73_v50 = vld [vmem:[#allocation2 + $0xc8] sm:$0xff] }
  0x32   :  { %907 = vmatprep.subr.bf16.mxu1 %v906_v34  ;;  %v87_v48 = vld [vmem:[#allocation2 + $0x138] sm:$0xff]  ;;  %v104_v51 = vld [vmem:[#allocation2 + $0x1c0] sm:$0xff]  ;;  %v105_v52 = vld [vmem:[#allocation2 + $0x1c8] sm:$0xff]  ;;  %v880_v53 = vpack.c.bf16 %v55_v45, %v54_v44  ;;  %v882_v55 = vpack.c.bf16 %v73_v50, %v72_v49 }
  0x33   :  { %v912_v54 = vpack.c.bf16 %v87_v48, %v86_v46  ;;  %v56_v56 = vld [vmem:[#allocation2 + $0x40] sm:$0xff]  ;;  %v57_v57 = vld [vmem:[#allocation2 + $0x48] sm:$0xff]  ;;  %v914_v59 = vpack.c.bf16 %v105_v52, %v104_v51  ;;  %v74_v61 = vld [vmem:[#allocation2 + $0xd0] sm:$0xff] }
  0x34   :  { %877 = vmatpush3.bf16.msra.mxu0 %v876_v38  ;;  %v88_v58 = vld [vmem:[#allocation2 + $0x140] sm:$0xff]  ;;  %v89_v60 = vld [vmem:[#allocation2 + $0x148] sm:$0xff]  ;;  %v75_v62 = vld [vmem:[#allocation2 + $0xd8] sm:$0xff]  ;;  %v884_v1 = vpack.c.bf16 %v57_v57, %v56_v56 }
  0x35   :  { %909 = vmatpush3.bf16.msra.mxu1 %v908_v42  ;;  %879 = vmatprep.subr.bf16.mxu0 %v878_v43  ;;  %v106_v63 = vld [vmem:[#allocation2 + $0x1d0] sm:$0xff]  ;;  %v107_v0 = vld [vmem:[#allocation2 + $0x1d8] sm:$0xff]  ;;  %v916_v3 = vpack.c.bf16 %v89_v60, %v88_v58  ;;  %v886_v4 = vpack.c.bf16 %v75_v62, %v74_v61  ;;  %v76_v10 = vld [vmem:[#allocation2 + $0xe0] sm:$0xff]  ;;  %v176_v42 = vlaneseq  ;;  %v1102_v60 = vmov 1.0  }
  0x36   :  { %911 = vmatprep.subr.bf16.mxu1 %v910_v47  ;;  %v58_v5 = vld [vmem:[#allocation2 + $0x50] sm:$0xff]  ;;  %v59_v6 = vld [vmem:[#allocation2 + $0x58] sm:$0xff]  ;;  %v918_v8 = vpack.c.bf16 %v107_v0, %v106_v63  ;;  %v77_v11 = vld [vmem:[#allocation2 + $0xe8] sm:$0xff] }
  0x37   :  { %v90_v7 = vld [vmem:[#allocation2 + $0x150] sm:$0xff]  ;;  %v91_v9 = vld [vmem:[#allocation2 + $0x158] sm:$0xff]  ;;  %v108_v12 = vld [vmem:[#allocation2 + $0x1e0] sm:$0xff]  ;;  %v888_v14 = vpack.c.bf16 %v59_v6, %v58_v5  ;;  %v890_v16 = vpack.c.bf16 %v77_v11, %v76_v10  ;;  %v1170_v43 = vand.u32 127, %v176_v42 }
  0x38   :  { %881 = vmatpush3.bf16.msra.mxu0 %v880_v53  ;;  %v109_v13 = vld [vmem:[#allocation2 + $0x1e8] sm:$0xff]  ;;  %v920_v15 = vpack.c.bf16 %v91_v9, %v90_v7  ;;  %v60_v17 = vld [vmem:[#allocation2 + $0x60] sm:$0xff]  ;;  %v78_v22 = vld [vmem:[#allocation2 + $0xf0] sm:$0xff] }
  0x39   :  { %913 = vmatpush3.bf16.msra.mxu1 %v912_v54  ;;  %883 = vmatprep.subr.bf16.mxu0 %v882_v55  ;;  %v61_v18 = vld [vmem:[#allocation2 + $0x68] sm:$0xff]  ;;  %v92_v19 = vld [vmem:[#allocation2 + $0x160] sm:$0xff]  ;;  %v922_v20 = vpack.c.bf16 %v109_v13, %v108_v12  ;;  %v79_v23 = vld [vmem:[#allocation2 + $0xf8] sm:$0xff]  ;;  %v1173_v49 = vadd.s32 128, %v1170_v43  ;;  %v1176_v50 = vadd.s32 384, %v1170_v43  ;;  %v1179_v51 = vadd.s32 256, %v1170_v43 }
  0x3a   :  { %915 = vmatprep.subr.bf16.mxu1 %v914_v59  ;;  %v93_v21 = vld [vmem:[#allocation2 + $0x168] sm:$0xff]  ;;  %v110_v24 = vld [vmem:[#allocation2 + $0x1f0] sm:$0xff]  ;;  %v111_v25 = vld [vmem:[#allocation2 + $0x1f8] sm:$0xff]  ;;  %v892_v26 = vpack.c.bf16 %v61_v18, %v60_v17  ;;  %v894_v28 = vpack.c.bf16 %v79_v23, %v78_v22 }
  0x3b   :  { %v924_v27 = vpack.c.bf16 %v93_v21, %v92_v19  ;;  %v62_v29 = vld [vmem:[#allocation2 + $0x70] sm:$0xff]  ;;  %v63_v30 = vld [vmem:[#allocation2 + $0x78] sm:$0xff]  ;;  %v926_v32 = vpack.c.bf16 %v111_v25, %v110_v24  ;;  %v128_v34 = vld [vmem:[#allocation5 + $0x80] sm:$0xff] }
  0x3c   :  { %885 = vmatpush3.bf16.msra.mxu0 %v884_v1  ;;  %v94_v31 = vld [vmem:[#allocation2 + $0x170] sm:$0xff]  ;;  %v95_v33 = vld [vmem:[#allocation2 + $0x178] sm:$0xff]  ;;  %v129_v35 = vld [vmem:[#allocation5 + $0x88] sm:$0xff]  ;;  %v896_v38 = vpack.c.bf16 %v63_v30, %v62_v29 }
  0x3d   :  { %917 = vmatpush3.bf16.msra.mxu1 %v916_v3  ;;  %887 = vmatprep.subr.bf16.mxu0 %v886_v4  ;;  %v160_v36 = vld [vmem:[#allocation5 + $0x180] sm:$0xff]  ;;  %v161_v37 = vld [vmem:[#allocation5 + $0x188] sm:$0xff]  ;;  %v928_v39 = vpack.c.bf16 %v95_v33, %v94_v31  ;;  %v930_v40 = vpack.c.bf16 %v129_v35, %v128_v34  ;;  %v130_v48 = vld [vmem:[#allocation5 + $0x90] sm:$0xff] }
  0x3e   :  { %919 = vmatprep.subr.bf16.mxu1 %v918_v8  ;;  %v962_v41 = vpack.c.bf16 %v161_v37, %v160_v36  ;;  %v112_v44 = vld [vmem:[#allocation5] sm:$0xff]  ;;  %v113_v45 = vld [vmem:[#allocation5 + $0x8] sm:$0xff]  ;;  %v131_v52 = vld [vmem:[#allocation5 + $0x98] sm:$0xff] }
  0x3f   :  { %v144_v46 = vld [vmem:[#allocation5 + $0x100] sm:$0xff]  ;;  %v145_v47 = vld [vmem:[#allocation5 + $0x108] sm:$0xff]  ;;  %v162_v53 = vld [vmem:[#allocation5 + $0x190] sm:$0xff]  ;;  %v932_v56 = vpack.c.bf16 %v113_v45, %v112_v44  ;;  %v934_v58 = vpack.c.bf16 %v131_v52, %v130_v48 }
  0x40   :  { %889 = vmatpush3.bf16.msra.mxu0 %v888_v14  ;;  %v163_v54 = vld [vmem:[#allocation5 + $0x198] sm:$0xff]  ;;  %v964_v57 = vpack.c.bf16 %v145_v47, %v144_v46  ;;  %v114_v61 = vld [vmem:[#allocation5 + $0x10] sm:$0xff]  ;;  %v132_v1 = vld [vmem:[#allocation5 + $0xa0] sm:$0xff] }
  0x41   :  { %921 = vmatpush3.bf16.msra.mxu1 %v920_v15  ;;  %891 = vmatprep.subr.bf16.mxu0 %v890_v16  ;;  %v966_v59 = vpack.c.bf16 %v163_v54, %v162_v53  ;;  %v115_v62 = vld [vmem:[#allocation5 + $0x18] sm:$0xff]  ;;  %v146_v63 = vld [vmem:[#allocation5 + $0x110] sm:$0xff]  ;;  %v133_v3 = vld [vmem:[#allocation5 + $0xa8] sm:$0xff] }
  0x42   :  { %923 = vmatprep.subr.bf16.mxu1 %v922_v20  ;;  %v147_v0 = vld [vmem:[#allocation5 + $0x118] sm:$0xff]  ;;  %v164_v4 = vld [vmem:[#allocation5 + $0x1a0] sm:$0xff]  ;;  %v165_v5 = vld [vmem:[#allocation5 + $0x1a8] sm:$0xff]  ;;  %v936_v6 = vpack.c.bf16 %v115_v62, %v114_v61  ;;  %v938_v8 = vpack.c.bf16 %v133_v3, %v132_v1 }
  0x43   :  { %v968_v7 = vpack.c.bf16 %v147_v0, %v146_v63  ;;  %v970_v9 = vpack.c.bf16 %v165_v5, %v164_v4  ;;  %v116_v10 = vld [vmem:[#allocation5 + $0x20] sm:$0xff]  ;;  %v117_v11 = vld [vmem:[#allocation5 + $0x28] sm:$0xff]  ;;  %v134_v14 = vld [vmem:[#allocation5 + $0xb0] sm:$0xff] }
  0x44   :  { %893 = vmatpush3.bf16.msra.mxu0 %v892_v26  ;;  %v148_v12 = vld [vmem:[#allocation5 + $0x120] sm:$0xff]  ;;  %v149_v13 = vld [vmem:[#allocation5 + $0x128] sm:$0xff]  ;;  %v135_v15 = vld [vmem:[#allocation5 + $0xb8] sm:$0xff]  ;;  %v940_v18 = vpack.c.bf16 %v117_v11, %v116_v10 }
  0x45   :  { %925 = vmatpush3.bf16.msra.mxu1 %v924_v27  ;;  %895 = vmatprep.subr.bf16.mxu0 %v894_v28  ;;  %v166_v16 = vld [vmem:[#allocation5 + $0x1b0] sm:$0xff]  ;;  %v167_v17 = vld [vmem:[#allocation5 + $0x1b8] sm:$0xff]  ;;  %v972_v19 = vpack.c.bf16 %v149_v13, %v148_v12  ;;  %v942_v20 = vpack.c.bf16 %v135_v15, %v134_v14  ;;  %v136_v26 = vld [vmem:[#allocation5 + $0xc0] sm:$0xff] }
  0x46   :  { %927 = vmatprep.subr.bf16.mxu1 %v926_v32  ;;  %v974_v21 = vpack.c.bf16 %v167_v17, %v166_v16  ;;  %v118_v22 = vld [vmem:[#allocation5 + $0x30] sm:$0xff]  ;;  %v119_v23 = vld [vmem:[#allocation5 + $0x38] sm:$0xff]  ;;  %v137_v27 = vld [vmem:[#allocation5 + $0xc8] sm:$0xff] }
  0x47   :  { %v150_v24 = vld [vmem:[#allocation5 + $0x130] sm:$0xff]  ;;  %v151_v25 = vld [vmem:[#allocation5 + $0x138] sm:$0xff]  ;;  %v168_v28 = vld [vmem:[#allocation5 + $0x1c0] sm:$0xff]  ;;  %v944_v30 = vpack.c.bf16 %v119_v23, %v118_v22  ;;  %v946_v32 = vpack.c.bf16 %v137_v27, %v136_v26  ;;  %v1107_v22 = vmov 4   ;;  %v1108_v23 = vmov 8  }
  0x48   :  { %897 = vmatpush3.bf16.msra.mxu0 %v896_v38  ;;  %v169_v29 = vld [vmem:[#allocation5 + $0x1c8] sm:$0xff]  ;;  %v976_v31 = vpack.c.bf16 %v151_v25, %v150_v24  ;;  %v120_v34 = vld [vmem:[#allocation5 + $0x40] sm:$0xff]  ;;  %v138_v38 = vld [vmem:[#allocation5 + $0xd0] sm:$0xff]  ;;  %v1109_v24 = vmov 5   ;;  %v1110_v25 = vmov 7  }
  0x49   :  { %929 = vmatpush3.bf16.msra.mxu1 %v928_v39  ;;  %931 = vmatprep.subr.bf16.mxu0 %v930_v40  ;;  %v978_v33 = vpack.c.bf16 %v169_v29, %v168_v28  ;;  %v121_v35 = vld [vmem:[#allocation5 + $0x48] sm:$0xff]  ;;  %v152_v36 = vld [vmem:[#allocation5 + $0x140] sm:$0xff]  ;;  %v139_v39 = vld [vmem:[#allocation5 + $0xd8] sm:$0xff] }
  0x4a   :  { %963 = vmatprep.subr.bf16.mxu1 %v962_v41  ;;  %v153_v37 = vld [vmem:[#allocation5 + $0x148] sm:$0xff]  ;;  %v170_v40 = vld [vmem:[#allocation5 + $0x1d0] sm:$0xff]  ;;  %v171_v41 = vld [vmem:[#allocation5 + $0x1d8] sm:$0xff]  ;;  %v948_v42 = vpack.c.bf16 %v121_v35, %v120_v34  ;;  %v950_v45 = vpack.c.bf16 %v139_v39, %v138_v38 }
  0x4b   :  { %v980_v44 = vpack.c.bf16 %v153_v37, %v152_v36  ;;  %v982_v46 = vpack.c.bf16 %v171_v41, %v170_v40  ;;  %v122_v47 = vld [vmem:[#allocation5 + $0x50] sm:$0xff]  ;;  %v123_v48 = vld [vmem:[#allocation5 + $0x58] sm:$0xff]  ;;  %v140_v54 = vld [vmem:[#allocation5 + $0xe0] sm:$0xff] }
  0x4c   :  { %v154_v52 = vld [vmem:[#allocation5 + $0x150] sm:$0xff]  ;;  %v155_v53 = vld [vmem:[#allocation5 + $0x158] sm:$0xff]  ;;  %v124_v63 = vld [vmem:[#allocation5 + $0x60] sm:$0xff] }
  0x4d   :  { %v125_v0 = vld [vmem:[#allocation5 + $0x68] sm:$0xff]  ;;  %v156_v1 = vld [vmem:[#allocation5 + $0x160] sm:$0xff]  ;;  %v142_v4 = vld [vmem:[#allocation5 + $0xf0] sm:$0xff] }
  0x4e   :  { %v157_v3 = vld [vmem:[#allocation5 + $0x168] sm:$0xff]  ;;  %v143_v5 = vld [vmem:[#allocation5 + $0xf8] sm:$0xff]  ;;  %v126_v12 = vld [vmem:[#allocation5 + $0x70] sm:$0xff] }
  0x4f   :  { %v958_v10 = vpack.c.bf16 %v143_v5, %v142_v4  ;;  %v127_v13 = vld [vmem:[#allocation5 + $0x78] sm:$0xff]  ;;  %v158_v14 = vld [vmem:[#allocation5 + $0x170] sm:$0xff] }
  0x50   :  { %v960_v15 = vpack.c.bf16 %v127_v13, %v126_v12  ;;  %v159_v16 = vld [vmem:[#allocation5 + $0x178] sm:$0xff] }
  0x51   :  { %v992_v17 = vpack.c.bf16 %v159_v16, %v158_v14 }
  0xa7   :  { %v183_v55 = vpop.permute.xlu0 %182 }
  0xa8   :  { %vm185_vm0 = vcmp.eq.s32.totalorder %v183_v55, %v1173_v49  ;;  %vm187_vm1 = vcmp.eq.s32.totalorder %v183_v55, %v1176_v50  ;;  %vm184_vm2 = vcmp.eq.s32.totalorder %v183_v55, %v1170_v43  ;;  %vm186_vm3 = vcmp.eq.s32.totalorder %v183_v55, %v1179_v51  ;;  %v141_v55 = vld [vmem:[#allocation5 + $0xe8] sm:$0xff] }
  0xa9   :  { %723 = vmatprep.mubr.msk.f32.mxu0 %vm185_vm0, %v1102_v60  ;;  %725 = vmatprep.mubr.msk.f32.mxu1 %vm187_vm1, %v1102_v60  ;;  %v954_v61 = vpack.c.bf16 %v141_v55, %v140_v54 }
  0xaa   :  { %724 = vmatmul.mubr.msk.f32.vlgmr.msra.gmra.mrb[0].mxu0 %vm184_vm2, %v1102_v60  ;;  %726 = vmatmul.mubr.msk.f32.vlgmr.msra.gmra.mrb[0].mxu1 %vm186_vm3, %v1102_v60 }
  0xab   :  { %933 = vmatpush3.bf16.xpose.msra.mxu0 %v932_v56  ;;  %965 = vmatpush3.bf16.xpose.msra.mxu1 %v964_v57  ;;  %v172_v56 = vld [vmem:[#allocation5 + $0x1e0] sm:$0xff]  ;;  %v173_v57 = vld [vmem:[#allocation5 + $0x1e8] sm:$0xff]  ;;  %v480_v36 = vpop.permute.xlu0 %479 }
  0xac   :  { %935 = vmatprep.subr.bf16.mxu0 %v934_v58  ;;  %967 = vmatprep.subr.bf16.mxu1 %v966_v59  ;;  %v952_v58 = vpack.c.bf16 %v123_v48, %v122_v47  ;;  %v984_v59 = vpack.c.bf16 %v155_v53, %v154_v52  ;;  %v986_v62 = vpack.c.bf16 %v173_v57, %v172_v56 }
  0xad   :  { %vm481_vm4 = vcmp.eq.s32.totalorder %v1170_v43, %v480_v36  ;;  %vm482_vm5 = vcmp.eq.s32.totalorder %v1173_v49, %v480_v36  ;;  %vm483_vm8 = vcmp.eq.s32.totalorder %v1179_v51, %v480_v36  ;;  %vm484_vm9 = vcmp.eq.s32.totalorder %v1176_v50, %v480_v36 }
  0xb3   :  { %937 = vmatpush3.bf16.xpose.msra.mxu0 %v936_v6  ;;  %969 = vmatpush3.bf16.xpose.msra.mxu1 %v968_v7  ;;  %v174_v6 = vld [vmem:[#allocation5 + $0x1f0] sm:$0xff]  ;;  %v175_v7 = vld [vmem:[#allocation5 + $0x1f8] sm:$0xff] }
  0xb4   :  { %939 = vmatprep.subr.bf16.mxu0 %v938_v8  ;;  %971 = vmatprep.subr.bf16.mxu1 %v970_v9  ;;  %v956_v8 = vpack.c.bf16 %v125_v0, %v124_v63  ;;  %v988_v9 = vpack.c.bf16 %v157_v3, %v156_v1  ;;  %v990_v11 = vpack.c.bf16 %v175_v7, %v174_v6 }
  0xbb   :  { %941 = vmatpush3.bf16.xpose.msra.mxu0 %v940_v18  ;;  %973 = vmatpush3.bf16.xpose.msra.mxu1 %v972_v19  ;;  %v1103_v18 = vmov 1   ;;  %v1104_v19 = vmov 3  }
  0xbc   :  { %943 = vmatprep.subr.bf16.mxu0 %v942_v20  ;;  %975 = vmatprep.subr.bf16.mxu1 %v974_v21  ;;  %v1105_v20 = vmov 2   ;;  %v1106_v21 = vmov 6  }
  0xbd   :  { %1012 = vset.pattern.permute.xlu1 %v1103_v18  ;;  %1014 = vset.pattern.permute.xlu0 %v1104_v19 }
  0xbe   :  { %500 = vperm.xlu1 %1012, %v1167_v2   ;;  %542 = vperm.xlu0 %1014, %v1167_v2  }
  0xc2   :  { %1013 = vset.pattern.permute.xlu1 %v1105_v20  ;;  %1017 = vset.pattern.permute.xlu0 %v1106_v21 }
  0xc3   :  { %945 = vmatpush3.bf16.xpose.msra.mxu0 %v944_v30  ;;  %977 = vmatpush3.bf16.xpose.msra.mxu1 %v976_v31 }
  0xc4   :  { %947 = vmatprep.subr.bf16.mxu0 %v946_v32  ;;  %979 = vmatprep.subr.bf16.mxu1 %v978_v33 }
  0xc5   :  { %521 = vperm.xlu1 %1013, %v1167_v2   ;;  %605 = vperm.xlu0 %1017, %v1167_v2  }
  0xc9   :  { %1015 = vset.pattern.permute.xlu1 %v1107_v22  ;;  %1020 = vset.pattern.permute.xlu0 %v1108_v23 }
  0xca   :  { %563 = vperm.xlu1 %1015, %v1167_v2  }
  0xcb   :  { %949 = vmatpush3.bf16.xpose.msra.mxu0 %v948_v42  ;;  %981 = vmatpush3.bf16.xpose.msra.mxu1 %v980_v44 }
  0xcc   :  { %951 = vmatprep.subr.bf16.mxu0 %v950_v45  ;;  %983 = vmatprep.subr.bf16.mxu1 %v982_v46 }
  0xce   :  { %1016 = vset.pattern.permute.xlu1 %v1109_v24 }
  0xcf   :  { %584 = vperm.xlu1 %1016, %v1167_v2  }
  0xd3   :  { %953 = vmatpush3.bf16.xpose.msra.mxu0 %v952_v58  ;;  %985 = vmatpush3.bf16.xpose.msra.mxu1 %v984_v59 }
  0xd4   :  { %955 = vmatprep.subr.bf16.mxu0 %v954_v61  ;;  %987 = vmatprep.subr.bf16.mxu1 %v986_v62 }
  0xd5   :  { %1018 = vset.pattern.permute.xlu1 %v1110_v25 }
  0xd6   :  { %626 = vperm.xlu1 %1018, %v1167_v2  }
  0xda   :  { %1019 = vset.pattern.permute.xlu1 %v1108_v23 }
  0xdb   :  { %957 = vmatpush3.bf16.xpose.msra.mxu0 %v956_v8  ;;  %989 = vmatpush3.bf16.xpose.msra.mxu1 %v988_v9 }
  0xdc   :  { %959 = vmatprep.subr.bf16.mxu0 %v958_v10  ;;  %991 = vmatprep.subr.bf16.mxu1 %v990_v11 }
  0xdd   :  { %647 = vperm.xlu1 %1019, %v1167_v2  }
  0xe3   :  { %961 = vmatpush3.bf16.xpose.msra.mxu0 %v960_v15  ;;  %993 = vmatpush3.bf16.xpose.msra.mxu1 %v992_v17 }
 0x13d   :  { %v501_v33 = vpop.permute.xlu1 %500  ;;  %v1203_v2 = vpop.permute.xlu0 %542 }
 0x13e   :  { %vm502_vm6 = vcmp.eq.s32.totalorder %v1170_v43, %v501_v33  ;;  %vm503_vm7 = vcmp.eq.s32.totalorder %v1173_v49, %v501_v33  ;;  %vm504_vm3 = vcmp.eq.s32.totalorder %v1179_v51, %v501_v33  ;;  %vm505_vm13 = vcmp.eq.s32.totalorder %v1176_v50, %v501_v33 }
 0x13f   :  { %vm547_vm10 = vcmp.eq.s32.totalorder %v1176_v50, %v1203_v2 }
 0x144   :  { %v1197_v34 = vpop.permute.xlu1 %521  ;;  %v1209_v39 = vpop.permute.xlu0 %605 }
 0x145   :  { %vm525_vm1 = vcmp.eq.s32.totalorder %v1179_v51, %v1197_v34  ;;  %vm526_vm0 = vcmp.eq.s32.totalorder %v1176_v50, %v1197_v34  ;;  %vm609_vm12 = vcmp.eq.s32.totalorder %v1179_v51, %v1209_v39 }
 0x149   :  { %v1199_v35 = vpop.permute.xlu1 %563 }
 0x14a   :  { %vm565_vm14 = vcmp.eq.s32.totalorder %v1170_v43, %v1199_v35  ;;  %vm566_vm15 = vcmp.eq.s32.totalorder %v1173_v49, %v1199_v35  ;;  %vm568_vm2 = vcmp.eq.s32.totalorder %v1176_v50, %v1199_v35 }
 0x14e   :  { %v1201_v37 = vpop.permute.xlu1 %584 }
 0x155   :  { %v1205_v38 = vpop.permute.xlu1 %626 }
 0x156   :  { %vm628_vm11 = vcmp.eq.s32.totalorder %v1170_v43, %v1205_v38 }
 0x15c   :  { %v1223_v40 = vpop.permute.xlu1 %647 }
 0x17d   :  { %v760_v26 = vpop.f32.mrb[0].mxu0  ;;  %v795_v27 = vpop.f32.mrb[0].mxu1 }
 0x17e   :  { %v761_v28 = vpop.f32.mrb[1].mxu0  ;;  %v796_v29 = vpop.f32.mrb[1].mxu1 }
 0x17f   :  { %v762_v30 = vadd.f32 %v761_v28, %v760_v26  ;;  %v797_v31 = vadd.f32 %v796_v29, %v795_v27 }
 0x181   :  { %v333_v32 = vadd.f32 %v797_v31, %v762_v30 }
 0x183   :  { %830 = vmatprep.mubr.f32.mxu0 %v333_v32  ;;  %864 = vmatprep.mubr.f32.mxu1 %v333_v32 }
 0x184   :  { %831 = vmatmul.mubr.f32.vlgmr.msra.gmra.mrb[2].mxu0 %v333_v32  ;;  %865 = vmatmul.mubr.f32.vlgmr.msra.gmra.mrb[2].mxu1 %v333_v32 }
 0x257   :  { %v1243_v41 = vpop.f32.mrb[2].mxu0  ;;  %v1245_v42 = vpop.f32.mrb[2].mxu1 }
 0x258   :  { %v1257_v44 = vpop.f32.mrb[3].mxu0  ;;  %v1259_v45 = vpop.f32.mrb[3].mxu1  ;;  %v506_v46 = vsel %vm502_vm6, %v1243_v41, 0.0  ;;  %v485_v47 = vsel %vm481_vm4, %v1243_v41, 0.0  ;;  %v508_v52 = vsel %vm504_vm3, %v1245_v42, 0.0  ;;  %v487_v54 = vsel %vm483_vm8, %v1245_v42, 0.0 }
 0x259   :  { %v507_v48 = vsel %vm503_vm7, %v1257_v44, 0.0  ;;  %v486_v53 = vsel %vm482_vm5, %v1257_v44, 0.0  ;;  %vm610_vm4 = vcmp.eq.s32.totalorder %v1176_v50, %v1209_v39  ;;  %vm588_vm6 = vcmp.eq.s32.totalorder %v1179_v51, %v1201_v37 }
 0x25a   :  { %vm629_vm7 = vcmp.eq.s32.totalorder %v1173_v49, %v1205_v38  ;;  %v510_v55 = vadd.f32 %v507_v48, %v506_v46  ;;  %v489_v56 = vadd.f32 %v486_v53, %v485_v47  ;;  %v569_v57 = vsel %vm565_vm14, %v1243_v41, 0.0 }
 0x25b   :  { %v570_v58 = vsel %vm566_vm15, %v1257_v44, 0.0  ;;  %vm651_vm5 = vcmp.eq.s32.totalorder %v1179_v51, %v1223_v40  ;;  %v509_v59 = vsel %vm505_vm13, %v1259_v45, 0.0  ;;  %v488_v61 = vsel %vm484_vm9, %v1259_v45, 0.0 }
 0x25c   :  { %v573_v62 = vadd.f32 %v570_v58, %v569_v57  ;;  %vm1447_vm8 = vcmp.eq.s32.totalorder %v1170_v43, %v1197_v34  ;;  %vm589_vm14 = vcmp.eq.s32.totalorder %v1176_v50, %v1201_v37  ;;  %v511_v0 = vadd.f32 %v510_v55, %v508_v52 }
 0x25d   :  { %v527_v63 = vsel %vm1447_vm8, %v1243_v41, 0.0  ;;  %v490_v1 = vadd.f32 %v489_v56, %v487_v54  ;;  %vm1448_vm15 = vcmp.eq.s32.totalorder %v1179_v51, %v1199_v35  ;;  %vm1449_vm9 = vcmp.eq.s32.totalorder %v1173_v49, %v1197_v34 }
 0x25e   :  { %v571_v3 = vsel %vm1448_vm15, %v1245_v42, 0.0  ;;  %v528_v4 = vsel %vm1449_vm9, %v1257_v44, 0.0  ;;  %vm652_vm13 = vcmp.eq.s32.totalorder %v1176_v50, %v1223_v40  ;;  %v572_v5 = vsel %vm568_vm2, %v1259_v45, 0.0 }
 0x25f   :  { %v574_v6 = vadd.f32 %v573_v62, %v571_v3  ;;  %v531_v7 = vadd.f32 %v528_v4, %v527_v63  ;;  %vm1450_vm3 = vcmp.eq.s32.totalorder %v1170_v43, %v1203_v2  ;;  %v512_v9 = vadd.f32 %v511_v0, %v509_v59 }
 0x260   :  { %v548_v8 = vsel %vm1450_vm3, %v1243_v41, 0.0  ;;  %v491_v10 = vadd.f32 %v490_v1, %v488_v61  ;;  %v529_v11 = vsel %vm525_vm1, %v1245_v42, 0.0  ;;  %vm1451_vm8 = vcmp.eq.s32.totalorder %v1173_v49, %v1203_v2 }
 0x261   :  { %v549_v12 = vsel %vm1451_vm8, %v1257_v44, 0.0  ;;  %v575_v13 = vadd.f32 %v574_v6, %v572_v5  ;;  %v532_v14 = vadd.f32 %v531_v7, %v529_v11  ;;  %vm630_vm2 = vcmp.eq.s32.totalorder %v1179_v51, %v1205_v38  ;;  %513 = vadd.xlane.f32.xlu1 %v512_v9 }
 0x262   :  { %v552_v15 = vadd.f32 %v549_v12, %v548_v8  ;;  %492 = vadd.xlane.f32.xlu0 %v491_v10  ;;  %v530_v16 = vsel %vm526_vm0, %v1259_v45, 0.0  ;;  %vm1452_vm1 = vcmp.eq.s32.totalorder %v1179_v51, %v1203_v2  ;;  %vm1453_vm15 = vcmp.eq.s32.totalorder %v1170_v43, %v1209_v39 }
 0x263   :  { %v550_v17 = vsel %vm1452_vm1, %v1245_v42, 0.0  ;;  %v611_v18 = vsel %vm1453_vm15, %v1243_v41, 0.0  ;;  %vm1454_vm9 = vcmp.eq.s32.totalorder %v1173_v49, %v1209_v39  ;;  %v533_v20 = vadd.f32 %v532_v14, %v530_v16 }
 0x264   :  { %v612_v19 = vsel %vm1454_vm9, %v1257_v44, 0.0  ;;  %v553_v21 = vadd.f32 %v552_v15, %v550_v17  ;;  %vm1455_vm0 = vcmp.eq.s32.totalorder %v1170_v43, %v1201_v37  ;;  %v551_v24 = vsel %vm547_vm10, %v1259_v45, 0.0 }
 0x265   :  { %v615_v22 = vadd.f32 %v612_v19, %v611_v18  ;;  %v590_v23 = vsel %vm1455_vm0, %v1243_v41, 0.0  ;;  %v613_v25 = vsel %vm609_vm12, %v1245_v42, 0.0  ;;  %vm1456_vm3 = vcmp.eq.s32.totalorder %v1173_v49, %v1201_v37  ;;  %576 = vadd.xlane.f32.xlu1 %v575_v13 }
 0x266   :  { %v591_v26 = vsel %vm1456_vm3, %v1257_v44, 0.0  ;;  %vm1457_vm8 = vcmp.eq.s32.totalorder %v1170_v43, %v1223_v40  ;;  %v554_v28 = vadd.f32 %v553_v21, %v551_v24  ;;  %vm1458_vm10 = vcmp.eq.s32.totalorder %v1173_v49, %v1223_v40  ;;  %534 = vadd.xlane.f32.xlu0 %v533_v20 }
 0x267   :  { %v653_v27 = vsel %vm1457_vm8, %v1243_v41, 0.0  ;;  %v616_v29 = vadd.f32 %v615_v22, %v613_v25  ;;  %v594_v30 = vadd.f32 %v591_v26, %v590_v23  ;;  %v654_v31 = vsel %vm1458_vm10, %v1257_v44, 0.0 }
 0x268   :  { %v614_v32 = vsel %vm610_vm4, %v1259_v45, 0.0  ;;  %v592_v33 = vsel %vm588_vm6, %v1245_v42, 0.0  ;;  %v657_v34 = vadd.f32 %v654_v31, %v653_v27  ;;  %v632_v35 = vsel %vm628_vm11, %v1243_v41, 0.0 }
 0x269   :  { %v617_v36 = vadd.f32 %v616_v29, %v614_v32  ;;  %v595_v2 = vadd.f32 %v594_v30, %v592_v33  ;;  %v655_v46 = vsel %vm651_vm5, %v1245_v42, 0.0  ;;  %v633_v39 = vsel %vm629_vm7, %v1257_v44, 0.0 }
 0x26a   :  { %v593_v47 = vsel %vm589_vm14, %v1259_v45, 0.0  ;;  %v658_v48 = vadd.f32 %v657_v34, %v655_v46  ;;  %vm631_vm11 = vcmp.eq.s32.totalorder %v1176_v50, %v1205_v38  ;;  %v636_v41 = vadd.f32 %v633_v39, %v632_v35  ;;  %555 = vadd.xlane.f32.xlu0 %v554_v28 }
 0x26b   :  { %v596_v52 = vadd.f32 %v595_v2, %v593_v47  ;;  %v656_v53 = vsel %vm652_vm13, %v1259_v45, 0.0  ;;  %v634_v49 = vsel %vm630_vm2, %v1245_v42, 0.0  ;;  %618 = vadd.xlane.f32.xlu1 %v617_v36  ;;  %v635_v54 = vsel %vm631_vm11, %v1259_v45, 0.0 }
 0x26c   :  { %v659_v37 = vadd.f32 %v658_v48, %v656_v53  ;;  %v637_v44 = vadd.f32 %v636_v41, %v634_v49  ;;  %vm515_vm12 = vcmp.eq.s32.totalorder %v1170_v43, 1  ;;  %vm494_vm4 = vcmp.eq.s32.totalorder %v1170_v43, 0 }
 0x26d   :  { %vm536_vm6 = vcmp.eq.s32.totalorder %v1170_v43, 2  ;;  %vm557_vm7 = vcmp.eq.s32.totalorder %v1170_v43, 3  ;;  %vm578_vm5 = vcmp.eq.s32.totalorder %v1170_v43, 4  ;;  %vm599_vm14 = vcmp.eq.s32.totalorder %v1170_v43, 5 }
 0x26e   :  { %v638_v55 = vadd.f32 %v637_v44, %v635_v54  ;;  %597 = vadd.xlane.f32.xlu0 %v596_v52  ;;  %vm620_vm13 = vcmp.eq.s32.totalorder %v1170_v43, 6  ;;  %vm641_vm2 = vcmp.eq.s32.totalorder %v1170_v43, 7  ;;  %vm662_vm1 = vcmp.eq.s32.totalorder %v1170_v43, 8 }
 0x26f   :  { %660 = vadd.xlane.f32.xlu1 %v659_v37  ;;  %v667_v14 = vsel %vm494_vm4, -1.0, %v1102_v60  ;;  %vm676_vm15 = vcmask 72704   ;;  %vm689_vm9 = vcmask 7168  }
 0x272   :  { %639 = vadd.xlane.f32.xlu0 %v638_v55 }
 0x2ee   :  { %v514_v56 = vpop.xlane.xlu1 %513 }
 0x2ef   :  { %v493_v50 = vpop.xlane.xlu0 %492  ;;  %v518_v51 = vsel %vm515_vm12, %v514_v56, 0.0 }
 0x2f0   :  { %v497_v38 = vsel %vm494_vm4, %v493_v50, 0.0 }
 0x2f1   :  { %v519_v45 = vadd.f32 %v518_v51, %v497_v38 }
 0x2f2   :  { %v577_v40 = vpop.xlane.xlu1 %576 }
 0x2f3   :  { %v535_v42 = vpop.xlane.xlu0 %534  ;;  %v581_v0 = vsel %vm578_vm5, %v577_v40, 0.0 }
 0x2f4   :  { %v539_v57 = vsel %vm536_vm6, %v535_v42, 0.0 }
 0x2f5   :  { %v540_v58 = vadd.f32 %v539_v57, %v519_v45 }
 0x2f7   :  { %v556_v59 = vpop.xlane.xlu0 %555 }
 0x2f8   :  { %v560_v61 = vsel %vm557_vm7, %v556_v59, 0.0  ;;  %v619_v62 = vpop.xlane.xlu1 %618 }
 0x2f9   :  { %v561_v63 = vadd.f32 %v560_v61, %v540_v58  ;;  %v623_v6 = vsel %vm620_vm13, %v619_v62, 0.0 }
 0x2fb   :  { %v582_v1 = vadd.f32 %v581_v0, %v561_v63  ;;  %v598_v3 = vpop.xlane.xlu0 %597 }
 0x2fc   :  { %v602_v4 = vsel %vm599_vm14, %v598_v3, 0.0  ;;  %v661_v7 = vpop.xlane.xlu1 %660 }
 0x2fd   :  { %v603_v5 = vadd.f32 %v602_v4, %v582_v1  ;;  %v665_v12 = vsel %vm662_vm1, %v661_v7, 0.0 }
 0x2ff   :  { %v624_v8 = vadd.f32 %v623_v6, %v603_v5  ;;  %v640_v9 = vpop.xlane.xlu0 %639 }
 0x300   :  { %v644_v10 = vsel %vm641_vm2, %v640_v9, 0.0 }
 0x301   :  { %v645_v11 = vadd.f32 %v644_v10, %v624_v8 }
 0x303   :  { %v666_v13 = vadd.f32 %v665_v12, %v645_v11 }
 0x305   :  { %v727_v15 = vclamps-f32 %v666_v13, 10.0 }
 0x307   :  { %v670_v16 = vmul.f32 %v727_v15, %v667_v14 }
 0x309   :  { %v671_v17 = vmul.f32 1.442695, %v670_v16 }
 0x30b   :  { %1021 = vpow2.f32 %v671_v17 }
 0x315   :  { %v1022_v18 = vpop.eup %1021 }
 0x316   :  { %v673_v19 = vadd.f32 1.0, %v1022_v18 }
 0x318   :  { %1023 = vlog2.f32 %v673_v19 }
 0x322   :  { %v1024_v20 = vpop.eup %1023 }
 0x323   :  { %v675_v21 = vmul.f32 0.6931472, %v1024_v20 }
 0x325   :  { %v677_v22 = vsel %vm676_vm15, %v675_v21, 0.0 }
 0x326   :  { %678 = vadd.xlane.f32.xlu0 %v677_v22 }
 0x3b3   :  { %v679_v23 = vpop.xlane.xlu0 %678 }
 0x3b4   :  { %v690_v24 = vsel %vm689_vm9, %v679_v23, 0.0 }
 0x3b5   :  { %691 = vadd.xlane.f32.xlu1 %v690_v24 }
 0x442   :  { %v692_v25 = vpop.xlane.xlu1 %691 }
 0x443   :  { %v693_v26 = vrot.slane %v692_v25, 4 }
 0x445   :  { %v694_v43 = vadd.f32 %v693_v26, %v692_v25 }
 0x447   :  { %v695_v60 = vrot.slane %v694_v43, 2 }
 0x449   :  { %v696_v27 = vadd.f32 %v695_v60, %v694_v43 }
 0x44b   :  { %v697_v28 = vrot.slane %v696_v27, 1 }
 0x44d   :  { %v698_v29 = vadd.f32 %v697_v28, %v696_v27 }
 0x44f   :  { %994 = vpush %v698_v29 }
 0x480   :  { %s995_s3 = spop %994 }
 0x481   :  { %v700_v30 = vstv %s995_s3 }
 0x482   :  { %702 = vst [vmem:[#allocation7] sm:$0x1] %v700_v30 }
 0x483   :  { %1080 = shalt.err (!%p1077_p6)
}
 0x484   :  { %s1081_s22 = scalar_lea.hbm %s1446_s4, 16 }
 0x485   :  { %p1082_p7 = scmp.ne.s32.totalorder %s1446_s4, %s1081_s22  ;;  %p1085_p8 = scmp.lt.u32.totalorder %s1081_s22, %s1446_s4 }
 0x487   :  { %p1087_p9 = pnand %p1085_p8, %p1082_p7 }
 0x489   :  { %1090 = shalt.err (!%p1087_p9)
}
 0x48a   :  { %712 = dma.vmem_to_hbm [thread:$0]  %s710_s1, 16, %s1446_s4, [#allocation4]  }
 0x48b   :  { %1095 = dma.done.wait [#allocation4], 16  }
 0x48c   :  { %1096 = vsyncadd [#allocation4], 4294967280 }
 0x48d   :  { %716 = vsyncpa [#allocation3], 1 }
 0x48e   :  { %717 = vsyncpa [#allocation6], 1 }
 0x48f   :  { %718 = vsyncpa [#allocation4], 1 }

</bundles_post_ra>
